<compile_context>
chip_gen: v7x
topology: tpu7x:2x2x1
jax: 0.10.0
libtpu: 0.0.40
codegen_flags: <defaults>
</compile_context>

<pallas_src>
import functools

import jax
import jax.numpy as jnp
from jax import lax
from jax.experimental import pallas as pl
from jax.experimental.pallas import tpu as pltpu


def _make_kernel(*, K, pad, cin, cout, cin_g, cout_g, groups, H, W, is_depthwise):
    """Builds the per-batch-element kernel body.

    Refs (in order):
      w_ref   : fused conv weights in VMEM
                  depthwise: (cout, K*K)        -- per-tap (cout, 1) column broadcast
                  grouped  : (K*K, cout, cin_g) -- per-tap MXU matmul operand
      b_ref   : (cout, 1) fused bias in VMEM
      x_ref   : (1, cin, H, W) unpadded activations in VMEM
      o_ref   : (1, cout, H*W) lane-dense output slab in VMEM
      xext_ref: (cin, Lext) VMEM scratch holding the zero-padded, spatially
                flattened activations (Lext = Hp*Wp + 2*base).
    """
    Hp = H + 2 * pad
    Wp = W + 2 * pad
    L = Hp * Wp                  # flattened padded frame length
    base = pad * Wp + pad        # largest |tap offset| in the flattened frame
    Lext = L + 2 * base

    def kernel(w_ref, b_ref, x_ref, o_ref, xext_ref):
        # --- build the zero-padded, flattened activation slab in VMEM -------------
        # (replaces the wrapper-side jnp.pad -> no extra HBM round trip of x)
        xext_ref[...] = jnp.zeros((cin, Lext), xext_ref.dtype)
        for i in range(H):
            start = 2 * base + i * Wp          # image row i inside the ext frame
            xext_ref[:, start:start + W] = x_ref[0, :, i, :]

        # --- shift-and-add convolution in the flattened padded frame --------------
        # For tap (kh, kw), the contribution to padded-frame position p comes from
        # flattened position p + (kh - pad)*Wp + (kw - pad).  Non-interior positions
        # accumulate harmless values and are discarded on extraction.
        if is_depthwise:
            acc = jnp.zeros((cout, L), jnp.float32)
            for kh in range(K):
                for kw in range(K):
                    t = kh * K + kw
                    s0 = base + (kh - pad) * Wp + (kw - pad)
                    sl = xext_ref[:, s0:s0 + L].astype(jnp.float32)   # (cin, L)
                    w_col = w_ref[:, t:t + 1].astype(jnp.float32)     # (cout, 1)
                    acc = acc + sl * w_col                            # lane-dense VPU FMA
        else:
            accs = [jnp.zeros((cout_g, L), jnp.float32) for _ in range(groups)]
            for kh in range(K):
                for kw in range(K):
                    t = kh * K + kw
                    s0 = base + (kh - pad) * Wp + (kw - pad)
                    sl = xext_ref[:, s0:s0 + L].astype(jnp.float32)   # (cin, L)
                    for g in range(groups):
                        w_g = w_ref[t, g * cout_g:(g + 1) * cout_g, :].astype(jnp.float32)
                        x_g = sl[g * cin_g:(g + 1) * cin_g, :]
                        # (cout_g, cin_g) @ (cin_g, L) on the MXU.
                        accs[g] = accs[g] + jnp.dot(
                            w_g, x_g, preferred_element_type=jnp.float32)
            acc = accs[0] if groups == 1 else jnp.concatenate(accs, axis=0)

        # --- extract interior rows and store one lane-dense (cout, H*W) slab ------
        rows = [acc[:, base + ho * Wp: base + ho * Wp + W] for ho in range(H)]
        out = rows[0] if H == 1 else jnp.concatenate(rows, axis=-1)   # (cout, H*W)
        out = out + b_ref[...].astype(jnp.float32)
        o_ref[0] = out.astype(o_ref.dtype)

    return kernel


@functools.partial(
    jax.jit, static_argnames=("kernel_size", "small_kernel", "stride", "groups"))
def reparam_large_kernel_conv(x, lk_w, sk_w, lk_b, sk_b, *, kernel_size,
                              small_kernel, stride, groups):
    """Forward of the unfused ReparamLargeKernelConv:

        y = conv(x, lk_w) + lk_b + conv(x, sk_w) + sk_b

    computed (via the module's own reparam identity) as a single KxK grouped conv
    with fused weights/bias.
    """
    N, Cin, H, W = x.shape
    Cout = lk_w.shape[0]
    K, SK = kernel_size, small_kernel
    cin_g = Cin // groups
    cout_g = Cout // groups
    pad = K // 2
    off = (K - SK) // 2

    # Structural reparameterization (identical to the module's _fuse_kernel()).
    w_eff = lk_w + jnp.pad(sk_w, ((0, 0), (0, 0), (off, off), (off, off)))
    b_eff = (lk_b + sk_b).reshape(Cout, 1)

    is_depthwise = (groups == Cin) and (Cout == Cin)
    if is_depthwise:
        # (C, 1, K, K) -> (C, K*K): per-tap column w[:, t] broadcast along lanes.
        w_k = w_eff[:, 0, :, :].reshape(Cout, K * K)
        w_spec = pl.BlockSpec((Cout, K * K), lambda n: (0, 0))
    else:
        # (Cout, cin_g, K, K) -> (K*K, Cout, cin_g): per-tap matmul operand.
        w_k = jnp.transpose(w_eff, (2, 3, 0, 1)).reshape(K * K, Cout, cin_g)
        w_spec = pl.BlockSpec((K * K, Cout, cin_g), lambda n: (0, 0, 0))

    Hp, Wp = H + 2 * pad, W + 2 * pad
    Lext = Hp * Wp + 2 * (pad * Wp + pad)

    kernel = _make_kernel(K=K, pad=pad, cin=Cin, cout=Cout, cin_g=cin_g,
                          cout_g=cout_g, groups=groups, H=H, W=W,
                          is_depthwise=is_depthwise)

    # TODO(synk): for large channel counts / spatial sizes, add a channel-block grid
    # axis (and set vmem_limit_bytes) so the per-step footprint fits v7x's 64 MiB VMEM.
    y_flat = pl.pallas_call(
        kernel,
        out_shape=jax.ShapeDtypeStruct((N, Cout, H * W), x.dtype),
        grid=(N,),
        in_specs=[
            w_spec,                                                # fused weights (VMEM)
            pl.BlockSpec((Cout, 1), lambda n: (0, 0)),             # fused bias   (VMEM)
            pl.BlockSpec((1, Cin, H, W), lambda n: (n, 0, 0, 0)),  # activations  (VMEM)
        ],
        # Lane-dense output slab: last dim H*W (= 256 here, a multiple of 128).
        out_specs=pl.BlockSpec((1, Cout, H * W), lambda n: (n, 0, 0)),
        scratch_shapes=[pltpu.VMEM((Cin, Lext), x.dtype)],
        compiler_params=pltpu.CompilerParams(
            dimension_semantics=("parallel",)),   # >=2 blocks -> both v7x TCs busy
    )(w_k, b_eff, x)

    y = y_flat.reshape(N, Cout, H, W)
    if stride > 1:
        # TODO(synk): stride > 1 is handled by computing the stride-1 output and
        # subsampling (exact for odd K, but wastes ~stride^2 compute in that case).
        y = y[:, :, ::stride, ::stride]
    return y


def _reference(x, lk_w, sk_w, lk_b, sk_b, *, kernel_size, small_kernel, stride,
               groups):
    """Pure-JAX reference matching the PyTorch unfused forward."""
    pad = kernel_size // 2
    pad_sk = small_kernel // 2
    dn = ("NCHW", "OIHW", "NCHW")
    lk_out = lax.conv_general_dilated(
        x, lk_w, window_strides=(stride, stride),
        padding=[(pad, pad), (pad, pad)], dimension_numbers=dn,
        feature_group_count=groups)
    sk_out = lax.conv_general_dilated(
        x, sk_w, window_strides=(stride, stride),
        padding=[(pad_sk, pad_sk), (pad_sk, pad_sk)], dimension_numbers=dn,
        feature_group_count=groups)
    return (lk_out + lk_b[None, :, None, None]
            + sk_out + sk_b[None, :, None, None])


def _make_params(key, *, N, Cin, Cout, groups, K, SK, H, W):
    cin_g = Cin // groups
    kx, klk, ksk, kb1, kb2 = jax.random.split(key, 5)
    x = jax.random.normal(kx, (N, Cin, H, W), dtype=jnp.float32)
    lk_w = jax.random.normal(klk, (Cout, cin_g, K, K), dtype=jnp.float32) * 0.1
    sk_w = jax.random.normal(ksk, (Cout, cin_g, SK, SK), dtype=jnp.float32) * 0.1
    # PyTorch inits these biases to zero; use small nonzero values so the bias
    # path is actually exercised.
    lk_b = jax.random.normal(kb1, (Cout,), dtype=jnp.float32) * 0.01
    sk_b = jax.random.normal(kb2, (Cout,), dtype=jnp.float32) * 0.01
    return x, lk_w, sk_w, lk_b, sk_b


if __name__ == "__main__":
    root_key = jax.random.PRNGKey(0)

    # (name, Cin, Cout, groups, K, SK, stride, N, H, W)
    cases = [
        ("depthwise_k7_s1", 4, 4, 4, 7, 3, 1, 2, 16, 16),   # typical AetherNet usage
        ("grouped_k5_s1",   4, 8, 2, 5, 3, 1, 2, 16, 16),   # exercises the MXU path
        ("depthwise_k7_s2", 4, 4, 4, 7, 3, 2, 2, 16, 16),   # exercises the stride path
    ]
    case_keys = jax.random.split(root_key, len(cases))

    for key, (name, Cin, Cout, groups, K, SK, stride, N, H, W) in zip(case_keys, cases):
        x, lk_w, sk_w, lk_b, sk_b = _make_params(
            key, N=N, Cin=Cin, Cout=Cout, groups=groups, K=K, SK=SK, H=H, W=W)
        cfg = dict(kernel_size=K, small_kernel=SK, stride=stride, groups=groups)

        y = reparam_large_kernel_conv(x, lk_w, sk_w, lk_b, sk_b, **cfg)
        y = jax.block_until_ready(y)

        y_ref = _reference(x, lk_w, sk_w, lk_b, sk_b, **cfg)
        assert y.shape == y_ref.shape, (name, y.shape, y_ref.shape)
        max_err = float(jnp.max(jnp.abs(y - y_ref)))
        assert jnp.allclose(y, y_ref, atol=1e-4, rtol=1e-4), (name, max_err)

    print("KERNEL_OK")
</pallas_src>

<mosaic_0001>
module attributes {stable_mosaic.version = 11 : i64} {
  func.func @kernel(%arg0: i32, %arg1: memref<4x49xf32, #tpu.memory_space<vmem>>, %arg2: memref<4x1xf32, #tpu.memory_space<vmem>>, %arg3: memref<1x4x16x16xf32, #tpu.memory_space<vmem>>, %arg4: memref<1x4x256xf32, #tpu.memory_space<vmem>>, %arg5: memref<4x622xf32, #tpu.memory_space<vmem>>) attributes {dimension_semantics = [#tpu.dimension_semantics<parallel>], iteration_bounds = array<i64: 2>, scalar_prefetch = 0 : i64, scratch_operands = 1 : i64, tpu.core_type = #tpu.core_type<tc>, window_params = [{pipeline_mode = #tpu.pipeline_mode<synchronous>, transform_indices = @transform_0, window_bounds = array<i64: 4, 49>}, {pipeline_mode = #tpu.pipeline_mode<synchronous>, transform_indices = @transform_1, window_bounds = array<i64: 4, 1>}, {transform_indices = @transform_2, window_bounds = array<i64: 1, 4, 16, 16>}, {transform_indices = @transform_3, window_bounds = array<i64: 1, 4, 256>}]} {
    %cst = arith.constant 0.000000e+00 : f32
    %0 = vector.broadcast %cst : f32 to vector<4x622xf32>
    %c0 = arith.constant 0 : index
    %c0_0 = arith.constant 0 : index
    %1 = vector.load %arg5[%c0, %c0_0] : memref<4x622xf32, #tpu.memory_space<vmem>>, vector<4x622xf32>
    tpu.vector_store %arg5[%c0, %c0_0], %0 {strides = array<i32>} : memref<4x622xf32, #tpu.memory_space<vmem>>, vector<4x622xf32>,
    %c0_1 = arith.constant 0 : index
    %c0_2 = arith.constant 0 : index
    %c0_3 = arith.constant 0 : index
    %c0_4 = arith.constant 0 : index
    %2 = vector.load %arg3[%c0_1, %c0_2, %c0_3, %c0_4] : memref<1x4x16x16xf32, #tpu.memory_space<vmem>>, vector<1x4x1x16xf32>
    %3 = vector.shape_cast %2 : vector<1x4x1x16xf32> to vector<4x16xf32>
    %c0_5 = arith.constant 0 : index
    %c138 = arith.constant 138 : index
    %4 = vector.load %arg5[%c0_5, %c138] : memref<4x622xf32, #tpu.memory_space<vmem>>, vector<4x16xf32>
    tpu.vector_store %arg5[%c0_5, %c138], %3 {strides = array<i32>} : memref<4x622xf32, #tpu.memory_space<vmem>>, vector<4x16xf32>,
    %c0_6 = arith.constant 0 : index
    %c0_7 = arith.constant 0 : index
    %c1 = arith.constant 1 : index
    %c0_8 = arith.constant 0 : index
    %5 = vector.load %arg3[%c0_6, %c0_7, %c1, %c0_8] : memref<1x4x16x16xf32, #tpu.memory_space<vmem>>, vector<1x4x1x16xf32>
    %6 = vector.shape_cast %5 : vector<1x4x1x16xf32> to vector<4x16xf32>
    %c0_9 = arith.constant 0 : index
    %c160 = arith.constant 160 : index
    %7 = vector.load %arg5[%c0_9, %c160] : memref<4x622xf32, #tpu.memory_space<vmem>>, vector<4x16xf32>
    tpu.vector_store %arg5[%c0_9, %c160], %6 {strides = array<i32>} : memref<4x622xf32, #tpu.memory_space<vmem>>, vector<4x16xf32>,
    %c0_10 = arith.constant 0 : index
    %c0_11 = arith.constant 0 : index
    %c2 = arith.constant 2 : index
    %c0_12 = arith.constant 0 : index
    %8 = vector.load %arg3[%c0_10, %c0_11, %c2, %c0_12] : memref<1x4x16x16xf32, #tpu.memory_space<vmem>>, vector<1x4x1x16xf32>
    %9 = vector.shape_cast %8 : vector<1x4x1x16xf32> to vector<4x16xf32>
    %c0_13 = arith.constant 0 : index
    %c182 = arith.constant 182 : index
    %10 = vector.load %arg5[%c0_13, %c182] : memref<4x622xf32, #tpu.memory_space<vmem>>, vector<4x16xf32>
    tpu.vector_store %arg5[%c0_13, %c182], %9 {strides = array<i32>} : memref<4x622xf32, #tpu.memory_space<vmem>>, vector<4x16xf32>,
    %c0_14 = arith.constant 0 : index
    %c0_15 = arith.constant 0 : index
    %c3 = arith.constant 3 : index
    %c0_16 = arith.constant 0 : index
    %11 = vector.load %arg3[%c0_14, %c0_15, %c3, %c0_16] : memref<1x4x16x16xf32, #tpu.memory_space<vmem>>, vector<1x4x1x16xf32>
    %12 = vector.shape_cast %11 : vector<1x4x1x16xf32> to vector<4x16xf32>
    %c0_17 = arith.constant 0 : index
    %c204 = arith.constant 204 : index
    %13 = vector.load %arg5[%c0_17, %c204] : memref<4x622xf32, #tpu.memory_space<vmem>>, vector<4x16xf32>
    tpu.vector_store %arg5[%c0_17, %c204], %12 {strides = array<i32>} : memref<4x622xf32, #tpu.memory_space<vmem>>, vector<4x16xf32>,
    %c0_18 = arith.constant 0 : index
    %c0_19 = arith.constant 0 : index
    %c4 = arith.constant 4 : index
    %c0_20 = arith.constant 0 : index
    %14 = vector.load %arg3[%c0_18, %c0_19, %c4, %c0_20] : memref<1x4x16x16xf32, #tpu.memory_space<vmem>>, vector<1x4x1x16xf32>
    %15 = vector.shape_cast %14 : vector<1x4x1x16xf32> to vector<4x16xf32>
    %c0_21 = arith.constant 0 : index
    %c226 = arith.constant 226 : index
    %16 = vector.load %arg5[%c0_21, %c226] : memref<4x622xf32, #tpu.memory_space<vmem>>, vector<4x16xf32>
    tpu.vector_store %arg5[%c0_21, %c226], %15 {strides = array<i32>} : memref<4x622xf32, #tpu.memory_space<vmem>>, vector<4x16xf32>,
    %c0_22 = arith.constant 0 : index
    %c0_23 = arith.constant 0 : index
    %c5 = arith.constant 5 : index
    %c0_24 = arith.constant 0 : index
    %17 = vector.load %arg3[%c0_22, %c0_23, %c5, %c0_24] : memref<1x4x16x16xf32, #tpu.memory_space<vmem>>, vector<1x4x1x16xf32>
    %18 = vector.shape_cast %17 : vector<1x4x1x16xf32> to vector<4x16xf32>
    %c0_25 = arith.constant 0 : index
    %c248 = arith.constant 248 : index
    %19 = vector.load %arg5[%c0_25, %c248] : memref<4x622xf32, #tpu.memory_space<vmem>>, vector<4x16xf32>
    tpu.vector_store %arg5[%c0_25, %c248], %18 {strides = array<i32>} : memref<4x622xf32, #tpu.memory_space<vmem>>, vector<4x16xf32>,
    %c0_26 = arith.constant 0 : index
    %c0_27 = arith.constant 0 : index
    %c6 = arith.constant 6 : index
    %c0_28 = arith.constant 0 : index
    %20 = vector.load %arg3[%c0_26, %c0_27, %c6, %c0_28] : memref<1x4x16x16xf32, #tpu.memory_space<vmem>>, vector<1x4x1x16xf32>
    %21 = vector.shape_cast %20 : vector<1x4x1x16xf32> to vector<4x16xf32>
    %c0_29 = arith.constant 0 : index
    %c270 = arith.constant 270 : index
    %22 = vector.load %arg5[%c0_29, %c270] : memref<4x622xf32, #tpu.memory_space<vmem>>, vector<4x16xf32>
    tpu.vector_store %arg5[%c0_29, %c270], %21 {strides = array<i32>} : memref<4x622xf32, #tpu.memory_space<vmem>>, vector<4x16xf32>,
    %c0_30 = arith.constant 0 : index
    %c0_31 = arith.constant 0 : index
    %c7 = arith.constant 7 : index
    %c0_32 = arith.constant 0 : index
    %23 = vector.load %arg3[%c0_30, %c0_31, %c7, %c0_32] : memref<1x4x16x16xf32, #tpu.memory_space<vmem>>, vector<1x4x1x16xf32>
    %24 = vector.shape_cast %23 : vector<1x4x1x16xf32> to vector<4x16xf32>
    %c0_33 = arith.constant 0 : index
    %c292 = arith.constant 292 : index
    %25 = vector.load %arg5[%c0_33, %c292] : memref<4x622xf32, #tpu.memory_space<vmem>>, vector<4x16xf32>
    tpu.vector_store %arg5[%c0_33, %c292], %24 {strides = array<i32>} : memref<4x622xf32, #tpu.memory_space<vmem>>, vector<4x16xf32>,
    %c0_34 = arith.constant 0 : index
    %c0_35 = arith.constant 0 : index
    %c8 = arith.constant 8 : index
    %c0_36 = arith.constant 0 : index
    %26 = vector.load %arg3[%c0_34, %c0_35, %c8, %c0_36] : memref<1x4x16x16xf32, #tpu.memory_space<vmem>>, vector<1x4x1x16xf32>
    %27 = vector.shape_cast %26 : vector<1x4x1x16xf32> to vector<4x16xf32>
    %c0_37 = arith.constant 0 : index
    %c314 = arith.constant 314 : index
    %28 = vector.load %arg5[%c0_37, %c314] : memref<4x622xf32, #tpu.memory_space<vmem>>, vector<4x16xf32>
    tpu.vector_store %arg5[%c0_37, %c314], %27 {strides = array<i32>} : memref<4x622xf32, #tpu.memory_space<vmem>>, vector<4x16xf32>,
    %c0_38 = arith.constant 0 : index
    %c0_39 = arith.constant 0 : index
    %c9 = arith.constant 9 : index
    %c0_40 = arith.constant 0 : index
    %29 = vector.load %arg3[%c0_38, %c0_39, %c9, %c0_40] : memref<1x4x16x16xf32, #tpu.memory_space<vmem>>, vector<1x4x1x16xf32>
    %30 = vector.shape_cast %29 : vector<1x4x1x16xf32> to vector<4x16xf32>
    %c0_41 = arith.constant 0 : index
    %c336 = arith.constant 336 : index
    %31 = vector.load %arg5[%c0_41, %c336] : memref<4x622xf32, #tpu.memory_space<vmem>>, vector<4x16xf32>
    tpu.vector_store %arg5[%c0_41, %c336], %30 {strides = array<i32>} : memref<4x622xf32, #tpu.memory_space<vmem>>, vector<4x16xf32>,
    %c0_42 = arith.constant 0 : index
    %c0_43 = arith.constant 0 : index
    %c10 = arith.constant 10 : index
    %c0_44 = arith.constant 0 : index
    %32 = vector.load %arg3[%c0_42, %c0_43, %c10, %c0_44] : memref<1x4x16x16xf32, #tpu.memory_space<vmem>>, vector<1x4x1x16xf32>
    %33 = vector.shape_cast %32 : vector<1x4x1x16xf32> to vector<4x16xf32>
    %c0_45 = arith.constant 0 : index
    %c358 = arith.constant 358 : index
    %34 = vector.load %arg5[%c0_45, %c358] : memref<4x622xf32, #tpu.memory_space<vmem>>, vector<4x16xf32>
    tpu.vector_store %arg5[%c0_45, %c358], %33 {strides = array<i32>} : memref<4x622xf32, #tpu.memory_space<vmem>>, vector<4x16xf32>,
    %c0_46 = arith.constant 0 : index
    %c0_47 = arith.constant 0 : index
    %c11 = arith.constant 11 : index
    %c0_48 = arith.constant 0 : index
    %35 = vector.load %arg3[%c0_46, %c0_47, %c11, %c0_48] : memref<1x4x16x16xf32, #tpu.memory_space<vmem>>, vector<1x4x1x16xf32>
    %36 = vector.shape_cast %35 : vector<1x4x1x16xf32> to vector<4x16xf32>
    %c0_49 = arith.constant 0 : index
    %c380 = arith.constant 380 : index
    %37 = vector.load %arg5[%c0_49, %c380] : memref<4x622xf32, #tpu.memory_space<vmem>>, vector<4x16xf32>
    tpu.vector_store %arg5[%c0_49, %c380], %36 {strides = array<i32>} : memref<4x622xf32, #tpu.memory_space<vmem>>, vector<4x16xf32>,
    %c0_50 = arith.constant 0 : index
    %c0_51 = arith.constant 0 : index
    %c12 = arith.constant 12 : index
    %c0_52 = arith.constant 0 : index
    %38 = vector.load %arg3[%c0_50, %c0_51, %c12, %c0_52] : memref<1x4x16x16xf32, #tpu.memory_space<vmem>>, vector<1x4x1x16xf32>
    %39 = vector.shape_cast %38 : vector<1x4x1x16xf32> to vector<4x16xf32>
    %c0_53 = arith.constant 0 : index
    %c402 = arith.constant 402 : index
    %40 = vector.load %arg5[%c0_53, %c402] : memref<4x622xf32, #tpu.memory_space<vmem>>, vector<4x16xf32>
    tpu.vector_store %arg5[%c0_53, %c402], %39 {strides = array<i32>} : memref<4x622xf32, #tpu.memory_space<vmem>>, vector<4x16xf32>,
    %c0_54 = arith.constant 0 : index
    %c0_55 = arith.constant 0 : index
    %c13 = arith.constant 13 : index
    %c0_56 = arith.constant 0 : index
    %41 = vector.load %arg3[%c0_54, %c0_55, %c13, %c0_56] : memref<1x4x16x16xf32, #tpu.memory_space<vmem>>, vector<1x4x1x16xf32>
    %42 = vector.shape_cast %41 : vector<1x4x1x16xf32> to vector<4x16xf32>
    %c0_57 = arith.constant 0 : index
    %c424 = arith.constant 424 : index
    %43 = vector.load %arg5[%c0_57, %c424] : memref<4x622xf32, #tpu.memory_space<vmem>>, vector<4x16xf32>
    tpu.vector_store %arg5[%c0_57, %c424], %42 {strides = array<i32>} : memref<4x622xf32, #tpu.memory_space<vmem>>, vector<4x16xf32>,
    %c0_58 = arith.constant 0 : index
    %c0_59 = arith.constant 0 : index
    %c14 = arith.constant 14 : index
    %c0_60 = arith.constant 0 : index
    %44 = vector.load %arg3[%c0_58, %c0_59, %c14, %c0_60] : memref<1x4x16x16xf32, #tpu.memory_space<vmem>>, vector<1x4x1x16xf32>
    %45 = vector.shape_cast %44 : vector<1x4x1x16xf32> to vector<4x16xf32>
    %c0_61 = arith.constant 0 : index
    %c446 = arith.constant 446 : index
    %46 = vector.load %arg5[%c0_61, %c446] : memref<4x622xf32, #tpu.memory_space<vmem>>, vector<4x16xf32>
    tpu.vector_store %arg5[%c0_61, %c446], %45 {strides = array<i32>} : memref<4x622xf32, #tpu.memory_space<vmem>>, vector<4x16xf32>,
    %c0_62 = arith.constant 0 : index
    %c0_63 = arith.constant 0 : index
    %c15 = arith.constant 15 : index
    %c0_64 = arith.constant 0 : index
    %47 = vector.load %arg3[%c0_62, %c0_63, %c15, %c0_64] : memref<1x4x16x16xf32, #tpu.memory_space<vmem>>, vector<1x4x1x16xf32>
    %48 = vector.shape_cast %47 : vector<1x4x1x16xf32> to vector<4x16xf32>
    %c0_65 = arith.constant 0 : index
    %c468 = arith.constant 468 : index
    %49 = vector.load %arg5[%c0_65, %c468] : memref<4x622xf32, #tpu.memory_space<vmem>>, vector<4x16xf32>
    tpu.vector_store %arg5[%c0_65, %c468], %48 {strides = array<i32>} : memref<4x622xf32, #tpu.memory_space<vmem>>, vector<4x16xf32>,
    %cst_66 = arith.constant 0.000000e+00 : f32
    %50 = vector.broadcast %cst_66 : f32 to vector<4x484xf32>
    %c0_67 = arith.constant 0 : index
    %c0_68 = arith.constant 0 : index
    %51 = vector.load %arg5[%c0_67, %c0_68] : memref<4x622xf32, #tpu.memory_space<vmem>>, vector<4x484xf32>
    %c0_69 = arith.constant 0 : index
    %c0_70 = arith.constant 0 : index
    %52 = vector.load %arg1[%c0_69, %c0_70] : memref<4x49xf32, #tpu.memory_space<vmem>>, vector<4x1xf32>
    %53 = vector.broadcast %52 : vector<4x1xf32> to vector<4x484xf32>
    %54 = arith.mulf %51, %53 : vector<4x484xf32>
    %55 = arith.addf %50, %54 : vector<4x484xf32>
    %c0_71 = arith.constant 0 : index
    %c1_72 = arith.constant 1 : index
    %56 = vector.load %arg5[%c0_71, %c1_72] : memref<4x622xf32, #tpu.memory_space<vmem>>, vector<4x484xf32>
    %c0_73 = arith.constant 0 : index
    %c1_74 = arith.constant 1 : index
    %57 = vector.load %arg1[%c0_73, %c1_74] : memref<4x49xf32, #tpu.memory_space<vmem>>, vector<4x1xf32>
    %58 = vector.broadcast %57 : vector<4x1xf32> to vector<4x484xf32>
    %59 = arith.mulf %56, %58 : vector<4x484xf32>
    %60 = arith.addf %55, %59 : vector<4x484xf32>
    %c0_75 = arith.constant 0 : index
    %c2_76 = arith.constant 2 : index
    %61 = vector.load %arg5[%c0_75, %c2_76] : memref<4x622xf32, #tpu.memory_space<vmem>>, vector<4x484xf32>
    %c0_77 = arith.constant 0 : index
    %c2_78 = arith.constant 2 : index
    %62 = vector.load %arg1[%c0_77, %c2_78] : memref<4x49xf32, #tpu.memory_space<vmem>>, vector<4x1xf32>
    %63 = vector.broadcast %62 : vector<4x1xf32> to vector<4x484xf32>
    %64 = arith.mulf %61, %63 : vector<4x484xf32>
    %65 = arith.addf %60, %64 : vector<4x484xf32>
    %c0_79 = arith.constant 0 : index
    %c3_80 = arith.constant 3 : index
    %66 = vector.load %arg5[%c0_79, %c3_80] : memref<4x622xf32, #tpu.memory_space<vmem>>, vector<4x484xf32>
    %c0_81 = arith.constant 0 : index
    %c3_82 = arith.constant 3 : index
    %67 = vector.load %arg1[%c0_81, %c3_82] : memref<4x49xf32, #tpu.memory_space<vmem>>, vector<4x1xf32>
    %68 = vector.broadcast %67 : vector<4x1xf32> to vector<4x484xf32>
    %69 = arith.mulf %66, %68 : vector<4x484xf32>
    %70 = arith.addf %65, %69 : vector<4x484xf32>
    %c0_83 = arith.constant 0 : index
    %c4_84 = arith.constant 4 : index
    %71 = vector.load %arg5[%c0_83, %c4_84] : memref<4x622xf32, #tpu.memory_space<vmem>>, vector<4x484xf32>
    %c0_85 = arith.constant 0 : index
    %c4_86 = arith.constant 4 : index
    %72 = vector.load %arg1[%c0_85, %c4_86] : memref<4x49xf32, #tpu.memory_space<vmem>>, vector<4x1xf32>
    %73 = vector.broadcast %72 : vector<4x1xf32> to vector<4x484xf32>
    %74 = arith.mulf %71, %73 : vector<4x484xf32>
    %75 = arith.addf %70, %74 : vector<4x484xf32>
    %c0_87 = arith.constant 0 : index
    %c5_88 = arith.constant 5 : index
    %76 = vector.load %arg5[%c0_87, %c5_88] : memref<4x622xf32, #tpu.memory_space<vmem>>, vector<4x484xf32>
    %c0_89 = arith.constant 0 : index
    %c5_90 = arith.constant 5 : index
    %77 = vector.load %arg1[%c0_89, %c5_90] : memref<4x49xf32, #tpu.memory_space<vmem>>, vector<4x1xf32>
    %78 = vector.broadcast %77 : vector<4x1xf32> to vector<4x484xf32>
    %79 = arith.mulf %76, %78 : vector<4x484xf32>
    %80 = arith.addf %75, %79 : vector<4x484xf32>
    %c0_91 = arith.constant 0 : index
    %c6_92 = arith.constant 6 : index
    %81 = vector.load %arg5[%c0_91, %c6_92] : memref<4x622xf32, #tpu.memory_space<vmem>>, vector<4x484xf32>
    %c0_93 = arith.constant 0 : index
    %c6_94 = arith.constant 6 : index
    %82 = vector.load %arg1[%c0_93, %c6_94] : memref<4x49xf32, #tpu.memory_space<vmem>>, vector<4x1xf32>
    %83 = vector.broadcast %82 : vector<4x1xf32> to vector<4x484xf32>
    %84 = arith.mulf %81, %83 : vector<4x484xf32>
    %85 = arith.addf %80, %84 : vector<4x484xf32>
    %c0_95 = arith.constant 0 : index
    %c22 = arith.constant 22 : index
    %86 = vector.load %arg5[%c0_95, %c22] : memref<4x622xf32, #tpu.memory_space<vmem>>, vector<4x484xf32>
    %c0_96 = arith.constant 0 : index
    %c7_97 = arith.constant 7 : index
    %87 = vector.load %arg1[%c0_96, %c7_97] : memref<4x49xf32, #tpu.memory_space<vmem>>, vector<4x1xf32>
    %88 = vector.broadcast %87 : vector<4x1xf32> to vector<4x484xf32>
    %89 = arith.mulf %86, %88 : vector<4x484xf32>
    %90 = arith.addf %85, %89 : vector<4x484xf32>
    %c0_98 = arith.constant 0 : index
    %c23 = arith.constant 23 : index
    %91 = vector.load %arg5[%c0_98, %c23] : memref<4x622xf32, #tpu.memory_space<vmem>>, vector<4x484xf32>
    %c0_99 = arith.constant 0 : index
    %c8_100 = arith.constant 8 : index
    %92 = vector.load %arg1[%c0_99, %c8_100] : memref<4x49xf32, #tpu.memory_space<vmem>>, vector<4x1xf32>
    %93 = vector.broadcast %92 : vector<4x1xf32> to vector<4x484xf32>
    %94 = arith.mulf %91, %93 : vector<4x484xf32>
    %95 = arith.addf %90, %94 : vector<4x484xf32>
    %c0_101 = arith.constant 0 : index
    %c24 = arith.constant 24 : index
    %96 = vector.load %arg5[%c0_101, %c24] : memref<4x622xf32, #tpu.memory_space<vmem>>, vector<4x484xf32>
    %c0_102 = arith.constant 0 : index
    %c9_103 = arith.constant 9 : index
    %97 = vector.load %arg1[%c0_102, %c9_103] : memref<4x49xf32, #tpu.memory_space<vmem>>, vector<4x1xf32>
    %98 = vector.broadcast %97 : vector<4x1xf32> to vector<4x484xf32>
    %99 = arith.mulf %96, %98 : vector<4x484xf32>
    %100 = arith.addf %95, %99 : vector<4x484xf32>
    %c0_104 = arith.constant 0 : index
    %c25 = arith.constant 25 : index
    %101 = vector.load %arg5[%c0_104, %c25] : memref<4x622xf32, #tpu.memory_space<vmem>>, vector<4x484xf32>
    %c0_105 = arith.constant 0 : index
    %c10_106 = arith.constant 10 : index
    %102 = vector.load %arg1[%c0_105, %c10_106] : memref<4x49xf32, #tpu.memory_space<vmem>>, vector<4x1xf32>
    %103 = vector.broadcast %102 : vector<4x1xf32> to vector<4x484xf32>
    %104 = arith.mulf %101, %103 : vector<4x484xf32>
    %105 = arith.addf %100, %104 : vector<4x484xf32>
    %c0_107 = arith.constant 0 : index
    %c26 = arith.constant 26 : index
    %106 = vector.load %arg5[%c0_107, %c26] : memref<4x622xf32, #tpu.memory_space<vmem>>, vector<4x484xf32>
    %c0_108 = arith.constant 0 : index
    %c11_109 = arith.constant 11 : index
    %107 = vector.load %arg1[%c0_108, %c11_109] : memref<4x49xf32, #tpu.memory_space<vmem>>, vector<4x1xf32>
    %108 = vector.broadcast %107 : vector<4x1xf32> to vector<4x484xf32>
    %109 = arith.mulf %106, %108 : vector<4x484xf32>
    %110 = arith.addf %105, %109 : vector<4x484xf32>
    %c0_110 = arith.constant 0 : index
    %c27 = arith.constant 27 : index
    %111 = vector.load %arg5[%c0_110, %c27] : memref<4x622xf32, #tpu.memory_space<vmem>>, vector<4x484xf32>
    %c0_111 = arith.constant 0 : index
    %c12_112 = arith.constant 12 : index
    %112 = vector.load %arg1[%c0_111, %c12_112] : memref<4x49xf32, #tpu.memory_space<vmem>>, vector<4x1xf32>
    %113 = vector.broadcast %112 : vector<4x1xf32> to vector<4x484xf32>
    %114 = arith.mulf %111, %113 : vector<4x484xf32>
    %115 = arith.addf %110, %114 : vector<4x484xf32>
    %c0_113 = arith.constant 0 : index
    %c28 = arith.constant 28 : index
    %116 = vector.load %arg5[%c0_113, %c28] : memref<4x622xf32, #tpu.memory_space<vmem>>, vector<4x484xf32>
    %c0_114 = arith.constant 0 : index
    %c13_115 = arith.constant 13 : index
    %117 = vector.load %arg1[%c0_114, %c13_115] : memref<4x49xf32, #tpu.memory_space<vmem>>, vector<4x1xf32>
    %118 = vector.broadcast %117 : vector<4x1xf32> to vector<4x484xf32>
    %119 = arith.mulf %116, %118 : vector<4x484xf32>
    %120 = arith.addf %115, %119 : vector<4x484xf32>
    %c0_116 = arith.constant 0 : index
    %c44 = arith.constant 44 : index
    %121 = vector.load %arg5[%c0_116, %c44] : memref<4x622xf32, #tpu.memory_space<vmem>>, vector<4x484xf32>
    %c0_117 = arith.constant 0 : index
    %c14_118 = arith.constant 14 : index
    %122 = vector.load %arg1[%c0_117, %c14_118] : memref<4x49xf32, #tpu.memory_space<vmem>>, vector<4x1xf32>
    %123 = vector.broadcast %122 : vector<4x1xf32> to vector<4x484xf32>
    %124 = arith.mulf %121, %123 : vector<4x484xf32>
    %125 = arith.addf %120, %124 : vector<4x484xf32>
    %c0_119 = arith.constant 0 : index
    %c45 = arith.constant 45 : index
    %126 = vector.load %arg5[%c0_119, %c45] : memref<4x622xf32, #tpu.memory_space<vmem>>, vector<4x484xf32>
    %c0_120 = arith.constant 0 : index
    %c15_121 = arith.constant 15 : index
    %127 = vector.load %arg1[%c0_120, %c15_121] : memref<4x49xf32, #tpu.memory_space<vmem>>, vector<4x1xf32>
    %128 = vector.broadcast %127 : vector<4x1xf32> to vector<4x484xf32>
    %129 = arith.mulf %126, %128 : vector<4x484xf32>
    %130 = arith.addf %125, %129 : vector<4x484xf32>
    %c0_122 = arith.constant 0 : index
    %c46 = arith.constant 46 : index
    %131 = vector.load %arg5[%c0_122, %c46] : memref<4x622xf32, #tpu.memory_space<vmem>>, vector<4x484xf32>
    %c0_123 = arith.constant 0 : index
    %c16 = arith.constant 16 : index
    %132 = vector.load %arg1[%c0_123, %c16] : memref<4x49xf32, #tpu.memory_space<vmem>>, vector<4x1xf32>
    %133 = vector.broadcast %132 : vector<4x1xf32> to vector<4x484xf32>
    %134 = arith.mulf %131, %133 : vector<4x484xf32>
    %135 = arith.addf %130, %134 : vector<4x484xf32>
    %c0_124 = arith.constant 0 : index
    %c47 = arith.constant 47 : index
    %136 = vector.load %arg5[%c0_124, %c47] : memref<4x622xf32, #tpu.memory_space<vmem>>, vector<4x484xf32>
    %c0_125 = arith.constant 0 : index
    %c17 = arith.constant 17 : index
    %137 = vector.load %arg1[%c0_125, %c17] : memref<4x49xf32, #tpu.memory_space<vmem>>, vector<4x1xf32>
    %138 = vector.broadcast %137 : vector<4x1xf32> to vector<4x484xf32>
    %139 = arith.mulf %136, %138 : vector<4x484xf32>
    %140 = arith.addf %135, %139 : vector<4x484xf32>
    %c0_126 = arith.constant 0 : index
    %c48 = arith.constant 48 : index
    %141 = vector.load %arg5[%c0_126, %c48] : memref<4x622xf32, #tpu.memory_space<vmem>>, vector<4x484xf32>
    %c0_127 = arith.constant 0 : index
    %c18 = arith.constant 18 : index
    %142 = vector.load %arg1[%c0_127, %c18] : memref<4x49xf32, #tpu.memory_space<vmem>>, vector<4x1xf32>
    %143 = vector.broadcast %142 : vector<4x1xf32> to vector<4x484xf32>
    %144 = arith.mulf %141, %143 : vector<4x484xf32>
    %145 = arith.addf %140, %144 : vector<4x484xf32>
    %c0_128 = arith.constant 0 : index
    %c49 = arith.constant 49 : index
    %146 = vector.load %arg5[%c0_128, %c49] : memref<4x622xf32, #tpu.memory_space<vmem>>, vector<4x484xf32>
    %c0_129 = arith.constant 0 : index
    %c19 = arith.constant 19 : index
    %147 = vector.load %arg1[%c0_129, %c19] : memref<4x49xf32, #tpu.memory_space<vmem>>, vector<4x1xf32>
    %148 = vector.broadcast %147 : vector<4x1xf32> to vector<4x484xf32>
    %149 = arith.mulf %146, %148 : vector<4x484xf32>
    %150 = arith.addf %145, %149 : vector<4x484xf32>
    %c0_130 = arith.constant 0 : index
    %c50 = arith.constant 50 : index
    %151 = vector.load %arg5[%c0_130, %c50] : memref<4x622xf32, #tpu.memory_space<vmem>>, vector<4x484xf32>
    %c0_131 = arith.constant 0 : index
    %c20 = arith.constant 20 : index
    %152 = vector.load %arg1[%c0_131, %c20] : memref<4x49xf32, #tpu.memory_space<vmem>>, vector<4x1xf32>
    %153 = vector.broadcast %152 : vector<4x1xf32> to vector<4x484xf32>
    %154 = arith.mulf %151, %153 : vector<4x484xf32>
    %155 = arith.addf %150, %154 : vector<4x484xf32>
    %c0_132 = arith.constant 0 : index
    %c66 = arith.constant 66 : index
    %156 = vector.load %arg5[%c0_132, %c66] : memref<4x622xf32, #tpu.memory_space<vmem>>, vector<4x484xf32>
    %c0_133 = arith.constant 0 : index
    %c21 = arith.constant 21 : index
    %157 = vector.load %arg1[%c0_133, %c21] : memref<4x49xf32, #tpu.memory_space<vmem>>, vector<4x1xf32>
    %158 = vector.broadcast %157 : vector<4x1xf32> to vector<4x484xf32>
    %159 = arith.mulf %156, %158 : vector<4x484xf32>
    %160 = arith.addf %155, %159 : vector<4x484xf32>
    %c0_134 = arith.constant 0 : index
    %c67 = arith.constant 67 : index
    %161 = vector.load %arg5[%c0_134, %c67] : memref<4x622xf32, #tpu.memory_space<vmem>>, vector<4x484xf32>
    %c0_135 = arith.constant 0 : index
    %c22_136 = arith.constant 22 : index
    %162 = vector.load %arg1[%c0_135, %c22_136] : memref<4x49xf32, #tpu.memory_space<vmem>>, vector<4x1xf32>
    %163 = vector.broadcast %162 : vector<4x1xf32> to vector<4x484xf32>
    %164 = arith.mulf %161, %163 : vector<4x484xf32>
    %165 = arith.addf %160, %164 : vector<4x484xf32>
    %c0_137 = arith.constant 0 : index
    %c68 = arith.constant 68 : index
    %166 = vector.load %arg5[%c0_137, %c68] : memref<4x622xf32, #tpu.memory_space<vmem>>, vector<4x484xf32>
    %c0_138 = arith.constant 0 : index
    %c23_139 = arith.constant 23 : index
    %167 = vector.load %arg1[%c0_138, %c23_139] : memref<4x49xf32, #tpu.memory_space<vmem>>, vector<4x1xf32>
    %168 = vector.broadcast %167 : vector<4x1xf32> to vector<4x484xf32>
    %169 = arith.mulf %166, %168 : vector<4x484xf32>
    %170 = arith.addf %165, %169 : vector<4x484xf32>
    %c0_140 = arith.constant 0 : index
    %c69 = arith.constant 69 : index
    %171 = vector.load %arg5[%c0_140, %c69] : memref<4x622xf32, #tpu.memory_space<vmem>>, vector<4x484xf32>
    %c0_141 = arith.constant 0 : index
    %c24_142 = arith.constant 24 : index
    %172 = vector.load %arg1[%c0_141, %c24_142] : memref<4x49xf32, #tpu.memory_space<vmem>>, vector<4x1xf32>
    %173 = vector.broadcast %172 : vector<4x1xf32> to vector<4x484xf32>
    %174 = arith.mulf %171, %173 : vector<4x484xf32>
    %175 = arith.addf %170, %174 : vector<4x484xf32>
    %c0_143 = arith.constant 0 : index
    %c70 = arith.constant 70 : index
    %176 = vector.load %arg5[%c0_143, %c70] : memref<4x622xf32, #tpu.memory_space<vmem>>, vector<4x484xf32>
    %c0_144 = arith.constant 0 : index
    %c25_145 = arith.constant 25 : index
    %177 = vector.load %arg1[%c0_144, %c25_145] : memref<4x49xf32, #tpu.memory_space<vmem>>, vector<4x1xf32>
    %178 = vector.broadcast %177 : vector<4x1xf32> to vector<4x484xf32>
    %179 = arith.mulf %176, %178 : vector<4x484xf32>
    %180 = arith.addf %175, %179 : vector<4x484xf32>
    %c0_146 = arith.constant 0 : index
    %c71 = arith.constant 71 : index
    %181 = vector.load %arg5[%c0_146, %c71] : memref<4x622xf32, #tpu.memory_space<vmem>>, vector<4x484xf32>
    %c0_147 = arith.constant 0 : index
    %c26_148 = arith.constant 26 : index
    %182 = vector.load %arg1[%c0_147, %c26_148] : memref<4x49xf32, #tpu.memory_space<vmem>>, vector<4x1xf32>
    %183 = vector.broadcast %182 : vector<4x1xf32> to vector<4x484xf32>
    %184 = arith.mulf %181, %183 : vector<4x484xf32>
    %185 = arith.addf %180, %184 : vector<4x484xf32>
    %c0_149 = arith.constant 0 : index
    %c72 = arith.constant 72 : index
    %186 = vector.load %arg5[%c0_149, %c72] : memref<4x622xf32, #tpu.memory_space<vmem>>, vector<4x484xf32>
    %c0_150 = arith.constant 0 : index
    %c27_151 = arith.constant 27 : index
    %187 = vector.load %arg1[%c0_150, %c27_151] : memref<4x49xf32, #tpu.memory_space<vmem>>, vector<4x1xf32>
    %188 = vector.broadcast %187 : vector<4x1xf32> to vector<4x484xf32>
    %189 = arith.mulf %186, %188 : vector<4x484xf32>
    %190 = arith.addf %185, %189 : vector<4x484xf32>
    %c0_152 = arith.constant 0 : index
    %c88 = arith.constant 88 : index
    %191 = vector.load %arg5[%c0_152, %c88] : memref<4x622xf32, #tpu.memory_space<vmem>>, vector<4x484xf32>
    %c0_153 = arith.constant 0 : index
    %c28_154 = arith.constant 28 : index
    %192 = vector.load %arg1[%c0_153, %c28_154] : memref<4x49xf32, #tpu.memory_space<vmem>>, vector<4x1xf32>
    %193 = vector.broadcast %192 : vector<4x1xf32> to vector<4x484xf32>
    %194 = arith.mulf %191, %193 : vector<4x484xf32>
    %195 = arith.addf %190, %194 : vector<4x484xf32>
    %c0_155 = arith.constant 0 : index
    %c89 = arith.constant 89 : index
    %196 = vector.load %arg5[%c0_155, %c89] : memref<4x622xf32, #tpu.memory_space<vmem>>, vector<4x484xf32>
    %c0_156 = arith.constant 0 : index
    %c29 = arith.constant 29 : index
    %197 = vector.load %arg1[%c0_156, %c29] : memref<4x49xf32, #tpu.memory_space<vmem>>, vector<4x1xf32>
    %198 = vector.broadcast %197 : vector<4x1xf32> to vector<4x484xf32>
    %199 = arith.mulf %196, %198 : vector<4x484xf32>
    %200 = arith.addf %195, %199 : vector<4x484xf32>
    %c0_157 = arith.constant 0 : index
    %c90 = arith.constant 90 : index
    %201 = vector.load %arg5[%c0_157, %c90] : memref<4x622xf32, #tpu.memory_space<vmem>>, vector<4x484xf32>
    %c0_158 = arith.constant 0 : index
    %c30 = arith.constant 30 : index
    %202 = vector.load %arg1[%c0_158, %c30] : memref<4x49xf32, #tpu.memory_space<vmem>>, vector<4x1xf32>
    %203 = vector.broadcast %202 : vector<4x1xf32> to vector<4x484xf32>
    %204 = arith.mulf %201, %203 : vector<4x484xf32>
    %205 = arith.addf %200, %204 : vector<4x484xf32>
    %c0_159 = arith.constant 0 : index
    %c91 = arith.constant 91 : index
    %206 = vector.load %arg5[%c0_159, %c91] : memref<4x622xf32, #tpu.memory_space<vmem>>, vector<4x484xf32>
    %c0_160 = arith.constant 0 : index
    %c31 = arith.constant 31 : index
    %207 = vector.load %arg1[%c0_160, %c31] : memref<4x49xf32, #tpu.memory_space<vmem>>, vector<4x1xf32>
    %208 = vector.broadcast %207 : vector<4x1xf32> to vector<4x484xf32>
    %209 = arith.mulf %206, %208 : vector<4x484xf32>
    %210 = arith.addf %205, %209 : vector<4x484xf32>
    %c0_161 = arith.constant 0 : index
    %c92 = arith.constant 92 : index
    %211 = vector.load %arg5[%c0_161, %c92] : memref<4x622xf32, #tpu.memory_space<vmem>>, vector<4x484xf32>
    %c0_162 = arith.constant 0 : index
    %c32 = arith.constant 32 : index
    %212 = vector.load %arg1[%c0_162, %c32] : memref<4x49xf32, #tpu.memory_space<vmem>>, vector<4x1xf32>
    %213 = vector.broadcast %212 : vector<4x1xf32> to vector<4x484xf32>
    %214 = arith.mulf %211, %213 : vector<4x484xf32>
    %215 = arith.addf %210, %214 : vector<4x484xf32>
    %c0_163 = arith.constant 0 : index
    %c93 = arith.constant 93 : index
    %216 = vector.load %arg5[%c0_163, %c93] : memref<4x622xf32, #tpu.memory_space<vmem>>, vector<4x484xf32>
    %c0_164 = arith.constant 0 : index
    %c33 = arith.constant 33 : index
    %217 = vector.load %arg1[%c0_164, %c33] : memref<4x49xf32, #tpu.memory_space<vmem>>, vector<4x1xf32>
    %218 = vector.broadcast %217 : vector<4x1xf32> to vector<4x484xf32>
    %219 = arith.mulf %216, %218 : vector<4x484xf32>
    %220 = arith.addf %215, %219 : vector<4x484xf32>
    %c0_165 = arith.constant 0 : index
    %c94 = arith.constant 94 : index
    %221 = vector.load %arg5[%c0_165, %c94] : memref<4x622xf32, #tpu.memory_space<vmem>>, vector<4x484xf32>
    %c0_166 = arith.constant 0 : index
    %c34 = arith.constant 34 : index
    %222 = vector.load %arg1[%c0_166, %c34] : memref<4x49xf32, #tpu.memory_space<vmem>>, vector<4x1xf32>
    %223 = vector.broadcast %222 : vector<4x1xf32> to vector<4x484xf32>
    %224 = arith.mulf %221, %223 : vector<4x484xf32>
    %225 = arith.addf %220, %224 : vector<4x484xf32>
    %c0_167 = arith.constant 0 : index
    %c110 = arith.constant 110 : index
    %226 = vector.load %arg5[%c0_167, %c110] : memref<4x622xf32, #tpu.memory_space<vmem>>, vector<4x484xf32>
    %c0_168 = arith.constant 0 : index
    %c35 = arith.constant 35 : index
    %227 = vector.load %arg1[%c0_168, %c35] : memref<4x49xf32, #tpu.memory_space<vmem>>, vector<4x1xf32>
    %228 = vector.broadcast %227 : vector<4x1xf32> to vector<4x484xf32>
    %229 = arith.mulf %226, %228 : vector<4x484xf32>
    %230 = arith.addf %225, %229 : vector<4x484xf32>
    %c0_169 = arith.constant 0 : index
    %c111 = arith.constant 111 : index
    %231 = vector.load %arg5[%c0_169, %c111] : memref<4x622xf32, #tpu.memory_space<vmem>>, vector<4x484xf32>
    %c0_170 = arith.constant 0 : index
    %c36 = arith.constant 36 : index
    %232 = vector.load %arg1[%c0_170, %c36] : memref<4x49xf32, #tpu.memory_space<vmem>>, vector<4x1xf32>
    %233 = vector.broadcast %232 : vector<4x1xf32> to vector<4x484xf32>
    %234 = arith.mulf %231, %233 : vector<4x484xf32>
    %235 = arith.addf %230, %234 : vector<4x484xf32>
    %c0_171 = arith.constant 0 : index
    %c112 = arith.constant 112 : index
    %236 = vector.load %arg5[%c0_171, %c112] : memref<4x622xf32, #tpu.memory_space<vmem>>, vector<4x484xf32>
    %c0_172 = arith.constant 0 : index
    %c37 = arith.constant 37 : index
    %237 = vector.load %arg1[%c0_172, %c37] : memref<4x49xf32, #tpu.memory_space<vmem>>, vector<4x1xf32>
    %238 = vector.broadcast %237 : vector<4x1xf32> to vector<4x484xf32>
    %239 = arith.mulf %236, %238 : vector<4x484xf32>
    %240 = arith.addf %235, %239 : vector<4x484xf32>
    %c0_173 = arith.constant 0 : index
    %c113 = arith.constant 113 : index
    %241 = vector.load %arg5[%c0_173, %c113] : memref<4x622xf32, #tpu.memory_space<vmem>>, vector<4x484xf32>
    %c0_174 = arith.constant 0 : index
    %c38 = arith.constant 38 : index
    %242 = vector.load %arg1[%c0_174, %c38] : memref<4x49xf32, #tpu.memory_space<vmem>>, vector<4x1xf32>
    %243 = vector.broadcast %242 : vector<4x1xf32> to vector<4x484xf32>
    %244 = arith.mulf %241, %243 : vector<4x484xf32>
    %245 = arith.addf %240, %244 : vector<4x484xf32>
    %c0_175 = arith.constant 0 : index
    %c114 = arith.constant 114 : index
    %246 = vector.load %arg5[%c0_175, %c114] : memref<4x622xf32, #tpu.memory_space<vmem>>, vector<4x484xf32>
    %c0_176 = arith.constant 0 : index
    %c39 = arith.constant 39 : index
    %247 = vector.load %arg1[%c0_176, %c39] : memref<4x49xf32, #tpu.memory_space<vmem>>, vector<4x1xf32>
    %248 = vector.broadcast %247 : vector<4x1xf32> to vector<4x484xf32>
    %249 = arith.mulf %246, %248 : vector<4x484xf32>
    %250 = arith.addf %245, %249 : vector<4x484xf32>
    %c0_177 = arith.constant 0 : index
    %c115 = arith.constant 115 : index
    %251 = vector.load %arg5[%c0_177, %c115] : memref<4x622xf32, #tpu.memory_space<vmem>>, vector<4x484xf32>
    %c0_178 = arith.constant 0 : index
    %c40 = arith.constant 40 : index
    %252 = vector.load %arg1[%c0_178, %c40] : memref<4x49xf32, #tpu.memory_space<vmem>>, vector<4x1xf32>
    %253 = vector.broadcast %252 : vector<4x1xf32> to vector<4x484xf32>
    %254 = arith.mulf %251, %253 : vector<4x484xf32>
    %255 = arith.addf %250, %254 : vector<4x484xf32>
    %c0_179 = arith.constant 0 : index
    %c116 = arith.constant 116 : index
    %256 = vector.load %arg5[%c0_179, %c116] : memref<4x622xf32, #tpu.memory_space<vmem>>, vector<4x484xf32>
    %c0_180 = arith.constant 0 : index
    %c41 = arith.constant 41 : index
    %257 = vector.load %arg1[%c0_180, %c41] : memref<4x49xf32, #tpu.memory_space<vmem>>, vector<4x1xf32>
    %258 = vector.broadcast %257 : vector<4x1xf32> to vector<4x484xf32>
    %259 = arith.mulf %256, %258 : vector<4x484xf32>
    %260 = arith.addf %255, %259 : vector<4x484xf32>
    %c0_181 = arith.constant 0 : index
    %c132 = arith.constant 132 : index
    %261 = vector.load %arg5[%c0_181, %c132] : memref<4x622xf32, #tpu.memory_space<vmem>>, vector<4x484xf32>
    %c0_182 = arith.constant 0 : index
    %c42 = arith.constant 42 : index
    %262 = vector.load %arg1[%c0_182, %c42] : memref<4x49xf32, #tpu.memory_space<vmem>>, vector<4x1xf32>
    %263 = vector.broadcast %262 : vector<4x1xf32> to vector<4x484xf32>
    %264 = arith.mulf %261, %263 : vector<4x484xf32>
    %265 = arith.addf %260, %264 : vector<4x484xf32>
    %c0_183 = arith.constant 0 : index
    %c133 = arith.constant 133 : index
    %266 = vector.load %arg5[%c0_183, %c133] : memref<4x622xf32, #tpu.memory_space<vmem>>, vector<4x484xf32>
    %c0_184 = arith.constant 0 : index
    %c43 = arith.constant 43 : index
    %267 = vector.load %arg1[%c0_184, %c43] : memref<4x49xf32, #tpu.memory_space<vmem>>, vector<4x1xf32>
    %268 = vector.broadcast %267 : vector<4x1xf32> to vector<4x484xf32>
    %269 = arith.mulf %266, %268 : vector<4x484xf32>
    %270 = arith.addf %265, %269 : vector<4x484xf32>
    %c0_185 = arith.constant 0 : index
    %c134 = arith.constant 134 : index
    %271 = vector.load %arg5[%c0_185, %c134] : memref<4x622xf32, #tpu.memory_space<vmem>>, vector<4x484xf32>
    %c0_186 = arith.constant 0 : index
    %c44_187 = arith.constant 44 : index
    %272 = vector.load %arg1[%c0_186, %c44_187] : memref<4x49xf32, #tpu.memory_space<vmem>>, vector<4x1xf32>
    %273 = vector.broadcast %272 : vector<4x1xf32> to vector<4x484xf32>
    %274 = arith.mulf %271, %273 : vector<4x484xf32>
    %275 = arith.addf %270, %274 : vector<4x484xf32>
    %c0_188 = arith.constant 0 : index
    %c135 = arith.constant 135 : index
    %276 = vector.load %arg5[%c0_188, %c135] : memref<4x622xf32, #tpu.memory_space<vmem>>, vector<4x484xf32>
    %c0_189 = arith.constant 0 : index
    %c45_190 = arith.constant 45 : index
    %277 = vector.load %arg1[%c0_189, %c45_190] : memref<4x49xf32, #tpu.memory_space<vmem>>, vector<4x1xf32>
    %278 = vector.broadcast %277 : vector<4x1xf32> to vector<4x484xf32>
    %279 = arith.mulf %276, %278 : vector<4x484xf32>
    %280 = arith.addf %275, %279 : vector<4x484xf32>
    %c0_191 = arith.constant 0 : index
    %c136 = arith.constant 136 : index
    %281 = vector.load %arg5[%c0_191, %c136] : memref<4x622xf32, #tpu.memory_space<vmem>>, vector<4x484xf32>
    %c0_192 = arith.constant 0 : index
    %c46_193 = arith.constant 46 : index
    %282 = vector.load %arg1[%c0_192, %c46_193] : memref<4x49xf32, #tpu.memory_space<vmem>>, vector<4x1xf32>
    %283 = vector.broadcast %282 : vector<4x1xf32> to vector<4x484xf32>
    %284 = arith.mulf %281, %283 : vector<4x484xf32>
    %285 = arith.addf %280, %284 : vector<4x484xf32>
    %c0_194 = arith.constant 0 : index
    %c137 = arith.constant 137 : index
    %286 = vector.load %arg5[%c0_194, %c137] : memref<4x622xf32, #tpu.memory_space<vmem>>, vector<4x484xf32>
    %c0_195 = arith.constant 0 : index
    %c47_196 = arith.constant 47 : index
    %287 = vector.load %arg1[%c0_195, %c47_196] : memref<4x49xf32, #tpu.memory_space<vmem>>, vector<4x1xf32>
    %288 = vector.broadcast %287 : vector<4x1xf32> to vector<4x484xf32>
    %289 = arith.mulf %286, %288 : vector<4x484xf32>
    %290 = arith.addf %285, %289 : vector<4x484xf32>
    %c0_197 = arith.constant 0 : index
    %c138_198 = arith.constant 138 : index
    %291 = vector.load %arg5[%c0_197, %c138_198] : memref<4x622xf32, #tpu.memory_space<vmem>>, vector<4x484xf32>
    %c0_199 = arith.constant 0 : index
    %c48_200 = arith.constant 48 : index
    %292 = vector.load %arg1[%c0_199, %c48_200] : memref<4x49xf32, #tpu.memory_space<vmem>>, vector<4x1xf32>
    %293 = vector.broadcast %292 : vector<4x1xf32> to vector<4x484xf32>
    %294 = arith.mulf %291, %293 : vector<4x484xf32>
    %295 = arith.addf %290, %294 : vector<4x484xf32>
    %296 = vector.extract_strided_slice %295 {offsets = [0, 69], sizes = [4, 16], strides = [1, 1]} : vector<4x484xf32> to vector<4x16xf32>
    %297 = vector.extract_strided_slice %295 {offsets = [0, 91], sizes = [4, 16], strides = [1, 1]} : vector<4x484xf32> to vector<4x16xf32>
    %298 = vector.extract_strided_slice %295 {offsets = [0, 113], sizes = [4, 16], strides = [1, 1]} : vector<4x484xf32> to vector<4x16xf32>
    %299 = vector.extract_strided_slice %295 {offsets = [0, 135], sizes = [4, 16], strides = [1, 1]} : vector<4x484xf32> to vector<4x16xf32>
    %300 = vector.extract_strided_slice %295 {offsets = [0, 157], sizes = [4, 16], strides = [1, 1]} : vector<4x484xf32> to vector<4x16xf32>
    %301 = vector.extract_strided_slice %295 {offsets = [0, 179], sizes = [4, 16], strides = [1, 1]} : vector<4x484xf32> to vector<4x16xf32>
    %302 = vector.extract_strided_slice %295 {offsets = [0, 201], sizes = [4, 16], strides = [1, 1]} : vector<4x484xf32> to vector<4x16xf32>
    %303 = vector.extract_strided_slice %295 {offsets = [0, 223], sizes = [4, 16], strides = [1, 1]} : vector<4x484xf32> to vector<4x16xf32>
    %304 = vector.extract_strided_slice %295 {offsets = [0, 245], sizes = [4, 16], strides = [1, 1]} : vector<4x484xf32> to vector<4x16xf32>
    %305 = vector.extract_strided_slice %295 {offsets = [0, 267], sizes = [4, 16], strides = [1, 1]} : vector<4x484xf32> to vector<4x16xf32>
    %306 = vector.extract_strided_slice %295 {offsets = [0, 289], sizes = [4, 16], strides = [1, 1]} : vector<4x484xf32> to vector<4x16xf32>
    %307 = vector.extract_strided_slice %295 {offsets = [0, 311], sizes = [4, 16], strides = [1, 1]} : vector<4x484xf32> to vector<4x16xf32>
    %308 = vector.extract_strided_slice %295 {offsets = [0, 333], sizes = [4, 16], strides = [1, 1]} : vector<4x484xf32> to vector<4x16xf32>
    %309 = vector.extract_strided_slice %295 {offsets = [0, 355], sizes = [4, 16], strides = [1, 1]} : vector<4x484xf32> to vector<4x16xf32>
    %310 = vector.extract_strided_slice %295 {offsets = [0, 377], sizes = [4, 16], strides = [1, 1]} : vector<4x484xf32> to vector<4x16xf32>
    %311 = vector.extract_strided_slice %295 {offsets = [0, 399], sizes = [4, 16], strides = [1, 1]} : vector<4x484xf32> to vector<4x16xf32>
    %312 = tpu.concatenate %296, %297, %298, %299, %300, %301, %302, %303, %304, %305, %306, %307, %308, %309, %310, %311 in 1 : vector<4x16xf32>, vector<4x16xf32>, vector<4x16xf32>, vector<4x16xf32>, vector<4x16xf32>, vector<4x16xf32>, vector<4x16xf32>, vector<4x16xf32>, vector<4x16xf32>, vector<4x16xf32>, vector<4x16xf32>, vector<4x16xf32>, vector<4x16xf32>, vector<4x16xf32>, vector<4x16xf32>, vector<4x16xf32> -> vector<4x256xf32>
    %c0_201 = arith.constant 0 : index
    %c0_202 = arith.constant 0 : index
    %313 = vector.load %arg2[%c0_201, %c0_202] : memref<4x1xf32, #tpu.memory_space<vmem>>, vector<4x1xf32>
    %314 = vector.broadcast %313 : vector<4x1xf32> to vector<4x256xf32>
    %315 = arith.addf %312, %314 : vector<4x256xf32>
    %c0_203 = arith.constant 0 : index
    %c0_204 = arith.constant 0 : index
    %c0_205 = arith.constant 0 : index
    %316 = vector.load %arg4[%c0_203, %c0_204, %c0_205] : memref<1x4x256xf32, #tpu.memory_space<vmem>>, vector<1x4x256xf32>
    %317 = vector.shape_cast %316 : vector<1x4x256xf32> to vector<4x256xf32>
    %318 = vector.shape_cast %315 : vector<4x256xf32> to vector<1x4x256xf32>
    tpu.vector_store %arg4[%c0_203, %c0_204, %c0_205], %318 {strides = array<i32>} : memref<1x4x256xf32, #tpu.memory_space<vmem>>, vector<1x4x256xf32>,
    return
  }
  func.func @transform_0(%arg0: i32) -> (i32, i32) {
    %c0_i32 = arith.constant 0 : i32
    %c0_i32_0 = arith.constant 0 : i32
    %c0_i32_1 = arith.constant 0 : i32
    return %c0_i32, %c0_i32_0 : i32, i32
  }
  func.func @transform_1(%arg0: i32) -> (i32, i32) {
    %c0_i32 = arith.constant 0 : i32
    %c0_i32_0 = arith.constant 0 : i32
    %c0_i32_1 = arith.constant 0 : i32
    return %c0_i32, %c0_i32_0 : i32, i32
  }
  func.func @transform_2(%arg0: i32) -> (i32, i32, i32, i32) {
    %c0_i32 = arith.constant 0 : i32
    %c0_i32_0 = arith.constant 0 : i32
    %c0_i32_1 = arith.constant 0 : i32
    %c0_i32_2 = arith.constant 0 : i32
    return %arg0, %c0_i32, %c0_i32_0, %c0_i32_1 : i32, i32, i32, i32
  }
  func.func @transform_3(%arg0: i32) -> (i32, i32, i32) {
    %c0_i32 = arith.constant 0 : i32
    %c0_i32_0 = arith.constant 0 : i32
    %c0_i32_1 = arith.constant 0 : i32
    return %arg0, %c0_i32, %c0_i32_0 : i32, i32, i32
  }
}

</mosaic_0001>

<bundles_post_ra>
// kernel: squeeze.1
= control target key start
LH: loop header
LB: loop body
LE: loop exit
PB: predicated region body
PF: predicated region fallthrough
CT: control target
= control target key end

     0   :  { %s59_s8 = smov 42   ;;  %s60_s11 = smov 28   ;;  %vm3_vm0 = vcmask 56320   ;;  %vm9_vm1 = vcmask 400720   ;;  %vm15_vm2 = vcmask 343320   ;;  %vm21_vm3 = vcmask 285920   ;;  %s99_s0 = inlined_call_operand.vmem [shape: f32[4,1,7,7], index: 0, kind: input, shape index: {}]   ;;  %s100_s1 = inlined_call_operand.vmem [shape: f32[4,49], index: 1, kind: output, shape index: {}]  }
   0x1   :  { %v47_v0 = vld [vmem:[%s99_s0 + $0x6] ss:$8 sm:$0xf]   ;;  %v49_v1 = vld [vmem:[%s99_s0 + $0x4] ss:$8 sm:$0xf]  }
   0x2   :  { %7 = vrot.lane.b32.xlu0 %v47_v0, %s59_s8  ;;  %19 = vrot.lane.b32.xlu1 %v49_v1, %s60_s11  ;;  %v48_v2 = vld [vmem:[%s99_s0 + $0x5] ss:$8 sm:$0xf]   ;;  %v50_v3 = vld [vmem:[%s99_s0 + $0x3] ss:$8 sm:$0xf]  }
   0x3   :  { %v2_v4 = vld [vmem:[%s99_s0] ss:$8 sm:$0xf]   ;;  %s61_s18 = smov 35   ;;  %s62_s19 = smov 21   ;;  %vm27_vm4 = vcmask 228520  }
   0x4   :  { %4 = vst.msk [vmem:[#allocation0] sm:$0xf] %vm3_vm0, %v2_v4   ;;  %v51_v5 = vld [vmem:[%s99_s0 + $0x2] ss:$8 sm:$0xf]   ;;  %s64_s24 = smov 7  }
   0x5   :  { %v52_v6 = vld [vmem:[%s99_s0 + $0x1] ss:$8 sm:$0xf]   ;;  %s63_s0 = smov 14   ;;  %vm33_vm5 = vcmask 171120   ;;  %vm39_vm6 = vcmask 113720  }
   0x6   :  { %13 = vrot.lane.b32.xlu0 %v48_v2, %s61_s18  ;;  %25 = vrot.lane.b32.xlu1 %v50_v3, %s62_s19 }
   0xa   :  { %31 = vrot.lane.b32.xlu0 %v51_v5, %s63_s0  ;;  %37 = vrot.lane.b32.xlu1 %v52_v6, %s64_s24 }
  0x74   :  { %v8_v7 = vpop.permute.xlu0 %7   ;;  %v20_v8 = vpop.permute.xlu1 %19  }
  0x75   :  { %10 = vst.msk [vmem:[#allocation0] sm:$0xf] %vm9_vm1, %v8_v7  }
  0x78   :  { %v14_v9 = vpop.permute.xlu0 %13   ;;  %v26_v10 = vpop.permute.xlu1 %25  }
  0x79   :  { %16 = vst.msk [vmem:[#allocation0] sm:$0xf] %vm15_vm2, %v14_v9  }
  0x7a   :  { %22 = vst.msk [vmem:[#allocation0] sm:$0xf] %vm21_vm3, %v20_v8  }
  0x7b   :  { %28 = vst.msk [vmem:[#allocation0] sm:$0xf] %vm27_vm4, %v26_v10  }
  0x7c   :  { %v32_v11 = vpop.permute.xlu0 %31   ;;  %v38_v12 = vpop.permute.xlu1 %37  }
  0x7d   :  { %34 = vst.msk [vmem:[#allocation0] sm:$0xf] %vm33_vm5, %v32_v11  }
  0x7e   :  { %40 = vst.msk [vmem:[#allocation0] sm:$0xf] %vm39_vm6, %v38_v12  }
  0x85   :  { %v44_v13 = vld [vmem:[#allocation0] sm:$0xf] }
  0x86   :  { %46 = vst [vmem:[%s100_s1] sm:$0xf] %v44_v13 }

// kernel: reparam_large_kernel_conv.1
= control target key start
LH: loop header
LB: loop body
LE: loop exit
PB: predicated region body
PF: predicated region fallthrough
CT: control target
= control target key end

     0   :  { %s2596_s12 = smov 0   ;;  %s3681_s0 = inlined_call_operand.vmem [shape: f32[4,49], index: 0, kind: input, shape index: {}]   ;;  %s3682_s1 = inlined_call_operand.vmem [shape: f32[4,1], index: 1, kind: input, shape index: {}]   ;;  %s3683_s2 = inlined_call_operand.vmem [shape: f32[2,4,16,16], index: 2, kind: input, shape index: {}]   ;;  %s3684_s3 = inlined_call_operand.vmem [shape: f32[2,4,256], index: 3, kind: output, shape index: {}]  }
   0x1 LB: > { %s2273_s13 = sadd.s32 4294967295, %s2463_s12   ;;  %p2277_p0 = scmp.ge.s32.totalorder %s2463_s12, 1  ;;  %s2463_s12 = sphi %s2596_s12, %s13_s12  }
   0x2   : > { %p137_p1 = scmp.lt.s32.totalorder %s2463_s12, 3 }
   0x4   : > { %p138_p2 = pnand %p2277_p0, %p137_p1 }
   0x6   : > { %141 = sbr.rel (%p138_p2) target bundleno = 2209 (0x8a1), region = 32 }
   0xd   : > { %p161_p3 = scmp.lt.s32.totalorder %s2273_s13, 1  ;;  %v2465_v0 = vmov 3   ;;  %v2466_v1 = vmov 1   ;;  %vm184_vm0 = vcmask 1041409   ;;  %vm186_vm1 = vcmask 1045509   ;;  %s2468_s18 = smov 54  }
   0xe   : > { %2407 = vset.pattern.permute.xlu0 %v2465_v0  ;;  %2405 = vset.pattern.permute.xlu1 %v2466_v1  ;;  %vm189_vm2 = vcmask 1042434   ;;  %vm191_vm3 = vcmask 1046534   ;;  %v2467_v5 = vmov 0.0   ;;  %vm194_vm4 = vcmask 1043459   ;;  %s2469_s19 = smov 10   ;;  %s2470_s20 = smov 76  }
   0xf   : > { %s3774_s13 = smov (!%p161_p3, %s2273_s13), 1  ;;  %171 = vst [vmem:[#allocation2] sm:$0xff] %v2467_v5  ;;  %172 = vst [vmem:[#allocation2 + $0x8] sm:$0xff] %v2467_v5  ;;  %vm196_vm5 = vcmask 1047559   ;;  %s2471_s21 = smov 32   ;;  %vm173_vm6 = vcmask 896000  }
  0x10   : > { %s2284_s14 = sshll.u32 %s3774_s13, 6  ;;  %s2472_s22 = smov 120   ;;  %174 = vst.msk [vmem:[#allocation2 + $0x10] sm:$0xf] %vm173_vm6, %v2467_v5  ;;  %v2484_v5 = vmov 2   ;;  %vm201_vm7 = vcmask 207952  }
  0x11   : > { %s2610_s17 = scalar_lea.vmem %s3683_s2, %s2284_s14  ;;  %s2473_s23 = smov 98   ;;  %vm223_vm8 = vcmask 388352   ;;  %vm245_vm9 = vcmask 568752   ;;  %vm267_vm10 = vcmask 749152   ;;  %vm314_vm11 = vcmask 1044416  }
  0x12   : > { %v225_v2 = vld [vmem:[%s2610_s17 + $0x2] sm:$0x1]  ;;  %v226_v3 = vld [vmem:[%s2610_s17 + $0x12] sm:$0x1]  ;;  %v175_v9 = vld [vmem:[%s2610_s17] sm:$0x1] }
  0x13   : > { %v227_v4 = vld [vmem:[%s2610_s17 + $0x22] sm:$0x1]  ;;  %v228_v6 = vld [vmem:[%s2610_s17 + $0x32] sm:$0x1]  ;;  %v233_v7 = vrot.slane %v226_v3, 7  ;;  %s2474_s24 = smov 36  }
  0x14   : > { %v236_v8 = vrot.slane %v227_v4, 6  ;;  %v239_v10 = vrot.slane %v228_v6, 5  ;;  %v176_v11 = vld [vmem:[%s2610_s17 + $0x10] sm:$0x1]  ;;  %v177_v12 = vld [vmem:[%s2610_s17 + $0x20] sm:$0x1] }
  0x15   : > { %v234_v13 = vsel %vm184_vm0, %v233_v7, %v225_v2  ;;  %v178_v14 = vld [vmem:[%s2610_s17 + $0x30] sm:$0x1]  ;;  %v183_v15 = vrot.slane %v176_v11, 7  ;;  %v188_v16 = vrot.slane %v177_v12, 6  ;;  %v247_v17 = vld [vmem:[%s2610_s17 + $0x3] sm:$0x1] }
  0x16   : > { %v235_v18 = vsel %vm186_vm1, %v233_v7, %v234_v13  ;;  %v193_v19 = vrot.slane %v178_v14, 5  ;;  %v248_v20 = vld [vmem:[%s2610_s17 + $0x13] sm:$0x1]  ;;  %v249_v21 = vld [vmem:[%s2610_s17 + $0x23] sm:$0x1]  ;;  %s2475_s25 = smov 14  }
  0x17   : > { %v237_v22 = vsel %vm189_vm2, %v236_v8, %v235_v18  ;;  %v185_v23 = vsel %vm184_vm0, %v183_v15, %v175_v9  ;;  %v250_v24 = vld [vmem:[%s2610_s17 + $0x33] sm:$0x1]  ;;  %v255_v25 = vrot.slane %v248_v20, 7  ;;  %v258_v26 = vrot.slane %v249_v21, 6  ;;  %v203_v27 = vld [vmem:[%s2610_s17 + $0x1] sm:$0x1] }
  0x18   : > { %v238_v28 = vsel %vm191_vm3, %v236_v8, %v237_v22  ;;  %v187_v29 = vsel %vm186_vm1, %v183_v15, %v185_v23  ;;  %v261_v30 = vrot.slane %v250_v24, 5  ;;  %v204_v31 = vld [vmem:[%s2610_s17 + $0x11] sm:$0x1]  ;;  %v205_v32 = vld [vmem:[%s2610_s17 + $0x21] sm:$0x1]  ;;  %s2476_s26 = smov 80  }
  0x19   : > { %v240_v33 = vsel %vm194_vm4, %v239_v10, %v238_v28  ;;  %v190_v34 = vsel %vm189_vm2, %v188_v16, %v187_v29  ;;  %v256_v35 = vsel %vm184_vm0, %v255_v25, %v247_v17  ;;  %v206_v36 = vld [vmem:[%s2610_s17 + $0x31] sm:$0x1]  ;;  %v211_v37 = vrot.slane %v204_v31, 7  ;;  %v292_v42 = vld [vmem:[%s2610_s17 + $0x15] sm:$0x1]  ;;  %s2477_s27 = smov 58  }
  0x1a   : > { %v241_v38 = vsel %vm196_vm5, %v239_v10, %v240_v33  ;;  %v192_v39 = vsel %vm191_vm3, %v188_v16, %v190_v34  ;;  %v257_v40 = vsel %vm186_vm1, %v255_v25, %v256_v35  ;;  %v214_v41 = vrot.slane %v205_v32, 6  ;;  %v293_v43 = vld [vmem:[%s2610_s17 + $0x25] sm:$0x1]  ;;  %v294_v49 = vld [vmem:[%s2610_s17 + $0x35] sm:$0x1]  ;;  %s2478_s28 = smov 124  }
  0x1b   : > { %242 = vrot.lane.b32.xlu1 %v241_v38, %s2468_s18  ;;  %v195_v44 = vsel %vm194_vm4, %v193_v19, %v192_v39  ;;  %v259_v45 = vsel %vm189_vm2, %v258_v26, %v257_v40  ;;  %v212_v46 = vsel %vm184_vm0, %v211_v37, %v203_v27  ;;  %v217_v47 = vrot.slane %v206_v36, 5  ;;  %v291_v48 = vld [vmem:[%s2610_s17 + $0x5] sm:$0x1]  ;;  %v270_v54 = vld [vmem:[%s2610_s17 + $0x14] sm:$0x1]  ;;  %s2479_s29 = smov 102  }
  0x1c   : > { %v197_v50 = vsel %vm196_vm5, %v193_v19, %v195_v44  ;;  %v260_v51 = vsel %vm191_vm3, %v258_v26, %v259_v45  ;;  %v213_v52 = vsel %vm186_vm1, %v211_v37, %v212_v46  ;;  %v299_v53 = vrot.slane %v292_v42, 7  ;;  %v271_v55 = vld [vmem:[%s2610_s17 + $0x24] sm:$0x1]  ;;  %v272_v61 = vld [vmem:[%s2610_s17 + $0x34] sm:$0x1]  ;;  %s2480_s30 = smov 40  }
  0x1d   : > { %198 = vrot.lane.b32.xlu0 %v197_v50, %s2469_s19  ;;  %v262_v56 = vsel %vm194_vm4, %v261_v30, %v260_v51  ;;  %v215_v57 = vsel %vm189_vm2, %v214_v41, %v213_v52  ;;  %v302_v58 = vrot.slane %v293_v43, 6  ;;  %v305_v59 = vrot.slane %v294_v49, 5  ;;  %v269_v60 = vld [vmem:[%s2610_s17 + $0x4] sm:$0x1]  ;;  %v341_v2 = vld [vmem:[%s2610_s17 + $0x17] sm:$0x1] }
  0x1e   : > { %v263_v62 = vsel %vm196_vm5, %v261_v30, %v262_v56  ;;  %v216_v63 = vsel %vm191_vm3, %v214_v41, %v215_v57  ;;  %v300_v0 = vsel %vm184_vm0, %v299_v53, %v291_v48  ;;  %v277_v1 = vrot.slane %v270_v54, 7  ;;  %v342_v3 = vld [vmem:[%s2610_s17 + $0x27] sm:$0x1]  ;;  %v343_v10 = vld [vmem:[%s2610_s17 + $0x37] sm:$0x1]  ;;  %s2481_s4 = smov 18  }
  0x1f   : > { %264 = vrot.lane.b32.xlu1 %v263_v62, %s2470_s20  ;;  %v218_v4 = vsel %vm194_vm4, %v217_v47, %v216_v63  ;;  %v301_v6 = vsel %vm186_vm1, %v299_v53, %v300_v0  ;;  %v280_v7 = vrot.slane %v271_v55, 6  ;;  %v283_v8 = vrot.slane %v272_v61, 5  ;;  %v340_v9 = vld [vmem:[%s2610_s17 + $0x7] sm:$0x1]  ;;  %v319_v15 = vld [vmem:[%s2610_s17 + $0x16] sm:$0x1] }
  0x20   : > { %v219_v11 = vsel %vm196_vm5, %v217_v47, %v218_v4  ;;  %v303_v12 = vsel %vm189_vm2, %v302_v58, %v301_v6  ;;  %v278_v13 = vsel %vm184_vm0, %v277_v1, %v269_v60  ;;  %v348_v14 = vrot.slane %v341_v2, 7  ;;  %v320_v16 = vld [vmem:[%s2610_s17 + $0x26] sm:$0x1]  ;;  %v321_v22 = vld [vmem:[%s2610_s17 + $0x36] sm:$0x1]  ;;  %s2482_s5 = smov 84  }
  0x21   : > { %220 = vrot.lane.b32.xlu0 %v219_v11, %s2471_s21  ;;  %v304_v17 = vsel %vm191_vm3, %v302_v58, %v303_v12  ;;  %v279_v18 = vsel %vm186_vm1, %v277_v1, %v278_v13  ;;  %v351_v19 = vrot.slane %v342_v3, 6  ;;  %v354_v20 = vrot.slane %v343_v10, 5  ;;  %v318_v21 = vld [vmem:[%s2610_s17 + $0x6] sm:$0x1]  ;;  %v385_v27 = vld [vmem:[%s2610_s17 + $0x19] sm:$0x1] }
  0x22   : > { %v306_v23 = vsel %vm194_vm4, %v305_v59, %v304_v17  ;;  %v281_v24 = vsel %vm189_vm2, %v280_v7, %v279_v18  ;;  %v349_v25 = vsel %vm184_vm0, %v348_v14, %v340_v9  ;;  %v326_v26 = vrot.slane %v319_v15, 7  ;;  %v386_v32 = vld [vmem:[%s2610_s17 + $0x29] sm:$0x1]  ;;  %v387_v33 = vld [vmem:[%s2610_s17 + $0x39] sm:$0x1]  ;;  %s2483_s8 = smov 62  }
  0x23   : > { %v307_v28 = vsel %vm196_vm5, %v305_v59, %v306_v23  ;;  %v282_v29 = vsel %vm191_vm3, %v280_v7, %v281_v24  ;;  %v350_v30 = vsel %vm186_vm1, %v348_v14, %v349_v25  ;;  %v329_v31 = vrot.slane %v320_v16, 6  ;;  %v384_v38 = vld [vmem:[%s2610_s17 + $0x9] sm:$0x1]  ;;  %v363_v39 = vld [vmem:[%s2610_s17 + $0x18] sm:$0x1]  ;;  %s2500_s9 = smov 127  }
  0x24   : > { %308 = vrot.lane.b32.xlu1 %v307_v28, %s2472_s22  ;;  %v284_v34 = vsel %vm194_vm4, %v283_v8, %v282_v29  ;;  %v352_v35 = vsel %vm189_vm2, %v351_v19, %v350_v30  ;;  %v327_v36 = vsel %vm184_vm0, %v326_v26, %v318_v21  ;;  %v332_v37 = vrot.slane %v321_v22, 5  ;;  %v364_v44 = vld [vmem:[%s2610_s17 + $0x28] sm:$0x1]  ;;  %v365_v45 = vld [vmem:[%s2610_s17 + $0x38] sm:$0x1]  ;;  %s2501_s10 = smov 125  }
  0x25   : > { %v285_v40 = vsel %vm196_vm5, %v283_v8, %v284_v34  ;;  %v353_v41 = vsel %vm191_vm3, %v351_v19, %v352_v35  ;;  %v328_v42 = vsel %vm186_vm1, %v326_v26, %v327_v36  ;;  %v392_v43 = vrot.slane %v385_v27, 7  ;;  %v362_v50 = vld [vmem:[%s2610_s17 + $0x8] sm:$0x1]  ;;  %v429_v51 = vld [vmem:[%s2610_s17 + $0x1b] sm:$0x1]  ;;  %s2502_s11 = smov 123  }
  0x26   : > { %286 = vrot.lane.b32.xlu0 %v285_v40, %s2473_s23  ;;  %v355_v46 = vsel %vm194_vm4, %v354_v20, %v353_v41  ;;  %v330_v47 = vsel %vm189_vm2, %v329_v31, %v328_v42  ;;  %v395_v48 = vrot.slane %v386_v32, 6  ;;  %v398_v49 = vrot.slane %v387_v33, 5  ;;  %v430_v56 = vld [vmem:[%s2610_s17 + $0x2b] sm:$0x1]  ;;  %v431_v57 = vld [vmem:[%s2610_s17 + $0x3b] sm:$0x1] }
  0x27   : > { %v356_v52 = vsel %vm196_vm5, %v354_v20, %v355_v46  ;;  %v331_v53 = vsel %vm191_vm3, %v329_v31, %v330_v47  ;;  %v393_v54 = vsel %vm184_vm0, %v392_v43, %v384_v38  ;;  %v370_v55 = vrot.slane %v363_v39, 7  ;;  %v428_v62 = vld [vmem:[%s2610_s17 + $0xb] sm:$0x1]  ;;  %v407_v63 = vld [vmem:[%s2610_s17 + $0x1a] sm:$0x1]  ;;  %s2503_s14 = smov 122  }
  0x28   : > { %357 = vrot.lane.b32.xlu1 %v356_v52, %s2474_s24  ;;  %v333_v58 = vsel %vm194_vm4, %v332_v37, %v331_v53  ;;  %v394_v59 = vsel %vm186_vm1, %v392_v43, %v393_v54  ;;  %v373_v60 = vrot.slane %v364_v44, 6  ;;  %v376_v61 = vrot.slane %v365_v45, 5  ;;  %v408_v4 = vld [vmem:[%s2610_s17 + $0x2a] sm:$0x1]  ;;  %v409_v11 = vld [vmem:[%s2610_s17 + $0x3a] sm:$0x1] }
  0x29   : > { %v334_v0 = vsel %vm196_vm5, %v332_v37, %v333_v58  ;;  %v396_v1 = vsel %vm189_vm2, %v395_v48, %v394_v59  ;;  %v371_v2 = vsel %vm184_vm0, %v370_v55, %v362_v50  ;;  %v436_v3 = vrot.slane %v429_v51, 7  ;;  %v406_v10 = vld [vmem:[%s2610_s17 + $0xa] sm:$0x1]  ;;  %v478_v16 = vld [vmem:[%s2610_s17 + $0x1d] sm:$0x1]  ;;  %s2504_s15 = smov 106  }
  0x2a   : > { %335 = vrot.lane.b32.xlu0 %v334_v0, %s2475_s25  ;;  %v397_v6 = vsel %vm191_vm3, %v395_v48, %v396_v1  ;;  %v372_v7 = vsel %vm186_vm1, %v370_v55, %v371_v2  ;;  %v439_v8 = vrot.slane %v430_v56, 6  ;;  %v442_v9 = vrot.slane %v431_v57, 5  ;;  %v479_v21 = vld [vmem:[%s2610_s17 + $0x2d] sm:$0x1]  ;;  %v480_v22 = vld [vmem:[%s2610_s17 + $0x3d] sm:$0x1] }
  0x2b   : > { %v399_v12 = vsel %vm194_vm4, %v398_v49, %v397_v6  ;;  %v374_v13 = vsel %vm189_vm2, %v373_v60, %v372_v7  ;;  %v437_v14 = vsel %vm184_vm0, %v436_v3, %v428_v62  ;;  %v414_v15 = vrot.slane %v407_v63, 7  ;;  %v477_v27 = vld [vmem:[%s2610_s17 + $0xd] sm:$0x1]  ;;  %v456_v28 = vld [vmem:[%s2610_s17 + $0x1c] sm:$0x1]  ;;  %s2505_s16 = smov 105  }
  0x2c   : > { %v400_v17 = vsel %vm196_vm5, %v398_v49, %v399_v12  ;;  %v375_v18 = vsel %vm191_vm3, %v373_v60, %v374_v13  ;;  %v438_v19 = vsel %vm186_vm1, %v436_v3, %v437_v14  ;;  %v417_v20 = vrot.slane %v408_v4, 6  ;;  %v457_v33 = vld [vmem:[%s2610_s17 + $0x2c] sm:$0x1]  ;;  %v458_v34 = vld [vmem:[%s2610_s17 + $0x3c] sm:$0x1]  ;;  %s2507_s18 = smov 103  }
  0x2d   : > { %401 = vrot.lane.b32.xlu1 %v400_v17, %s2476_s26  ;;  %v377_v23 = vsel %vm194_vm4, %v376_v61, %v375_v18  ;;  %v440_v24 = vsel %vm189_vm2, %v439_v8, %v438_v19  ;;  %v415_v25 = vsel %vm184_vm0, %v414_v15, %v406_v10  ;;  %v420_v26 = vrot.slane %v409_v11, 5  ;;  %v455_v39 = vld [vmem:[%s2610_s17 + $0xc] sm:$0x1]  ;;  %v522_v40 = vld [vmem:[%s2610_s17 + $0x1f] sm:$0x1]  ;;  %s2508_s19 = smov 101  }
  0x2e   : > { %v378_v29 = vsel %vm196_vm5, %v376_v61, %v377_v23  ;;  %v441_v30 = vsel %vm191_vm3, %v439_v8, %v440_v24  ;;  %v416_v31 = vsel %vm186_vm1, %v414_v15, %v415_v25  ;;  %v485_v32 = vrot.slane %v478_v16, 7  ;;  %v523_v45 = vld [vmem:[%s2610_s17 + $0x2f] sm:$0x1]  ;;  %v524_v46 = vld [vmem:[%s2610_s17 + $0x3f] sm:$0x1]  ;;  %s2509_s20 = smov 100  }
  0x2f   : > { %379 = vrot.lane.b32.xlu0 %v378_v29, %s2477_s27  ;;  %v443_v35 = vsel %vm194_vm4, %v442_v9, %v441_v30  ;;  %v418_v36 = vsel %vm189_vm2, %v417_v20, %v416_v31  ;;  %v488_v37 = vrot.slane %v479_v21, 6  ;;  %v491_v38 = vrot.slane %v480_v22, 5  ;;  %v521_v51 = vld [vmem:[%s2610_s17 + $0xf] sm:$0x1]  ;;  %v500_v52 = vld [vmem:[%s2610_s17 + $0x1e] sm:$0x1] }
  0x30   : > { %v444_v41 = vsel %vm196_vm5, %v442_v9, %v443_v35  ;;  %v419_v42 = vsel %vm191_vm3, %v417_v20, %v418_v36  ;;  %v486_v43 = vsel %vm184_vm0, %v485_v32, %v477_v27  ;;  %v463_v44 = vrot.slane %v456_v28, 7  ;;  %v501_v57 = vld [vmem:[%s2610_s17 + $0x2e] sm:$0x1]  ;;  %v502_v63 = vld [vmem:[%s2610_s17 + $0x3e] sm:$0x1]  ;;  %s2510_s21 = smov 83  }
  0x31   : > { %445 = vrot.lane.b32.xlu1 %v444_v41, %s2478_s28  ;;  %v421_v47 = vsel %vm194_vm4, %v420_v26, %v419_v42  ;;  %v487_v48 = vsel %vm186_vm1, %v485_v32, %v486_v43  ;;  %v466_v49 = vrot.slane %v457_v33, 6  ;;  %v469_v50 = vrot.slane %v458_v34, 5  ;;  %v499_v62 = vld [vmem:[%s2610_s17 + $0xe] sm:$0x1]  ;;  %v2788_v22 = vld [vmem:[%s3681_s0] sm:$0xf] }
  0x32   : > { %v422_v53 = vsel %vm196_vm5, %v420_v26, %v421_v47  ;;  %v489_v54 = vsel %vm189_vm2, %v488_v37, %v487_v48  ;;  %v464_v55 = vsel %vm184_vm0, %v463_v44, %v455_v39  ;;  %v529_v56 = vrot.slane %v522_v40, 7  ;;  %s2506_s17 = smov 104   ;;  %s2511_s23 = smov 126  }
  0x33   : > { %423 = vrot.lane.b32.xlu0 %v422_v53, %s2479_s29  ;;  %v490_v58 = vsel %vm191_vm3, %v488_v37, %v489_v54  ;;  %v465_v59 = vsel %vm186_vm1, %v463_v44, %v464_v55  ;;  %v532_v60 = vrot.slane %v523_v45, 6  ;;  %v535_v61 = vrot.slane %v524_v46, 5  ;;  %s2512_s6 = smov 82   ;;  %s2522_s7 = smov 61  }
  0x34   : > { %v492_v0 = vsel %vm194_vm4, %v491_v38, %v490_v58  ;;  %v467_v1 = vsel %vm189_vm2, %v466_v49, %v465_v59  ;;  %v530_v2 = vsel %vm184_vm0, %v529_v56, %v521_v51  ;;  %v507_v3 = vrot.slane %v500_v52, 7 }
  0x35   : > { %v493_v4 = vsel %vm196_vm5, %v491_v38, %v492_v0  ;;  %v468_v6 = vsel %vm191_vm3, %v466_v49, %v467_v1  ;;  %v531_v7 = vsel %vm186_vm1, %v529_v56, %v530_v2  ;;  %v510_v8 = vrot.slane %v501_v57, 6 }
  0x36   : > { %494 = vrot.lane.b32.xlu1 %v493_v4, %s2480_s30  ;;  %v470_v9 = vsel %vm194_vm4, %v469_v50, %v468_v6  ;;  %v533_v10 = vsel %vm189_vm2, %v532_v60, %v531_v7  ;;  %v508_v11 = vsel %vm184_vm0, %v507_v3, %v499_v62  ;;  %v513_v12 = vrot.slane %v502_v63, 5 }
  0x37   : > { %v471_v13 = vsel %vm196_vm5, %v469_v50, %v470_v9  ;;  %v534_v14 = vsel %vm191_vm3, %v532_v60, %v533_v10  ;;  %v509_v15 = vsel %vm186_vm1, %v507_v3, %v508_v11  ;;  %v2485_v23 = vmov 4  }
  0x38   : > { %472 = vrot.lane.b32.xlu0 %v471_v13, %s2481_s4  ;;  %v536_v16 = vsel %vm194_vm4, %v535_v61, %v534_v14  ;;  %v511_v17 = vsel %vm189_vm2, %v510_v8, %v509_v15  ;;  %v2486_v24 = vmov 15   ;;  %v2487_v25 = vmov 5  }
  0x39   : > { %v537_v18 = vsel %vm196_vm5, %v535_v61, %v536_v16  ;;  %v512_v19 = vsel %vm191_vm3, %v510_v8, %v511_v17  ;;  %v2488_v26 = vmov 16   ;;  %v2489_v27 = vmov 6  }
  0x3a   : > { %538 = vrot.lane.b32.xlu1 %v537_v18, %s2482_s5  ;;  %v514_v20 = vsel %vm194_vm4, %v513_v12, %v512_v19  ;;  %v2490_v28 = vmov 7   ;;  %v2491_v29 = vmov 8   ;;  %v2492_v30 = vmov 9  }
  0x3b   : > { %v515_v21 = vsel %vm196_vm5, %v513_v12, %v514_v20  ;;  %v2493_v31 = vmov 10   ;;  %v2494_v32 = vmov 11   ;;  %v2495_v33 = vmov 12  }
  0x3c   : > { %516 = vrot.lane.b32.xlu0 %v515_v21, %s2483_s8  ;;  %v2496_v34 = vmov 13   ;;  %v2497_v35 = vmov 14   ;;  %vm315_vm12 = vcmask 64516   ;;  %vm311_vm13 = vcmask 982016  }
  0x3d   : > { %vm289_vm14 = vcmask 929552   ;;  %vm316_vm15 = vmor %vm315_vm12, %vm314_vm11  ;;  %vm338_vm0 = vcmask 240752   ;;  %vm360_vm1 = vcmask 421152   ;;  %vm382_vm2 = vcmask 601552  }
  0x3e   : > { %563 = vperm.xlu1 %2405, %v2788_v22   ;;  %vm404_vm3 = vcmask 781952   ;;  %vm451_vm4 = vcmask 1044448   ;;  %vm452_vm5 = vcmask 97284   ;;  %vm448_vm6 = vcmask 1014784  }
  0x3f   : > { %vm519_vm11 = vcmask 634352   ;;  %vm541_vm12 = vcmask 814752   ;;  %v2498_v56 = vmov 839922192   ;;  %v553_v58 = vlaneseq }
  0x40   : > { %622 = vperm.xlu0 %2407, %v2788_v22   ;;  %v551_v57 = vunpack.c.l.s4 %v2498_v56  ;;  %v2499_v61 = vmov 17  }
  0x41   : > { %v554_v60 = vshrl.u32 %v553_v58, 7 }
  0x42   : > { %2406 = vset.pattern.permute.xlu1 %v2484_v5  ;;  %v552_v59 = vunpack.c.0.s8 %v551_v57 }
  0x43   : > { %593 = vperm.xlu1 %2406, %v2788_v22  }
  0x44   : > { %2408 = vset.pattern.permute.xlu0 %v2485_v23  ;;  %v2809_v62 = vsub.s32 %v552_v59, %v554_v60 }
  0x45   : > { %651 = vperm.xlu0 %2408, %v2788_v22  }
  0x47   : > { %2419 = vset.pattern.permute.xlu1 %v2486_v24 }
  0x48   : > { %978 = vperm.xlu1 %2419, %v2788_v22  }
  0x49   : > { %2409 = vset.pattern.permute.xlu0 %v2487_v25 }
  0x4a   : > { %679 = vperm.xlu0 %2409, %v2788_v22  }
  0x4c   : > { %2420 = vset.pattern.permute.xlu1 %v2488_v26 }
  0x4d   : > { %1013 = vperm.xlu1 %2420, %v2788_v22  }
  0x4e   : > { %2410 = vset.pattern.permute.xlu0 %v2489_v27 }
  0x4f   : > { %708 = vperm.xlu0 %2410, %v2788_v22  }
  0x51   : > { %2421 = vset.pattern.permute.xlu1 %v2499_v61 }
  0x53   : > { %2411 = vset.pattern.permute.xlu0 %v2490_v28 }
  0x54   : > { %737 = vperm.xlu0 %2411, %v2788_v22  }
  0x58   : > { %2412 = vset.pattern.permute.xlu0 %v2491_v29 }
  0x59   : > { %766 = vperm.xlu0 %2412, %v2788_v22  }
  0x5d   : > { %2413 = vset.pattern.permute.xlu0 %v2492_v30 }
  0x5e   : > { %795 = vperm.xlu0 %2413, %v2788_v22  }
  0x62   : > { %2414 = vset.pattern.permute.xlu0 %v2493_v31 }
  0x63   : > { %824 = vperm.xlu0 %2414, %v2788_v22  }
  0x67   : > { %2415 = vset.pattern.permute.xlu0 %v2494_v32 }
  0x68   : > { %853 = vperm.xlu0 %2415, %v2788_v22  }
  0x6c   : > { %2416 = vset.pattern.permute.xlu0 %v2495_v33 }
  0x6d   : > { %882 = vperm.xlu0 %2416, %v2788_v22  }
  0x71   : > { %2417 = vset.pattern.permute.xlu0 %v2496_v34 }
  0x72   : > { %911 = vperm.xlu0 %2417, %v2788_v22  }
  0x76   : > { %2418 = vset.pattern.permute.xlu0 %v2497_v35 }
  0x77   : > { %943 = vperm.xlu0 %2418, %v2788_v22  }
  0x8d   : > { %v243_v36 = vpop.permute.xlu1 %242 }
  0x8f   : > { %v199_v37 = vpop.permute.xlu0 %198 }
  0x90   : > { %202 = vst.msk [vmem:[#allocation2 + $0x4] sm:$0xf] %vm201_vm7, %v199_v37  ;;  %vm426_vm7 = vcmask 962352  }
  0x91   : > { %v265_v38 = vpop.permute.xlu1 %264 }
  0x93   : > { %v221_v39 = vpop.permute.xlu0 %220 }
  0x94   : > { %224 = vst.msk [vmem:[#allocation2 + $0x4] sm:$0xf] %vm223_vm8, %v221_v39  ;;  %vm453_vm8 = vmor %vm452_vm5, %vm451_vm4  ;;  %vm758_vm4 = vcmask 867328   ;;  %vm787_vm5 = vcmask 859136  }
  0x95   : > { %246 = vst.msk [vmem:[#allocation2 + $0x4] sm:$0xf] %vm245_vm9, %v243_v36  ;;  %vm475_vm9 = vcmask 273552  }
  0x96   : > { %v309_v40 = vpop.permute.xlu1 %308  ;;  %268 = vst.msk [vmem:[#allocation2 + $0x4] sm:$0xf] %vm267_vm10, %v265_v38  ;;  %vm497_vm10 = vcmask 453952   ;;  %v2875_v38 = vld [vmem:[#allocation2 + $0x10] sm:$0xf] }
  0x97   : > { %v310_v41 = vrot.slane %v309_v40, 4 }
  0x98   : > { %v287_v42 = vpop.permute.xlu0 %286 }
  0x99   : > { %v312_v43 = vsel %vm311_vm13, %v310_v41, %v309_v40  ;;  %290 = vst.msk [vmem:[#allocation2 + $0x4] sm:$0xf] %vm289_vm14, %v287_v42  ;;  %vm614_vm14 = vcmask 1031168  }
  0x9a   : > { %v358_v44 = vpop.permute.xlu1 %357  ;;  %317 = vst.msk [vmem:[#allocation2 + $0x4] sm:$0xff] %vm316_vm15, %v312_v43  ;;  %vm583_vm15 = vcmask 1043456  }
  0x9c   : > { %v336_v45 = vpop.permute.xlu0 %335 }
  0x9d   : > { %339 = vst.msk [vmem:[#allocation2 + $0x8] sm:$0xf] %vm338_vm0, %v336_v45  ;;  %vm643_vm0 = vcmask 1022976  }
  0x9e   : > { %361 = vst.msk [vmem:[#allocation2 + $0x8] sm:$0xf] %vm360_vm1, %v358_v44  ;;  %vm700_vm1 = vcmask 1006592  }
  0x9f   : > { %v402_v46 = vpop.permute.xlu1 %401 }
  0xa1   : > { %v380_v47 = vpop.permute.xlu0 %379  ;;  %v2814_v1 = vld [vmem:[#allocation2] sm:$0xff] }
  0xa2   : > { %383 = vst.msk [vmem:[#allocation2 + $0x8] sm:$0xf] %vm382_vm2, %v380_v47  ;;  %vm585_vm2 = vcmask 1039360  }
  0xa3   : > { %v446_v48 = vpop.permute.xlu1 %445  ;;  %405 = vst.msk [vmem:[#allocation2 + $0x8] sm:$0xf] %vm404_vm3, %v402_v46  ;;  %vm729_vm3 = vcmask 998400  }
  0xa4   : > { %v447_v49 = vrot.slane %v446_v48, 4 }
  0xa5   : > { %v424_v50 = vpop.permute.xlu0 %423 }
  0xa6   : > { %v449_v51 = vsel %vm448_vm6, %v447_v49, %v446_v48  ;;  %427 = vst.msk [vmem:[#allocation2 + $0x8] sm:$0xf] %vm426_vm7, %v424_v50  ;;  %vm816_vm7 = vcmask 850944  }
  0xa7   : > { %454 = vst.msk [vmem:[#allocation2 + $0x8] sm:$0xff] %vm453_vm8, %v449_v51  ;;  %vm845_vm8 = vcmask 842752  }
  0xa8   : > { %v495_v52 = vpop.permute.xlu1 %494 }
  0xaa   : > { %v473_v53 = vpop.permute.xlu0 %472 }
  0xab   : > { %476 = vst.msk [vmem:[#allocation2 + $0xc] sm:$0xf] %vm475_vm9, %v473_v53  ;;  %vm874_vm9 = vcmask 834560  }
  0xac   : > { %498 = vst.msk [vmem:[#allocation2 + $0xc] sm:$0xf] %vm497_vm10, %v495_v52  ;;  %v539_v54 = vpop.permute.xlu1 %538  ;;  %vm903_vm10 = vcmask 826368  }
  0xae   : > { %v517_v55 = vpop.permute.xlu0 %516 }
  0xaf   : > { %520 = vst.msk [vmem:[#allocation2 + $0xc] sm:$0xf] %vm519_vm11, %v517_v55  ;;  %vm932_vm11 = vcmask 818176  }
  0xb0   : > { %542 = vst.msk [vmem:[#allocation2 + $0xc] sm:$0xf] %vm541_vm12, %v539_v54  ;;  %vm969_vm12 = vcmask 687104  }
  0xb7   : > { %v2886_v47 = vld [vmem:[#allocation2 + $0x8] sm:$0xff] }
  0xbd   : > { %v564_v63 = vpop.permute.xlu1 %563 }
  0xbe   : > { %v2812_v0 = vrot.slane %v564_v63, %v2809_v62 }
  0xbf   : > { %v623_v2 = vpop.permute.xlu0 %622 }
  0xc0   : > { %v573_v3 = vmul.f32 %v2812_v0, %v2814_v1  ;;  %v2819_v4 = vrot.slane %v623_v2, %v2809_v62  ;;  %v574_v57 = vmul.f32 %v2812_v0, %v2886_v47 }
  0xc2   : > { %577 = vrot.lane.b32.xlu1 %v573_v3, %s2500_s9  ;;  %v632_v6 = vmul.f32 %v2819_v4, %v2814_v1  ;;  %v594_v34 = vpop.permute.xlu1 %593  ;;  %v633_v49 = vmul.f32 %v2819_v4, %v2886_v47 }
  0xc3   : > { %v601_v42 = vrot.slane %v594_v34, %v2809_v62 }
  0xc4   : > { %v652_v7 = vpop.permute.xlu0 %651 }
  0xc5   : > { %v2825_v8 = vrot.slane %v652_v7, %v2809_v62  ;;  %v604_v48 = vmul.f32 %v601_v42, %v2886_v47  ;;  %v603_v50 = vmul.f32 %v601_v42, %v2814_v1 }
  0xc6   : > { %636 = vrot.lane.b32.xlu1 %v632_v6, %s2501_s10 }
  0xc7   : > { %v661_v9 = vmul.f32 %v2825_v8, %v2814_v1  ;;  %v979_v39 = vpop.permute.xlu1 %978  ;;  %v662_v52 = vmul.f32 %v2825_v8, %v2886_v47 }
  0xc8   : > { %v986_v43 = vrot.slane %v979_v39, %v2809_v62 }
  0xc9   : > { %v680_v10 = vpop.permute.xlu0 %679 }
  0xca   : > { %v2831_v11 = vrot.slane %v680_v10, %v2809_v62  ;;  %665 = vrot.lane.b32.xlu1 %v661_v9, %s2478_s28  ;;  %v990_v46 = vmul.f32 %v986_v43, %v2875_v38  ;;  %v988_v54 = vmul.f32 %v986_v43, %v2814_v1  ;;  %v989_v7 = vmul.f32 %v986_v43, %v2886_v47 }
  0xcc   : > { %v689_v12 = vmul.f32 %v2831_v11, %v2814_v1  ;;  %v1014_v51 = vpop.permute.xlu1 %1013  ;;  %v690_v55 = vmul.f32 %v2831_v11, %v2886_v47 }
  0xcd   : > { %v1021_v53 = vrot.slane %v1014_v51, %v2809_v62 }
  0xce   : > { %v709_v13 = vpop.permute.xlu0 %708  ;;  %693 = vrot.lane.b32.xlu1 %v689_v12, %s2502_s11 }
  0xcf   : > { %v2838_v14 = vrot.slane %v709_v13, %v2809_v62  ;;  %v1023_v56 = vmul.f32 %v1021_v53, %v2814_v1  ;;  %v1025_v59 = vmul.f32 %v1021_v53, %v2875_v38  ;;  %v1024_v9 = vmul.f32 %v1021_v53, %v2886_v47 }
  0xd0   : > { %v2513_v13 = vmov 18  }
  0xd1   : > { %v718_v15 = vmul.f32 %v2838_v14, %v2814_v1  ;;  %v719_v58 = vmul.f32 %v2838_v14, %v2886_v47 }
  0xd3   : > { %v738_v16 = vpop.permute.xlu0 %737  ;;  %722 = vrot.lane.b32.xlu1 %v718_v15, %s2503_s14 }
  0xd4   : > { %v2844_v17 = vrot.slane %v738_v16, %v2809_v62 }
  0xd6   : > { %v747_v18 = vmul.f32 %v2844_v17, %v2814_v1  ;;  %v748_v60 = vmul.f32 %v2844_v17, %v2886_v47 }
  0xd8   : > { %751 = vrot.lane.b32.xlu1 %v747_v18, %s2504_s15  ;;  %v767_v19 = vpop.permute.xlu0 %766 }
  0xd9   : > { %v2850_v20 = vrot.slane %v767_v19, %v2809_v62 }
  0xdb   : > { %v776_v21 = vmul.f32 %v2850_v20, %v2814_v1  ;;  %v777_v61 = vmul.f32 %v2850_v20, %v2886_v47 }
  0xdd   : > { %780 = vrot.lane.b32.xlu1 %v776_v21, %s2505_s16  ;;  %v796_v5 = vpop.permute.xlu0 %795 }
  0xde   : > { %v2856_v23 = vrot.slane %v796_v5, %v2809_v62 }
  0xe0   : > { %v805_v24 = vmul.f32 %v2856_v23, %v2814_v1  ;;  %v806_v63 = vmul.f32 %v2856_v23, %v2886_v47 }
  0xe2   : > { %809 = vrot.lane.b32.xlu1 %v805_v24, %s2506_s17  ;;  %v825_v25 = vpop.permute.xlu0 %824 }
  0xe3   : > { %v2862_v26 = vrot.slane %v825_v25, %v2809_v62 }
  0xe5   : > { %v834_v27 = vmul.f32 %v2862_v26, %v2814_v1  ;;  %v835_v0 = vmul.f32 %v2862_v26, %v2886_v47 }
  0xe7   : > { %838 = vrot.lane.b32.xlu1 %v834_v27, %s2507_s18  ;;  %v854_v28 = vpop.permute.xlu0 %853 }
  0xe8   : > { %v861_v29 = vrot.slane %v854_v28, %v2809_v62 }
  0xea   : > { %v863_v30 = vmul.f32 %v861_v29, %v2814_v1  ;;  %v864_v2 = vmul.f32 %v861_v29, %v2886_v47 }
  0xec   : > { %867 = vrot.lane.b32.xlu1 %v863_v30, %s2479_s29  ;;  %v883_v31 = vpop.permute.xlu0 %882 }
  0xed   : > { %v890_v32 = vrot.slane %v883_v31, %v2809_v62 }
  0xef   : > { %v892_v33 = vmul.f32 %v890_v32, %v2814_v1  ;;  %v893_v3 = vmul.f32 %v890_v32, %v2886_v47 }
  0xf1   : > { %896 = vrot.lane.b32.xlu1 %v892_v33, %s2508_s19  ;;  %v912_v35 = vpop.permute.xlu0 %911 }
  0xf2   : > { %v919_v36 = vrot.slane %v912_v35, %v2809_v62 }
  0xf4   : > { %v921_v37 = vmul.f32 %v919_v36, %v2814_v1  ;;  %v922_v4 = vmul.f32 %v919_v36, %v2886_v47 }
  0xf6   : > { %925 = vrot.lane.b32.xlu1 %v921_v37, %s2509_s20  ;;  %v944_v40 = vpop.permute.xlu0 %943 }
  0xf7   : > { %v951_v41 = vrot.slane %v944_v40, %v2809_v62 }
  0xf9   : > { %v955_v44 = vmul.f32 %v951_v41, %v2875_v38  ;;  %v953_v45 = vmul.f32 %v951_v41, %v2814_v1  ;;  %v954_v6 = vmul.f32 %v951_v41, %v2886_v47 }
  0xfb   : > { %963 = vrot.lane.b32.xlu0 %v955_v44, %s2482_s5  ;;  %959 = vrot.lane.b32.xlu1 %v953_v45, %s2482_s5  ;;  %v2515_v44 = vmov 19  }
  0xff   : > { %998 = vrot.lane.b32.xlu0 %v990_v46, %s2510_s21  ;;  %609 = vrot.lane.b32.xlu1 %v604_v48, %s2511_s23 }
 0x103   : > { %607 = vrot.lane.b32.xlu0 %v603_v50, %s2511_s23  ;;  %638 = vrot.lane.b32.xlu1 %v633_v49, %s2501_s10  ;;  %s2526_s10 = smov 59   ;;  %s2561_s23 = smov 13  }
 0x107   : > { %994 = vrot.lane.b32.xlu0 %v988_v54, %s2510_s21  ;;  %667 = vrot.lane.b32.xlu1 %v662_v52, %s2478_s28  ;;  %v2516_v52 = vmov 20  }
 0x10b   : > { %1029 = vrot.lane.b32.xlu0 %v1023_v56, %s2512_s6  ;;  %695 = vrot.lane.b32.xlu1 %v690_v55, %s2502_s11 }
 0x10f   : > { %579 = vrot.lane.b32.xlu0 %v574_v57, %s2500_s9  ;;  %724 = vrot.lane.b32.xlu1 %v719_v58, %s2503_s14 }
 0x113   : > { %753 = vrot.lane.b32.xlu1 %v748_v60, %s2504_s15  ;;  %1033 = vrot.lane.b32.xlu0 %v1025_v59, %s2512_s6  ;;  %v2518_v59 = vmov 21   ;;  %s2530_s15 = smov 57  }
 0x117   : > { %782 = vrot.lane.b32.xlu1 %v777_v61, %s2505_s16  ;;  %s2553_s16 = smov 39  }
 0x11b   : > { %811 = vrot.lane.b32.xlu1 %v806_v63, %s2506_s17  ;;  %s2555_s17 = smov 37  }
 0x11f   : > { %840 = vrot.lane.b32.xlu1 %v835_v0, %s2507_s18 }
 0x123   : > { %869 = vrot.lane.b32.xlu1 %v864_v2, %s2479_s29  ;;  %s2514_s29 = smov 81  }
 0x127   : > { %898 = vrot.lane.b32.xlu1 %v893_v3, %s2508_s19  ;;  %s2557_s19 = smov 34  }
 0x12b   : > { %927 = vrot.lane.b32.xlu1 %v922_v4, %s2509_s20  ;;  %v2520_v4 = vmov 22   ;;  %s2558_s20 = smov 17  }
 0x12f   : > { %961 = vrot.lane.b32.xlu1 %v954_v6, %s2482_s5  ;;  %s2517_s5 = smov 79  }
 0x133   : > { %996 = vrot.lane.b32.xlu1 %v989_v7, %s2510_s21  ;;  %s2560_s21 = smov 15  }
 0x134   : > { %v2933_v8 = vpop.permute.xlu1 %577 }
 0x137   : > { %1031 = vrot.lane.b32.xlu1 %v1024_v9, %s2512_s6  ;;  %s2567_s6 = smov 53  }
 0x138   : > { %v2936_v10 = vpop.permute.xlu1 %636 }
 0x13b   : > { %1048 = vperm.xlu1 %2421, %v2788_v22  }
 0x13c   : > { %v2939_v11 = vpop.permute.xlu1 %665 }
 0x13f   : > { %2422 = vset.pattern.permute.xlu1 %v2513_v13 }
 0x140   : > { %v2941_v12 = vpop.permute.xlu1 %693 }
 0x145   : > { %v2943_v14 = vpop.permute.xlu1 %722 }
 0x14a   : > { %v2945_v15 = vpop.permute.xlu1 %751 }
 0x14f   : > { %v2947_v16 = vpop.permute.xlu1 %780 }
 0x154   : > { %v2949_v17 = vpop.permute.xlu1 %809 }
 0x159   : > { %v2951_v18 = vpop.permute.xlu1 %838 }
 0x15e   : > { %v2953_v19 = vpop.permute.xlu1 %867 }
 0x163   : > { %v2955_v20 = vpop.permute.xlu1 %896 }
 0x168   : > { %v2957_v21 = vpop.permute.xlu1 %925 }
 0x16d   : > { %v2959_v5 = vpop.permute.xlu1 %959 }
 0x171   : > { %v2961_v23 = vpop.permute.xlu1 %609 }
 0x175   : > { %v2963_v24 = vpop.permute.xlu1 %638 }
 0x179   : > { %v2965_v25 = vpop.permute.xlu1 %667 }
 0x17d   : > { %v2967_v26 = vpop.permute.xlu1 %695 }
 0x181   : > { %v2969_v27 = vpop.permute.xlu1 %724 }
 0x185   : > { %v2971_v28 = vpop.permute.xlu1 %753 }
 0x189   : > { %v2973_v29 = vpop.permute.xlu1 %782 }
 0x18d   : > { %v2975_v30 = vpop.permute.xlu1 %811 }
 0x191   : > { %v2977_v31 = vpop.permute.xlu1 %840 }
 0x195   : > { %v2979_v32 = vpop.permute.xlu1 %869 }
 0x199   : > { %v2981_v33 = vpop.permute.xlu1 %898 }
 0x19d   : > { %v2983_v34 = vpop.permute.xlu1 %927 }
 0x1a1   : > { %v2985_v35 = vpop.permute.xlu1 %961 }
 0x1a5   : > { %v2987_v36 = vpop.permute.xlu1 %996 }
 0x1a9   : > { %v2989_v37 = vpop.permute.xlu1 %1031 }
 0x1ba   : > { %v1049_v39 = vpop.permute.xlu1 %1048 }
 0x1bb   : > { %v1056_v40 = vrot.slane %v1049_v39, %v2809_v62 }
 0x1bd   : > { %v1059_v41 = vmul.f32 %v1056_v40, %v2886_v47  ;;  %v1058_v42 = vmul.f32 %v1056_v40, %v2814_v1  ;;  %v1060_v43 = vmul.f32 %v1056_v40, %v2875_v38 }
 0x1bf   : > { %1066 = vrot.lane.b32.xlu1 %v1059_v41, %s2514_s29  ;;  %1064 = vrot.lane.b32.xlu0 %v1058_v42, %s2514_s29  ;;  %v2521_v41 = vmov 23  }
 0x1c3   : > { %1083 = vperm.xlu1 %2422, %v2788_v22   ;;  %1068 = vrot.lane.b32.xlu0 %v1060_v43, %s2514_s29  ;;  %s2568_s29 = smov 47  }
 0x1c7   : > { %2423 = vset.pattern.permute.xlu1 %v2515_v44 }
 0x231   : > { %v2996_v45 = vpop.permute.xlu1 %1066 }
 0x232   : > { %3705 = vst [vmem:[#allocation3_spill] sm:$0xff] %v2996_v45 }
 0x242   : > { %v1084_v46 = vpop.permute.xlu1 %1083 }
 0x243   : > { %v1091_v48 = vrot.slane %v1084_v46, %v2809_v62 }
 0x245   : > { %v1094_v49 = vmul.f32 %v1091_v48, %v2886_v47  ;;  %v1093_v50 = vmul.f32 %v1091_v48, %v2814_v1  ;;  %v1095_v51 = vmul.f32 %v1091_v48, %v2875_v38 }
 0x247   : > { %1101 = vrot.lane.b32.xlu1 %v1094_v49, %s2476_s26  ;;  %1099 = vrot.lane.b32.xlu0 %v1093_v50, %s2476_s26  ;;  %v2523_v50 = vmov 24  }
 0x24b   : > { %1118 = vperm.xlu1 %2423, %v2788_v22   ;;  %1103 = vrot.lane.b32.xlu0 %v1095_v51, %s2476_s26  ;;  %s2519_s26 = smov 78  }
 0x24f   : > { %2424 = vset.pattern.permute.xlu1 %v2516_v52 }
 0x2b9   : > { %v3006_v53 = vpop.permute.xlu1 %1101 }
 0x2ba   : > { %3706 = vst [vmem:[#allocation4_spill] sm:$0xff] %v3006_v53 }
 0x2ca   : > { %v1119_v54 = vpop.permute.xlu1 %1118 }
 0x2cb   : > { %v1126_v55 = vrot.slane %v1119_v54, %v2809_v62 }
 0x2cd   : > { %v1129_v56 = vmul.f32 %v1126_v55, %v2886_v47  ;;  %v1128_v57 = vmul.f32 %v1126_v55, %v2814_v1  ;;  %v1130_v58 = vmul.f32 %v1126_v55, %v2875_v38 }
 0x2cf   : > { %1136 = vrot.lane.b32.xlu1 %v1129_v56, %s2517_s5  ;;  %1134 = vrot.lane.b32.xlu0 %v1128_v57, %s2517_s5 }
 0x2d3   : > { %1153 = vperm.xlu1 %2424, %v2788_v22   ;;  %1138 = vrot.lane.b32.xlu0 %v1130_v58, %s2517_s5  ;;  %v2525_v58 = vmov 25  }
 0x2d7   : > { %2425 = vset.pattern.permute.xlu1 %v2518_v59 }
 0x341   : > { %v3013_v60 = vpop.permute.xlu1 %1136 }
 0x342   : > { %3707 = vst [vmem:[#allocation5_spill] sm:$0xff] %v3013_v60 }
 0x352   : > { %v1154_v61 = vpop.permute.xlu1 %1153 }
 0x353   : > { %v1161_v63 = vrot.slane %v1154_v61, %v2809_v62 }
 0x355   : > { %v1164_v0 = vmul.f32 %v1161_v63, %v2886_v47  ;;  %v1163_v2 = vmul.f32 %v1161_v63, %v2814_v1  ;;  %v1165_v3 = vmul.f32 %v1161_v63, %v2875_v38 }
 0x357   : > { %1171 = vrot.lane.b32.xlu1 %v1164_v0, %s2519_s26  ;;  %1169 = vrot.lane.b32.xlu0 %v1163_v2, %s2519_s26 }
 0x35b   : > { %1188 = vperm.xlu1 %2425, %v2788_v22   ;;  %1173 = vrot.lane.b32.xlu0 %v1165_v3, %s2519_s26 }
 0x35f   : > { %2426 = vset.pattern.permute.xlu1 %v2520_v4  ;;  %v2527_v4 = vmov 26  }
 0x3c9   : > { %v3020_v6 = vpop.permute.xlu1 %1171 }
 0x3ca   : > { %3708 = vst [vmem:[#allocation6_spill] sm:$0xff] %v3020_v6  ;;  %v640_v6 = vrot.slane %v2936_v10, 4 }
 0x3da   : > { %v1189_v7 = vpop.permute.xlu1 %1188 }
 0x3db   : > { %v1196_v9 = vrot.slane %v1189_v7, %v2809_v62 }
 0x3dd   : > { %v1199_v13 = vmul.f32 %v1196_v9, %v2886_v47  ;;  %v1198_v39 = vmul.f32 %v1196_v9, %v2814_v1  ;;  %v1200_v40 = vmul.f32 %v1196_v9, %v2875_v38 }
 0x3df   : > { %1206 = vrot.lane.b32.xlu1 %v1199_v13, %s2483_s8  ;;  %1204 = vrot.lane.b32.xlu0 %v1198_v39, %s2483_s8 }
 0x3e3   : > { %1223 = vperm.xlu1 %2426, %v2788_v22   ;;  %1208 = vrot.lane.b32.xlu0 %v1200_v40, %s2483_s8  ;;  %s2524_s8 = smov 60  }
 0x3e7   : > { %2427 = vset.pattern.permute.xlu1 %v2521_v41 }
 0x451   : > { %v3030_v42 = vpop.permute.xlu1 %1206 }
 0x452   : > { %3709 = vst [vmem:[#allocation7_spill] sm:$0xff] %v3030_v42 }
 0x462   : > { %v1224_v43 = vpop.permute.xlu1 %1223 }
 0x463   : > { %v1231_v44 = vrot.slane %v1224_v43, %v2809_v62  ;;  %v2528_v43 = vmov 27  }
 0x465   : > { %v1234_v46 = vmul.f32 %v1231_v44, %v2886_v47  ;;  %v1233_v48 = vmul.f32 %v1231_v44, %v2814_v1  ;;  %v1235_v49 = vmul.f32 %v1231_v44, %v2875_v38  ;;  %v2529_v44 = vmov 28  }
 0x466   : > { %2432 = vset.pattern.permute.xlu0 %v2529_v44  ;;  %v2540_v44 = vmov 43  }
 0x467   : > { %1241 = vrot.lane.b32.xlu1 %v1234_v46, %s2522_s7  ;;  %1239 = vrot.lane.b32.xlu0 %v1233_v48, %s2522_s7 }
 0x46b   : > { %1258 = vperm.xlu1 %2427, %v2788_v22   ;;  %1243 = vrot.lane.b32.xlu0 %v1235_v49, %s2522_s7  ;;  %s2569_s7 = smov 5  }
 0x46f   : > { %2428 = vset.pattern.permute.xlu1 %v2523_v50  ;;  %v3067_v50 = vpop.permute.xlu0 %963 }
 0x4d9   : > { %v3037_v51 = vpop.permute.xlu1 %1241 }
 0x4da   : > { %3710 = vst [vmem:[#allocation8_spill] sm:$0xff] %v3037_v51 }
 0x4ea   : > { %v1259_v52 = vpop.permute.xlu1 %1258 }
 0x4eb   : > { %v1266_v54 = vrot.slane %v1259_v52, %v2809_v62 }
 0x4ed   : > { %v1269_v55 = vmul.f32 %v1266_v54, %v2886_v47  ;;  %v1268_v56 = vmul.f32 %v1266_v54, %v2814_v1  ;;  %v1270_v57 = vmul.f32 %v1266_v54, %v2875_v38 }
 0x4ef   : > { %1276 = vrot.lane.b32.xlu1 %v1269_v55, %s2524_s8  ;;  %1274 = vrot.lane.b32.xlu0 %v1268_v56, %s2524_s8  ;;  %v3072_v56 = vpop.permute.xlu0 %998 }
 0x4f3   : > { %1293 = vperm.xlu1 %2428, %v2788_v22   ;;  %1278 = vrot.lane.b32.xlu0 %v1270_v57, %s2524_s8  ;;  %v2531_v57 = vmov 29   ;;  %s2570_s8 = smov 115  }
 0x4f7   : > { %2429 = vset.pattern.permute.xlu1 %v2525_v58  ;;  %v3076_v58 = vpop.permute.xlu0 %607 }
 0x561   : > { %v3044_v59 = vpop.permute.xlu1 %1276 }
 0x562   : > { %3711 = vst [vmem:[#allocation9_spill] sm:$0xff] %v3044_v59 }
 0x572   : > { %v1294_v61 = vpop.permute.xlu1 %1293 }
 0x573   : > { %v1301_v63 = vrot.slane %v1294_v61, %v2809_v62  ;;  %v2532_v61 = vmov 31  }
 0x575   : > { %v1304_v0 = vmul.f32 %v1301_v63, %v2886_v47  ;;  %v1303_v2 = vmul.f32 %v1301_v63, %v2814_v1  ;;  %v1305_v3 = vmul.f32 %v1301_v63, %v2875_v38  ;;  %v2533_v63 = vmov 30  }
 0x577   : > { %1311 = vrot.lane.b32.xlu1 %v1304_v0, %s2526_s10  ;;  %1309 = vrot.lane.b32.xlu0 %v1303_v2, %s2526_s10  ;;  %v3081_v0 = vpop.permute.xlu0 %994  ;;  %v2534_v2 = vmov 34  }
 0x57b   : > { %1328 = vperm.xlu1 %2429, %v2788_v22   ;;  %1313 = vrot.lane.b32.xlu0 %v1305_v3, %s2526_s10  ;;  %v2535_v3 = vmov 32  }
 0x57f   : > { %2430 = vset.pattern.permute.xlu1 %v2527_v4  ;;  %v3085_v4 = vpop.permute.xlu0 %1029 }
 0x5e9   : > { %v3054_v7 = vpop.permute.xlu1 %1311 }
 0x5ea   : > { %3712 = vst [vmem:[#allocation10_spill] sm:$0xff] %v3054_v7 }
 0x5fa   : > { %v1329_v9 = vpop.permute.xlu1 %1328 }
 0x5fb   : > { %v1336_v13 = vrot.slane %v1329_v9, %v2809_v62  ;;  %v2536_v9 = vmov 37  }
 0x5fd   : > { %v1339_v39 = vmul.f32 %v1336_v13, %v2886_v47  ;;  %v1338_v40 = vmul.f32 %v1336_v13, %v2814_v1  ;;  %v1340_v41 = vmul.f32 %v1336_v13, %v2875_v38  ;;  %v2537_v13 = vmov 33  }
 0x5ff   : > { %1346 = vrot.lane.b32.xlu1 %v1339_v39, %s2477_s27  ;;  %1344 = vrot.lane.b32.xlu0 %v1338_v40, %s2477_s27  ;;  %v3089_v39 = vpop.permute.xlu0 %579  ;;  %v2538_v40 = vmov 40  }
 0x603   : > { %1363 = vperm.xlu1 %2430, %v2788_v22   ;;  %1348 = vrot.lane.b32.xlu0 %v1340_v41, %s2477_s27  ;;  %v2539_v41 = vmov 35   ;;  %s2552_s27 = smov 56  }
 0x607   : > { %2431 = vset.pattern.permute.xlu1 %v2528_v43  ;;  %v3093_v43 = vpop.permute.xlu0 %1033 }
 0x608   : > { %3714 = vst [vmem:[#allocation12_spill] sm:$0xff] %v3093_v43 }
 0x671   : > { %v3064_v46 = vpop.permute.xlu1 %1346 }
 0x672   : > { %3713 = vst [vmem:[#allocation11_spill] sm:$0xff] %v3064_v46 }
 0x682   : > { %v1364_v48 = vpop.permute.xlu1 %1363 }
 0x683   : > { %v1371_v49 = vrot.slane %v1364_v48, %v2809_v62  ;;  %v2541_v48 = vmov 36  }
 0x685   : > { %v1374_v52 = vmul.f32 %v1371_v49, %v2886_v47  ;;  %v1373_v54 = vmul.f32 %v1371_v49, %v2814_v1  ;;  %v1375_v55 = vmul.f32 %v1371_v49, %v2875_v38  ;;  %v3097_v49 = vpop.permute.xlu0 %1064 }
 0x686   : > { %3715 = vst [vmem:[#allocation13_spill] sm:$0xff] %v3097_v49 }
 0x687   : > { %1381 = vrot.lane.b32.xlu1 %v1374_v52, %s2530_s15  ;;  %1379 = vrot.lane.b32.xlu0 %v1373_v54, %s2530_s15  ;;  %v2542_v52 = vmov 46   ;;  %v2543_v54 = vmov 38  }
 0x68b   : > { %1398 = vperm.xlu1 %2431, %v2788_v22   ;;  %1383 = vrot.lane.b32.xlu0 %v1375_v55, %s2530_s15  ;;  %v3101_v55 = vpop.permute.xlu0 %1068  ;;  %s2571_s15 = smov 41  }
 0x68c   : > { %3716 = vst [vmem:[#allocation14_spill] sm:$0xff] %v3101_v55 }
 0x68f   : > { %2433 = vset.pattern.permute.xlu1 %v2531_v57  ;;  %1433 = vperm.xlu0 %2432, %v2788_v22   ;;  %v2544_v57 = vmov 0  }
 0x690   : > { %1468 = vperm.xlu1 %2433, %v2788_v22  }
 0x693   : > { %2435 = vset.pattern.permute.xlu0 %v2532_v61  ;;  %v2545_v61 = vmov 39  }
 0x694   : > { %2434 = vset.pattern.permute.xlu1 %v2533_v63  ;;  %1538 = vperm.xlu0 %2435, %v2788_v22   ;;  %v3105_v63 = vpop.permute.xlu0 %1099 }
 0x695   : > { %1503 = vperm.xlu1 %2434, %v2788_v22   ;;  %3717 = vst [vmem:[#allocation15_spill] sm:$0xff] %v3105_v63 }
 0x698   : > { %2438 = vset.pattern.permute.xlu0 %v2534_v2  ;;  %v2546_v2 = vmov 41  }
 0x699   : > { %2436 = vset.pattern.permute.xlu1 %v2535_v3  ;;  %1643 = vperm.xlu0 %2438, %v2788_v22   ;;  %v3108_v3 = vpop.permute.xlu0 %1103 }
 0x69a   : > { %1573 = vperm.xlu1 %2436, %v2788_v22   ;;  %3718 = vst [vmem:[#allocation16_spill] sm:$0xff] %v3108_v3  ;;  %v670_v3 = vrot.slane %v2965_v25, 4 }
 0x69d   : > { %2441 = vset.pattern.permute.xlu0 %v2536_v9  ;;  %v2547_v9 = vmov 42  }
 0x69e   : > { %2437 = vset.pattern.permute.xlu1 %v2537_v13  ;;  %1748 = vperm.xlu0 %2441, %v2788_v22   ;;  %v3111_v13 = vpop.permute.xlu0 %1134 }
 0x69f   : > { %1608 = vperm.xlu1 %2437, %v2788_v22   ;;  %3719 = vst [vmem:[#allocation17_spill] sm:$0xff] %v3111_v13  ;;  %v697_v13 = vrot.slane %v2941_v12, 4 }
 0x6a2   : > { %2444 = vset.pattern.permute.xlu0 %v2538_v40  ;;  %v2548_v40 = vmov 44  }
 0x6a3   : > { %2439 = vset.pattern.permute.xlu1 %v2539_v41  ;;  %1853 = vperm.xlu0 %2444, %v2788_v22   ;;  %v3114_v41 = vpop.permute.xlu0 %1138 }
 0x6a4   : > { %1678 = vperm.xlu1 %2439, %v2788_v22   ;;  %3720 = vst [vmem:[#allocation18_spill] sm:$0xff] %v3114_v41  ;;  %v669_v41 = vrot.slane %v2939_v11, 4 }
 0x6a7   : > { %2447 = vset.pattern.permute.xlu0 %v2540_v44  ;;  %v2549_v44 = vmov 45  }
 0x6a8   : > { %2440 = vset.pattern.permute.xlu1 %v2541_v48  ;;  %1953 = vperm.xlu0 %2447, %v2788_v22   ;;  %v3117_v48 = vpop.permute.xlu0 %1169 }
 0x6a9   : > { %1713 = vperm.xlu1 %2440, %v2788_v22   ;;  %3721 = vst [vmem:[#allocation19_spill] sm:$0xff] %v3117_v48 }
 0x6ac   : > { %2450 = vset.pattern.permute.xlu0 %v2542_v52  ;;  %v2550_v52 = vmov 47  }
 0x6ad   : > { %2442 = vset.pattern.permute.xlu1 %v2543_v54  ;;  %2038 = vperm.xlu0 %2450, %v2788_v22   ;;  %v3120_v54 = vpop.permute.xlu0 %1173 }
 0x6ae   : > { %1783 = vperm.xlu1 %2442, %v2788_v22   ;;  %3722 = vst [vmem:[#allocation20_spill] sm:$0xff] %v3120_v54 }
 0x6b1   : > { %2451 = vset.pattern.permute.xlu0 %v2544_v57  ;;  %v2551_v57 = vmov 48  }
 0x6b2   : > { %2443 = vset.pattern.permute.xlu1 %v2545_v61  ;;  %548 = vperm.xlu0 %2451, %v2788_v22   ;;  %v3123_v61 = vpop.permute.xlu0 %1204 }
 0x6b3   : > { %1818 = vperm.xlu1 %2443, %v2788_v22   ;;  %3723 = vst [vmem:[#allocation21_spill] sm:$0xff] %v3123_v61 }
 0x6b7   : > { %2445 = vset.pattern.permute.xlu1 %v2546_v2  ;;  %v3125_v2 = vpop.permute.xlu0 %1208 }
 0x6b8   : > { %1888 = vperm.xlu1 %2445, %v2788_v22   ;;  %3724 = vst [vmem:[#allocation22_spill] sm:$0xff] %v3125_v2 }
 0x6bc   : > { %2446 = vset.pattern.permute.xlu1 %v2547_v9  ;;  %v3127_v9 = vpop.permute.xlu0 %1239 }
 0x6bd   : > { %1925 = vperm.xlu1 %2446, %v2788_v22   ;;  %3725 = vst [vmem:[#allocation23_spill] sm:$0xff] %v3127_v9 }
 0x6c1   : > { %2448 = vset.pattern.permute.xlu1 %v2548_v40  ;;  %v3129_v40 = vpop.permute.xlu0 %1243 }
 0x6c2   : > { %1981 = vperm.xlu1 %2448, %v2788_v22   ;;  %3726 = vst [vmem:[#allocation24_spill] sm:$0xff] %v3129_v40 }
 0x6c6   : > { %2449 = vset.pattern.permute.xlu1 %v2549_v44  ;;  %v3131_v44 = vpop.permute.xlu0 %1274 }
 0x6c7   : > { %2009 = vperm.xlu1 %2449, %v2788_v22   ;;  %3727 = vst [vmem:[#allocation25_spill] sm:$0xff] %v3131_v44 }
 0x6ca   : > { %v3133_v46 = vpop.permute.xlu0 %1278 }
 0x6cb   : > { %2452 = vset.pattern.permute.xlu1 %v2550_v52  ;;  %3728 = vst [vmem:[#allocation26_spill] sm:$0xff] %v3133_v46 }
 0x6cc   : > { %2066 = vperm.xlu1 %2452, %v2788_v22  }
 0x6ce   : > { %v3135_v52 = vpop.permute.xlu0 %1309 }
 0x6cf   : > { %3729 = vst [vmem:[#allocation27_spill] sm:$0xff] %v3135_v52 }
 0x6d0   : > { %2453 = vset.pattern.permute.xlu1 %v2551_v57 }
 0x6d1   : > { %2095 = vperm.xlu1 %2453, %v2788_v22  }
 0x6d2   : > { %v3137_v7 = vpop.permute.xlu0 %1313 }
 0x6d3   : > { %3730 = vst [vmem:[#allocation28_spill] sm:$0xff] %v3137_v7 }
 0x6d6   : > { %v3139_v59 = vpop.permute.xlu0 %1344 }
 0x6d7   : > { %3731 = vst [vmem:[#allocation29_spill] sm:$0xff] %v3139_v59 }
 0x6da   : > { %v3141_v57 = vpop.permute.xlu0 %1348 }
 0x6db   : > { %3732 = vst [vmem:[#allocation30_spill] sm:$0xff] %v3141_v57 }
 0x6f9   : > { %v3143_v22 = vpop.permute.xlu0 %1379  ;;  %v3145_v51 = vpop.permute.xlu1 %1381 }
 0x6fa   : > { %3733 = vst [vmem:[#allocation31_spill] sm:$0xff] %v3143_v22  ;;  %3734 = vst [vmem:[#allocation32_spill] sm:$0xff] %v3145_v51 }
 0x6fd   : > { %v3147_v2 = vpop.permute.xlu0 %1383 }
 0x6fe   : > { %3735 = vst [vmem:[#allocation33_spill] sm:$0xff] %v3147_v2 }
 0x70a   : > { %v1399_v9 = vpop.permute.xlu1 %1398 }
 0x70b   : > { %v1406_v40 = vrot.slane %v1399_v9, %v2809_v62 }
 0x70d   : > { %v1408_v44 = vmul.f32 %v1406_v40, %v2814_v1  ;;  %v1409_v46 = vmul.f32 %v1406_v40, %v2886_v47  ;;  %v1410_v22 = vmul.f32 %v1406_v40, %v2875_v38 }
 0x70e   : > { %v1434_v52 = vpop.permute.xlu0 %1433 }
 0x70f   : > { %v1441_v7 = vrot.slane %v1434_v52, %v2809_v62  ;;  %1416 = vrot.lane.b32.xlu1 %v1409_v46, %s2552_s27  ;;  %1414 = vrot.lane.b32.xlu0 %v1408_v44, %s2552_s27  ;;  %v1469_v57 = vpop.permute.xlu1 %1468 }
 0x710   : > { %v1476_v61 = vrot.slane %v1469_v57, %v2809_v62 }
 0x711   : > { %v1443_v51 = vmul.f32 %v1441_v7, %v2814_v1  ;;  %v1445_v2 = vmul.f32 %v1441_v7, %v2875_v38  ;;  %v1444_v59 = vmul.f32 %v1441_v7, %v2886_v47 }
 0x712   : > { %v1478_v40 = vmul.f32 %v1476_v61, %v2814_v1  ;;  %v1479_v44 = vmul.f32 %v1476_v61, %v2886_v47 }
 0x713   : > { %1418 = vrot.lane.b32.xlu0 %v1410_v22, %s2552_s27  ;;  %1449 = vrot.lane.b32.xlu1 %v1443_v51, %s2480_s30  ;;  %v1539_v9 = vpop.permute.xlu0 %1538  ;;  %v1480_v51 = vmul.f32 %v1476_v61, %v2875_v38  ;;  %s2572_s27 = smov 109  }
 0x714   : > { %v1504_v42 = vpop.permute.xlu1 %1503 }
 0x715   : > { %v1511_v52 = vrot.slane %v1504_v42, %v2809_v62 }
 0x717   : > { %1451 = vrot.lane.b32.xlu0 %v1444_v59, %s2480_s30  ;;  %1453 = vrot.lane.b32.xlu1 %v1445_v2, %s2480_s30  ;;  %v1513_v7 = vmul.f32 %v1511_v52, %v2814_v1  ;;  %v1515_v59 = vmul.f32 %v1511_v52, %v2875_v38  ;;  %s2554_s30 = smov 38   ;;  %v1546_v2 = vrot.slane %v1539_v9, %v2809_v62 }
 0x718   : > { %v1644_v46 = vpop.permute.xlu0 %1643  ;;  %v1514_v22 = vmul.f32 %v1511_v52, %v2886_v47 }
 0x719   : > { %v1574_v54 = vpop.permute.xlu1 %1573  ;;  %v1548_v61 = vmul.f32 %v1546_v2, %v2814_v1  ;;  %v1550_v9 = vmul.f32 %v1546_v2, %v2875_v38 }
 0x71b   : > { %1484 = vrot.lane.b32.xlu0 %v1478_v40, %s2553_s16  ;;  %1486 = vrot.lane.b32.xlu1 %v1479_v44, %s2553_s16  ;;  %v1549_v40 = vmul.f32 %v1546_v2, %v2886_v47  ;;  %v1581_v44 = vrot.slane %v1574_v54, %v2809_v62  ;;  %v581_v2 = vrot.slane %v2933_v8, 4 }
 0x71d   : > { %v3166_v57 = vpop.permute.xlu0 %1748  ;;  %v1583_v52 = vmul.f32 %v1581_v44, %v2814_v1  ;;  %v1585_v48 = vmul.f32 %v1581_v44, %v2875_v38 }
 0x71f   : > { %1488 = vrot.lane.b32.xlu0 %v1480_v51, %s2553_s16  ;;  %1519 = vrot.lane.b32.xlu1 %v1513_v7, %s2554_s30  ;;  %v1609_v7 = vpop.permute.xlu1 %1608  ;;  %s2574_s16 = smov 23  }
 0x720   : > { %v1616_v54 = vrot.slane %v1609_v7, %v2809_v62 }
 0x722   : > { %v3171_v42 = vpop.permute.xlu0 %1853  ;;  %v1620_v49 = vmul.f32 %v1616_v54, %v2875_v38 }
 0x723   : > { %3736 = vst [vmem:[#allocation34_spill] sm:$0xff] %v3171_v42  ;;  %1521 = vrot.lane.b32.xlu0 %v1514_v22, %s2554_s30  ;;  %1523 = vrot.lane.b32.xlu1 %v1515_v59, %s2554_s30  ;;  %v1584_v22 = vmul.f32 %v1581_v44, %v2886_v47  ;;  %v1618_v44 = vmul.f32 %v1616_v54, %v2814_v1  ;;  %v755_v42 = vrot.slane %v2945_v15, 4 }
 0x727   : > { %1556 = vrot.lane.b32.xlu1 %v1549_v40, %s2555_s17  ;;  %1554 = vrot.lane.b32.xlu0 %v1548_v61, %s2555_s17  ;;  %v3176_v51 = vpop.permute.xlu0 %1953  ;;  %v582_v61 = vrot.slane %v3089_v39, 4  ;;  %v611_v40 = vrot.slane %v3076_v58, 4 }
 0x728   : > { %3737 = vst [vmem:[#allocation35_spill] sm:$0xff] %v3176_v51 }
 0x729   : > { %v587_v53 = vsel %vm585_vm2, %v3089_v39, %v582_v61 }
 0x72b   : > { %1589 = vrot.lane.b32.xlu1 %v1583_v52, %s2474_s24  ;;  %1558 = vrot.lane.b32.xlu0 %v1550_v9, %s2555_s17  ;;  %v1651_v9 = vrot.slane %v1644_v46, %v2809_v62  ;;  %v1619_v52 = vmul.f32 %v1616_v54, %v2886_v47  ;;  %v726_v46 = vrot.slane %v2943_v14, 4 }
 0x72c   : > { %v3182_v59 = vpop.permute.xlu0 %2038 }
 0x72d   : > { %3738 = vst [vmem:[#allocation36_spill] sm:$0xff] %v3182_v59  ;;  %v612_v59 = vrot.slane %v2961_v23, 4  ;;  %v1653_v55 = vmul.f32 %v1651_v9, %v2814_v1  ;;  %v1655_v54 = vmul.f32 %v1651_v9, %v2875_v38 }
 0x72f   : > { %1593 = vrot.lane.b32.xlu1 %v1585_v48, %s2474_s24  ;;  %1591 = vrot.lane.b32.xlu0 %v1584_v22, %s2474_s24  ;;  %v641_v48 = vrot.slane %v2963_v24, 4  ;;  %v584_v22 = vsel %vm583_vm15, %v581_v2, %v582_v61  ;;  %s2556_s24 = smov 35   ;;  %v613_v60 = vsel %vm583_vm15, %v611_v40, %v612_v59  ;;  %v1679_v2 = vpop.permute.xlu1 %1678 }
 0x730   : > { %v615_v39 = vsel %vm614_vm14, %v3076_v58, %v613_v60  ;;  %v1654_v60 = vmul.f32 %v1651_v9, %v2886_v47  ;;  %v1686_v58 = vrot.slane %v1679_v2, %v2809_v62  ;;  %v785_v9 = vrot.slane %v2973_v29, 4 }
 0x731   : > { %v549_v7 = vpop.permute.xlu0 %548  ;;  %v642_v40 = vsel %vm583_vm15, %v640_v6, %v641_v48  ;;  %v727_v6 = vrot.slane %v2969_v27, 4 }
 0x732   : > { %v556_v51 = vrot.slane %v549_v7, %v2809_v62  ;;  %v644_v61 = vsel %vm643_vm0, %v2936_v10, %v642_v40 }
 0x733   : > { %1626 = vrot.lane.b32.xlu1 %v1619_v52, %s2556_s24  ;;  %1624 = vrot.lane.b32.xlu0 %v1618_v44, %s2556_s24  ;;  %v586_v44 = vsel %vm585_vm2, %v2933_v8, %v584_v22  ;;  %v698_v52 = vrot.slane %v2967_v26, 4  ;;  %v671_v8 = vsel %vm583_vm15, %v669_v41, %v670_v3  ;;  %v1714_v41 = vpop.permute.xlu1 %1713  ;;  %vm1074_vm2 = vcmask 662528  }
 0x734   : > { %v558_v7 = vmul.f32 %v556_v51, %v2814_v1  ;;  %v559_v63 = vmul.f32 %v556_v51, %v2886_v47  ;;  %v616_v51 = vsel %vm614_vm14, %v2961_v23, %v612_v59  ;;  %v645_v23 = vsel %vm643_vm0, %v2963_v24, %v641_v48 }
 0x735   : > { %v672_v10 = vsel %vm448_vm6, %v2939_v11, %v671_v8  ;;  %v673_v24 = vsel %vm448_vm6, %v2965_v25, %v670_v3  ;;  %v1688_v11 = vmul.f32 %v1686_v58, %v2814_v1  ;;  %v1721_v25 = vrot.slane %v1714_v41, %v2809_v62 }
 0x736   : > { %v590_v45 = vadd.f32 %v586_v44, %v558_v7  ;;  %v591_v43 = vadd.f32 %v587_v53, %v559_v63  ;;  %v1689_v44 = vmul.f32 %v1686_v58, %v2886_v47  ;;  %v814_v3 = vrot.slane %v2975_v30, 4 }
 0x737   : > { %1628 = vrot.lane.b32.xlu0 %v1620_v49, %s2556_s24  ;;  %1659 = vrot.lane.b32.xlu1 %v1653_v55, %s2557_s19  ;;  %v699_v49 = vsel %vm583_vm15, %v697_v13, %v698_v52  ;;  %v756_v55 = vrot.slane %v2971_v28, 4  ;;  %v728_v13 = vsel %vm583_vm15, %v726_v46, %v727_v6  ;;  %v731_v1 = vsel %vm729_vm3, %v2969_v27, %v727_v6 }
 0x738   : > { %v619_v53 = vadd.f32 %v615_v39, %v590_v45  ;;  %v620_v63 = vadd.f32 %v616_v51, %v591_v43  ;;  %v784_v45 = vrot.slane %v2947_v16, 4  ;;  %v702_v43 = vsel %vm700_vm1, %v2967_v26, %v698_v52 }
 0x739   : > { %v701_v7 = vsel %vm700_vm1, %v2941_v12, %v699_v49  ;;  %v757_v26 = vsel %vm583_vm15, %v755_v42, %v756_v55  ;;  %v813_v52 = vrot.slane %v2949_v17, 4  ;;  %v842_v51 = vrot.slane %v2951_v18, 4 }
 0x73a   : > { %v648_v59 = vadd.f32 %v644_v61, %v619_v53  ;;  %v649_v22 = vadd.f32 %v645_v23, %v620_v63  ;;  %v730_v12 = vsel %vm729_vm3, %v2943_v14, %v728_v13  ;;  %v786_v42 = vsel %vm583_vm15, %v784_v45, %v785_v9  ;;  %v3264_v61 = vld [vmem:[#allocation2] sm:$0xff] }
 0x73b   : > { %1661 = vrot.lane.b32.xlu0 %v1654_v60, %s2557_s19  ;;  %1663 = vrot.lane.b32.xlu1 %v1655_v54, %s2557_s19  ;;  %v843_v39 = vrot.slane %v2977_v31, 4  ;;  %v759_v53 = vsel %vm758_vm4, %v2945_v15, %v757_v26  ;;  %v760_v63 = vsel %vm758_vm4, %v2971_v28, %v756_v55  ;;  %v1690_v14 = vmul.f32 %v1686_v58, %v2875_v38 }
 0x73c   : > { %v676_v48 = vadd.f32 %v672_v10, %v648_v59  ;;  %v677_v2 = vadd.f32 %v673_v24, %v649_v22  ;;  %v1723_v27 = vmul.f32 %v3264_v61, %v1721_v25  ;;  %v815_v6 = vsel %vm583_vm15, %v813_v52, %v814_v3 }
 0x73d   : > { %v872_v23 = vrot.slane %v2979_v32, 4  ;;  %v871_v41 = vrot.slane %v2953_v19, 4  ;;  %v788_v15 = vsel %vm787_vm5, %v2947_v16, %v786_v42  ;;  %v789_v28 = vsel %vm787_vm5, %v2973_v29, %v785_v9  ;;  %v1784_v9 = vpop.permute.xlu1 %1783 }
 0x73e   : > { %v705_v46 = vadd.f32 %v701_v7, %v676_v48  ;;  %v706_v40 = vadd.f32 %v702_v43, %v677_v2  ;;  %v1725_v58 = vmul.f32 %v1721_v25, %v2875_v38  ;;  %v844_v55 = vsel %vm583_vm15, %v842_v51, %v843_v39 }
 0x73f   : > { %1694 = vrot.lane.b32.xlu0 %v1688_v11, %s2481_s4  ;;  %1696 = vrot.lane.b32.xlu1 %v1689_v44, %s2481_s4  ;;  %v901_v59 = vrot.slane %v2981_v33, 4  ;;  %v817_v10 = vsel %vm816_vm7, %v2949_v17, %v815_v6  ;;  %v818_v16 = vsel %vm816_vm7, %v2975_v30, %v814_v3  ;;  %v1756_v29 = vrot.slane %v3166_v57, %v2809_v62 }
 0x740   : > { %v734_v54 = vadd.f32 %v730_v12, %v705_v46  ;;  %v735_v8 = vadd.f32 %v731_v1, %v706_v40  ;;  %v1724_v24 = vmul.f32 %v1721_v25, %v2886_v47  ;;  %v900_v43 = vrot.slane %v2955_v20, 4 }
 0x741   : > { %v873_v13 = vsel %vm583_vm15, %v871_v41, %v872_v23  ;;  %v846_v7 = vsel %vm845_vm8, %v2951_v18, %v844_v55  ;;  %v847_v17 = vsel %vm845_vm8, %v2977_v31, %v843_v39  ;;  %v930_v57 = vrot.slane %v2983_v34, 4 }
 0x742   : > { %v763_v60 = vadd.f32 %v759_v53, %v734_v54  ;;  %v764_v49 = vadd.f32 %v760_v63, %v735_v8  ;;  %v902_v30 = vsel %vm583_vm15, %v900_v43, %v901_v59  ;;  %v875_v25 = vsel %vm874_vm9, %v2953_v19, %v873_v13  ;;  %v3315_v8 = vld [vmem:[#allocation2 + $0x10] sm:$0xf] }
 0x743   : > { %1698 = vrot.lane.b32.xlu0 %v1690_v14, %s2481_s4  ;;  %1729 = vrot.lane.b32.xlu1 %v1723_v27, %s2558_s20  ;;  %v1758_v26 = vmul.f32 %v3264_v61, %v1756_v29  ;;  %v1759_v18 = vmul.f32 %v1756_v29, %v2886_v47  ;;  %v1791_v31 = vrot.slane %v1784_v9, %v2809_v62  ;;  %v929_v3 = vrot.slane %v2957_v21, 4  ;;  %s2559_s4 = smov 16   ;;  %v3741_v9 = vld [vmem:[#allocation3_spill] sm:$0xff] }
 0x744   : > { %v792_v22 = vadd.f32 %v788_v15, %v763_v60  ;;  %v793_v45 = vadd.f32 %v789_v28, %v764_v49  ;;  %v876_v40 = vsel %vm874_vm9, %v2979_v32, %v872_v23  ;;  %v904_v52 = vsel %vm903_vm10, %v2955_v20, %v902_v30  ;;  %v1819_v32 = vpop.permute.xlu1 %1818 }
 0x745   : > { %v931_v19 = vsel %vm583_vm15, %v929_v3, %v930_v57  ;;  %v966_v51 = vrot.slane %v2985_v35, 4  ;;  %v1760_v1 = vmul.f32 %v1756_v29, %v2875_v38  ;;  %v1793_v42 = vmul.f32 %v3264_v61, %v1791_v31  ;;  %v3740_v29 = vld [vmem:[#allocation12_spill] sm:$0xff] }
 0x746   : > { %v821_v48 = vadd.f32 %v817_v10, %v792_v22  ;;  %v822_v2 = vadd.f32 %v818_v16, %v793_v45  ;;  %v965_v39 = vrot.slane %v2959_v5, 4  ;;  %v905_v20 = vsel %vm903_vm10, %v2981_v33, %v901_v59  ;;  %v3321_v33 = vld [vmem:[#allocation2 + $0x8] sm:$0xff]  ;;  %v3744_v3 = vld [vmem:[#allocation4_spill] sm:$0xff] }
 0x747   : > { %1731 = vrot.lane.b32.xlu0 %v1724_v24, %s2558_s20  ;;  %1733 = vrot.lane.b32.xlu1 %v1725_v58, %s2558_s20  ;;  %v933_v54 = vsel %vm932_vm11, %v2957_v21, %v931_v19  ;;  %v1795_v53 = vmul.f32 %v3315_v8, %v1791_v31  ;;  %v1001_v63 = vrot.slane %v2987_v36, 4  ;;  %v967_v6 = vrot.slane %v3067_v50, 4  ;;  %v3739_v22 = vld [vmem:[#allocation34_spill] sm:$0xff] }
 0x748   : > { %v850_v11 = vadd.f32 %v846_v7, %v821_v48  ;;  %v851_v44 = vadd.f32 %v847_v17, %v822_v2  ;;  %v968_v38 = vsel %vm583_vm15, %v965_v39, %v966_v51  ;;  %v1794_v21 = vmul.f32 %v3321_v33, %v1791_v31  ;;  %v3742_v2 = vld [vmem:[#allocation13_spill] sm:$0xff]  ;;  %v3746_v39 = vld [vmem:[#allocation16_spill] sm:$0xff] }
 0x749   : > { %v1826_v23 = vrot.slane %v1819_v32, %v2809_v62  ;;  %v1002_v60 = vrot.slane %v3072_v56, 4  ;;  %v1000_v49 = vrot.slane %v3081_v0, 4  ;;  %v934_v41 = vsel %vm932_vm11, %v2983_v34, %v930_v57 }
 0x74a   : > { %v879_v46 = vadd.f32 %v875_v25, %v850_v11  ;;  %v880_v47 = vadd.f32 %v876_v40, %v851_v44  ;;  %v970_v15 = vsel %vm969_vm12, %v2959_v5, %v968_v38  ;;  %v971_v28 = vsel %vm583_vm15, %v966_v51, %v967_v6  ;;  %v3745_v40 = vld [vmem:[#allocation15_spill] sm:$0xff] }
 0x74b   : > { %1766 = vrot.lane.b32.xlu1 %v1759_v18, %s2559_s4  ;;  %1764 = vrot.lane.b32.xlu0 %v1758_v26, %s2559_s4  ;;  %v1036_v50 = vrot.slane %v2989_v37, 4  ;;  %vm1004_vm14 = vcmask 678912   ;;  %v1003_v58 = vsel %vm583_vm15, %v1000_v49, %v1001_v63  ;;  %v1035_v56 = vrot.slane %v3085_v4, 4  ;;  %v3743_v26 = vld [vmem:[#allocation14_spill] sm:$0xff] }
 0x74c   : > { %v908_v12 = vadd.f32 %v904_v52, %v879_v46  ;;  %v909_v14 = vadd.f32 %v905_v20, %v880_v47  ;;  %v1861_v45 = vrot.slane %v3739_v22, %v2809_v62  ;;  %v1828_v34 = vmul.f32 %v3264_v61, %v1826_v23 }
 0x74d   : > { %v1829_v5 = vmul.f32 %v3321_v33, %v1826_v23  ;;  %v972_v10 = vsel %vm969_vm12, %v2985_v35, %v971_v28  ;;  %v1006_v16 = vsel %vm583_vm15, %v1001_v63, %v1002_v60  ;;  %v1037_v24 = vrot.slane %v3740_v29, 4  ;;  %v1889_v35 = vpop.permute.xlu1 %1888  ;;  %v3748_v63 = vld [vmem:[#allocation17_spill] sm:$0xff] }
 0x74e   : > { %v937_v27 = vadd.f32 %v933_v54, %v908_v12  ;;  %v938_v55 = vadd.f32 %v934_v41, %v909_v14  ;;  %vm1039_vm0 = vcmask 670720   ;;  %v1005_v43 = vsel %vm1004_vm14, %v3081_v0, %v1003_v58  ;;  %v3750_v58 = vld [vmem:[#allocation6_spill] sm:$0xff] }
 0x74f   : > { %1799 = vrot.lane.b32.xlu1 %v1793_v42, %s2560_s21  ;;  %1768 = vrot.lane.b32.xlu0 %v1760_v1, %s2559_s4  ;;  %v1038_v13 = vsel %vm583_vm15, %v1035_v56, %v1036_v50  ;;  %v1071_v48 = vrot.slane %v3741_v9, 4  ;;  %v1070_v7 = vrot.slane %v3742_v2, 4  ;;  %v1007_v57 = vsel %vm1004_vm14, %v2987_v36, %v1006_v16 }
 0x750   : > { %v975_v59 = vadd.f32 %v970_v15, %v937_v27  ;;  %v976_v17 = vadd.f32 %v972_v10, %v938_v55  ;;  %v1863_v11 = vmul.f32 %v3264_v61, %v1861_v45  ;;  %v1830_v0 = vmul.f32 %v3315_v8, %v1826_v23  ;;  %v3749_v15 = vld [vmem:[#allocation18_spill] sm:$0xff] }
 0x751   : > { %v1040_v44 = vsel %vm1039_vm0, %v3085_v4, %v1038_v13  ;;  %v1041_v25 = vsel %vm583_vm15, %v1036_v50, %v1037_v24  ;;  %v1072_v18 = vrot.slane %v3743_v26, 4  ;;  %v1073_v31 = vsel %vm583_vm15, %v1070_v7, %v1071_v48  ;;  %v1926_v20 = vpop.permute.xlu1 %1925  ;;  %v3753_v13 = vld [vmem:[#allocation20_spill] sm:$0xff] }
 0x752   : > { %v1010_v30 = vadd.f32 %v1005_v43, %v975_v59  ;;  %v1106_v46 = vrot.slane %v3744_v3, 4  ;;  %v1105_v52 = vrot.slane %v3745_v40, 4  ;;  %v1865_v36 = vmul.f32 %v3315_v8, %v1861_v45 }
 0x753   : > { %1803 = vrot.lane.b32.xlu1 %v1795_v53, %s2560_s21  ;;  %1801 = vrot.lane.b32.xlu0 %v1794_v21, %s2560_s21  ;;  %v1011_v51 = vadd.f32 %v1007_v57, %v976_v17  ;;  %v1864_v4 = vmul.f32 %v3321_v33, %v1861_v45  ;;  %v1896_v47 = vrot.slane %v1889_v35, %v2809_v62  ;;  %v1107_v32 = vrot.slane %v3746_v39, 4  ;;  %v3747_v53 = vld [vmem:[#allocation5_spill] sm:$0xff] }
 0x754   : > { %v1045_v19 = vadd.f32 %v1040_v44, %v1010_v30  ;;  %v1042_v12 = vsel %vm1039_vm0, %v2989_v37, %v1041_v25  ;;  %v1075_v1 = vsel %vm1074_vm2, %v3742_v2, %v1073_v31  ;;  %v1076_v42 = vsel %vm583_vm15, %v1071_v48, %v1072_v18  ;;  %v3754_v2 = vld [vmem:[#allocation7_spill] sm:$0xff]  ;;  %v3755_v17 = vld [vmem:[#allocation21_spill] sm:$0xff]  ;;  %v3756_v31 = vld [vmem:[#allocation22_spill] sm:$0xff] }
 0x755   : > { %vm1109_vm4 = vcmask 654336   ;;  %v1108_v54 = vsel %vm583_vm15, %v1105_v52, %v1106_v46  ;;  %v1141_v38 = vrot.slane %v3747_v53, 4  ;;  %v1140_v14 = vrot.slane %v3748_v63, 4  ;;  %v1982_v56 = vpop.permute.xlu1 %1981  ;;  %v3757_v52 = vld [vmem:[#allocation8_spill] sm:$0xff] }
 0x756   : > { %v1080_v27 = vadd.f32 %v1075_v1, %v1045_v19  ;;  %v1046_v6 = vadd.f32 %v1042_v12, %v1011_v51  ;;  %v1898_v37 = vmul.f32 %v3264_v61, %v1896_v47  ;;  %v1899_v21 = vmul.f32 %v3321_v33, %v1896_v47  ;;  %v3751_v61 = vld [vmem:[#allocation19_spill] sm:$0xff]  ;;  %v3386_v33 = vld [vmem:[#allocation2 + $0x4] sm:$0xff] }
 0x757   : > { %1836 = vrot.lane.b32.xlu1 %v1829_v5, %s2475_s25  ;;  %1834 = vrot.lane.b32.xlu0 %v1828_v34, %s2475_s25  ;;  %v1933_v23 = vrot.slane %v1926_v20, %v2809_v62  ;;  %v1077_v60 = vsel %vm1074_vm2, %v3741_v9, %v1076_v42  ;;  %v1110_v49 = vsel %vm1109_vm4, %v3745_v40, %v1108_v54  ;;  %v1142_v28 = vrot.slane %v3749_v15, 4  ;;  %v3752_v34 = vld [vmem:[#allocation35_spill] sm:$0xff]  ;;  %v3759_v54 = vld [vmem:[#allocation24_spill] sm:$0xff] }
 0x758   : > { %v1111_v41 = vsel %vm583_vm15, %v1106_v46, %v1107_v32  ;;  %vm1144_vm5 = vcmask 646144   ;;  %v1143_v50 = vsel %vm583_vm15, %v1140_v14, %v1141_v38  ;;  %v1176_v55 = vrot.slane %v3750_v58, 4  ;;  %v3758_v19 = vld [vmem:[#allocation23_spill] sm:$0xff] }
 0x759   : > { %v1175_v59 = vrot.slane %v3751_v61, 4  ;;  %v1115_v22 = vadd.f32 %v1110_v49, %v1080_v27  ;;  %v1081_v45 = vadd.f32 %v1077_v60, %v1046_v6  ;;  %v1961_v5 = vrot.slane %v3752_v34, %v2809_v62  ;;  %v2010_v46 = vpop.permute.xlu1 %2009  ;;  %v3761_v27 = vld [vmem:[#allocation25_spill] sm:$0xff]  ;;  %v3762_v60 = vld [vmem:[#allocation36_spill] sm:$0xff] }
 0x75a   : > { %v1900_v10 = vmul.f32 %v3315_v8, %v1896_v47  ;;  %v1935_v16 = vmul.f32 %v1933_v23, %v3386_v33  ;;  %v1112_v29 = vsel %vm1109_vm4, %v3744_v3, %v1111_v41  ;;  %v1145_v24 = vsel %vm1144_vm5, %v3748_v63, %v1143_v50  ;;  %v3402_v8 = vld [vmem:[#allocation2 + $0xc] sm:$0xff]  ;;  %v3760_v63 = vld [vmem:[#allocation9_spill] sm:$0xff] }
 0x75b   : > { %1838 = vrot.lane.b32.xlu0 %v1830_v0, %s2475_s25  ;;  %1869 = vrot.lane.b32.xlu1 %v1863_v11, %s2561_s23  ;;  %s2562_s25 = smov 12   ;;  %v1146_v43 = vsel %vm583_vm15, %v1141_v38, %v1142_v28  ;;  %v1177_v9 = vrot.slane %v3753_v13, 4  ;;  %vm1179_vm7 = vcmask 637952   ;;  %v1178_v48 = vsel %vm583_vm15, %v1175_v59, %v1176_v55 }
 0x75c   : > { %v1211_v7 = vrot.slane %v3754_v2, 4  ;;  %v1210_v35 = vrot.slane %v3755_v17, 4  ;;  %v1150_v30 = vadd.f32 %v1145_v24, %v1115_v22  ;;  %v1116_v57 = vadd.f32 %v1112_v29, %v1081_v45  ;;  %v3765_v45 = vld [vmem:[#allocation27_spill] sm:$0xff] }
 0x75d   : > { %v1963_v11 = vmul.f32 %v1961_v5, %v3386_v33  ;;  %v1936_v0 = vmul.f32 %v1933_v23, %v3402_v8  ;;  %v1989_v44 = vrot.slane %v1982_v56, %v2809_v62  ;;  %v1147_v25 = vsel %vm1144_vm5, %v3747_v53, %v1146_v43  ;;  %v3764_v56 = vld [vmem:[#allocation10_spill] sm:$0xff] }
 0x75e   : > { %v1180_v26 = vsel %vm1179_vm7, %v3751_v61, %v1178_v48  ;;  %v1181_v18 = vsel %vm583_vm15, %v1176_v55, %v1177_v9  ;;  %v1212_v3 = vrot.slane %v3756_v31, 4  ;;  %vm1214_vm9 = vcmask 506880   ;;  %v3763_v55 = vld [vmem:[#allocation26_spill] sm:$0xff] }
 0x75f   : > { %1871 = vrot.lane.b32.xlu0 %v1864_v4, %s2561_s23  ;;  %1873 = vrot.lane.b32.xlu1 %v1865_v36, %s2561_s23  ;;  %v1213_v40 = vsel %vm583_vm15, %v1210_v35, %v1211_v7  ;;  %v1246_v36 = vrot.slane %v3757_v52, 4  ;;  %v1245_v51 = vrot.slane %v3758_v19, 4  ;;  %v1185_v4 = vadd.f32 %v1180_v26, %v1150_v30  ;;  %v3767_v35 = vld [vmem:[#allocation11_spill] sm:$0xff] }
 0x760   : > { %v1151_v47 = vadd.f32 %v1147_v25, %v1116_v57  ;;  %v1964_v12 = vmul.f32 %v1961_v5, %v3402_v8  ;;  %v1991_v1 = vmul.f32 %v1989_v44, %v3386_v33  ;;  %v2017_v42 = vrot.slane %v2010_v46, %v2809_v62  ;;  %v3768_v57 = vld [vmem:[#allocation29_spill] sm:$0xff] }
 0x761   : > { %v1182_v39 = vsel %vm1179_vm7, %v3750_v58, %v1181_v18  ;;  %v1215_v32 = vsel %vm1214_vm9, %v3755_v17, %v1213_v40  ;;  %v1216_v20 = vsel %vm583_vm15, %v1211_v7, %v1212_v3  ;;  %v1247_v53 = vrot.slane %v3759_v54, 4  ;;  %v3766_v7 = vld [vmem:[#allocation28_spill] sm:$0xff] }
 0x762   : > { %vm1249_vm10 = vcmask 498688   ;;  %v1248_v38 = vsel %vm583_vm15, %v1245_v51, %v1246_v36  ;;  %v1281_v14 = vrot.slane %v3760_v63, 4  ;;  %v1280_v6 = vrot.slane %v3761_v27, 4 }
 0x763   : > { %1904 = vrot.lane.b32.xlu0 %v1898_v37, %s2562_s25  ;;  %1906 = vrot.lane.b32.xlu1 %v1899_v21, %s2562_s25  ;;  %v2067_v37 = vpop.permute.xlu1 %2066  ;;  %v1220_v21 = vadd.f32 %v1215_v32, %v1185_v4  ;;  %v1186_v23 = vadd.f32 %v1182_v39, %v1151_v47  ;;  %v2046_v49 = vrot.slane %v3762_v60, %v2809_v62  ;;  %v1282_v61 = vrot.slane %v3763_v55, 4 }
 0x764   : > { %v1992_v41 = vmul.f32 %v1989_v44, %v3402_v8  ;;  %v2019_v15 = vmul.f32 %v2017_v42, %v3386_v33  ;;  %v1217_v28 = vsel %vm1214_vm9, %v3754_v2, %v1216_v20  ;;  %v1250_v50 = vsel %vm1249_vm10, %v3758_v19, %v1248_v38  ;;  %v3770_v19 = vld [vmem:[#allocation32_spill] sm:$0xff] }
 0x765   : > { %v1251_v58 = vsel %vm583_vm15, %v1246_v36, %v1247_v53  ;;  %vm1284_vm11 = vcmask 490496   ;;  %v1283_v59 = vsel %vm583_vm15, %v1280_v6, %v1281_v14  ;;  %v1316_v22 = vrot.slane %v3764_v56, 4  ;;  %v3772_v53 = vld [vmem:[#allocation33_spill] sm:$0xff] }
 0x766   : > { %v1315_v34 = vrot.slane %v3765_v45, 4  ;;  %v1255_v5 = vadd.f32 %v1250_v50, %v1220_v21  ;;  %v2020_v29 = vmul.f32 %v2017_v42, %v3402_v8  ;;  %v2074_v24 = vrot.slane %v2067_v37, %v2809_v62 }
 0x767   : > { %1908 = vrot.lane.b32.xlu0 %v1900_v10, %s2562_s25  ;;  %1939 = vrot.lane.b32.xlu1 %v1935_v16, %s2478_s28  ;;  %v1221_v10 = vadd.f32 %v1217_v28, %v1186_v23  ;;  %v2048_v16 = vmul.f32 %v2046_v49, %v3386_v33  ;;  %v1252_v43 = vsel %vm1249_vm10, %v3757_v52, %v1251_v58  ;;  %vm1319_vm12 = vcmask 482304   ;;  %v2096_v48 = vpop.permute.xlu1 %2095  ;;  %v3769_v52 = vld [vmem:[#allocation30_spill] sm:$0xff] }
 0x768   : > { %v1285_v13 = vsel %vm1284_vm11, %v3761_v27, %v1283_v59  ;;  %v1286_v9 = vsel %vm583_vm15, %v1281_v14, %v1282_v61  ;;  %v1318_v2 = vsel %vm583_vm15, %v1315_v34, %v1316_v22  ;;  %v1317_v17 = vrot.slane %v3766_v7, 4 }
 0x769   : > { %v1351_v30 = vrot.slane %v3767_v35, 4  ;;  %v1256_v44 = vadd.f32 %v1252_v43, %v1221_v10  ;;  %v2049_v25 = vmul.f32 %v2046_v49, %v3402_v8  ;;  %v2076_v26 = vmul.f32 %v2074_v24, %v3386_v33 }
 0x76a   : > { %v2103_v18 = vrot.slane %v2096_v48, %v2809_v62  ;;  %v1287_v31 = vsel %vm1284_vm11, %v3760_v63, %v1286_v9  ;;  %v1320_v3 = vsel %vm1319_vm12, %v3765_v45, %v1318_v2  ;;  %v1321_v46 = vsel %vm583_vm15, %v1316_v22, %v1317_v17  ;;  %v3771_v62 = vld [vmem:[#allocation31_spill] sm:$0xff] }
 0x76b   : > { %1941 = vrot.lane.b32.xlu0 %v1936_v0, %s2478_s28  ;;  %1967 = vrot.lane.b32.xlu1 %v1963_v11, %s2502_s11  ;;  %s2563_s28 = smov 121   ;;  %v1350_v11 = vrot.slane %v3768_v57, 4  ;;  %v1290_v0 = vadd.f32 %v1285_v13, %v1255_v5  ;;  %vm1354_vm14 = vcmask 474112   ;;  %v1352_v36 = vrot.slane %v3769_v52, 4 }
 0x76c   : > { %v1386_v51 = vrot.slane %v3770_v19, 4  ;;  %v1385_v4 = vrot.slane %v3771_v62, 4  ;;  %v2105_v42 = vmul.f32 %v2103_v18, %v3386_v33  ;;  %v1322_v39 = vsel %vm1319_vm12, %v3764_v56, %v1321_v46 }
 0x76d   : > { %v1353_v40 = vsel %vm583_vm15, %v1350_v11, %v1351_v30  ;;  %v1325_v47 = vadd.f32 %v1320_v3, %v1290_v0  ;;  %v1356_v20 = vsel %vm583_vm15, %v1351_v30, %v1352_v36  ;;  %vm1389_vm0 = vcmask 465920  }
 0x76e   : > { %v1355_v32 = vsel %vm1354_vm14, %v3768_v57, %v1353_v40  ;;  %v1388_v54 = vsel %vm583_vm15, %v1385_v4, %v1386_v51  ;;  %v1387_v38 = vrot.slane %v3772_v53, 4  ;;  %v2106_v33 = vmul.f32 %v2103_v18, %v3402_v8 }
 0x76f   : > { %1969 = vrot.lane.b32.xlu0 %v1964_v12, %s2502_s11  ;;  %1995 = vrot.lane.b32.xlu1 %v1991_v1, %s2503_s14  ;;  %s2564_s11 = smov 119   ;;  %v1291_v12 = vadd.f32 %v1287_v31, %v1256_v44  ;;  %v2077_v1 = vmul.f32 %v2074_v24, %v3402_v8  ;;  %v1360_v63 = vadd.f32 %v1355_v32, %v1325_v47  ;;  %vm1424_vm2 = vcmask 457728  }
 0x770   : > { %v1357_v23 = vsel %vm1354_vm14, %v3767_v35, %v1356_v20  ;;  %v1390_v60 = vsel %vm1389_vm0, %v3771_v62, %v1388_v54  ;;  %v1391_v49 = vsel %vm583_vm15, %v1386_v51, %v1387_v38  ;;  %vm1459_vm5 = vcmask 326656  }
 0x771   : > { %v1326_v14 = vadd.f32 %v1322_v39, %v1291_v12  ;;  %v1392_v59 = vsel %vm1389_vm0, %v3770_v19, %v1391_v49  ;;  %vm1494_vm7 = vcmask 318464   ;;  %vm1529_vm9 = vcmask 310272  }
 0x772   : > { %vm1564_vm10 = vcmask 302080   ;;  %vm1599_vm11 = vcmask 293888   ;;  %vm1634_vm12 = vcmask 285696   ;;  %vm1669_vm14 = vcmask 277504  }
 0x773   : > { %1997 = vrot.lane.b32.xlu0 %v1992_v41, %s2503_s14  ;;  %2023 = vrot.lane.b32.xlu1 %v2019_v15, %s2563_s28  ;;  %v1395_v41 = vadd.f32 %v1390_v60, %v1360_v63  ;;  %v1361_v28 = vadd.f32 %v1357_v23, %v1326_v14  ;;  %vm1704_vm0 = vcmask 146432   ;;  %s2566_s14 = smov 11  }
 0x775   : > { %v1396_v22 = vadd.f32 %v1392_v59, %v1361_v28 }
 0x777   : > { %2025 = vrot.lane.b32.xlu0 %v2020_v29, %s2563_s28  ;;  %2052 = vrot.lane.b32.xlu1 %v2048_v16, %s2472_s22 }
 0x77b   : > { %2054 = vrot.lane.b32.xlu0 %v2049_v25, %s2472_s22  ;;  %2080 = vrot.lane.b32.xlu1 %v2076_v26, %s2564_s11  ;;  %s2565_s22 = smov 118  }
 0x77f   : > { %2082 = vrot.lane.b32.xlu0 %v2077_v1, %s2564_s11  ;;  %2109 = vrot.lane.b32.xlu1 %v2105_v42, %s2565_s22 }
 0x781   : > { %v1417_v27 = vpop.permute.xlu1 %1416  ;;  %v1415_v6 = vpop.permute.xlu0 %1414 }
 0x782   : > { %v1421_v37 = vrot.slane %v1417_v27, 4  ;;  %v1420_v21 = vrot.slane %v1415_v6, 4 }
 0x783   : > { %2111 = vrot.lane.b32.xlu0 %v2106_v33, %s2565_s22 }
 0x784   : > { %v1423_v15 = vsel %vm583_vm15, %v1420_v21, %v1421_v37 }
 0x785   : > { %v1425_v8 = vsel %vm1424_vm2, %v1415_v6, %v1423_v15  ;;  %v1450_v50 = vpop.permute.xlu1 %1449  ;;  %v1419_v58 = vpop.permute.xlu0 %1418 }
 0x786   : > { %v1430_v55 = vadd.f32 %v1425_v8, %v1395_v41  ;;  %v1422_v61 = vrot.slane %v1419_v58, 4  ;;  %v1455_v10 = vrot.slane %v1450_v50, 4 }
 0x788   : > { %v1426_v56 = vsel %vm583_vm15, %v1421_v37, %v1422_v61 }
 0x789   : > { %v1454_v45 = vpop.permute.xlu1 %1453  ;;  %v1427_v34 = vsel %vm1424_vm2, %v1417_v27, %v1426_v56  ;;  %v1452_v5 = vpop.permute.xlu0 %1451  ;;  %vm1739_vm2 = vcmask 138240  }
 0x78a   : > { %v1457_v16 = vrot.slane %v1454_v45, 4  ;;  %v1431_v29 = vadd.f32 %v1427_v34, %v1396_v22  ;;  %v1456_v24 = vrot.slane %v1452_v5, 4 }
 0x78c   : > { %v1458_v43 = vsel %vm583_vm15, %v1455_v10, %v1456_v24  ;;  %v1461_v13 = vsel %vm583_vm15, %v1456_v24, %v1457_v16 }
 0x78d   : > { %v1462_v9 = vsel %vm1459_vm5, %v1452_v5, %v1461_v13  ;;  %v1487_v48 = vpop.permute.xlu1 %1486  ;;  %v1460_v2 = vsel %vm1459_vm5, %v1450_v50, %v1458_v43  ;;  %v1485_v7 = vpop.permute.xlu0 %1484  ;;  %vm1774_vm5 = vcmask 130048  }
 0x78e   : > { %v1466_v17 = vadd.f32 %v1462_v9, %v1431_v29  ;;  %v1491_v35 = vrot.slane %v1487_v48, 4  ;;  %v1465_v30 = vadd.f32 %v1460_v2, %v1430_v55  ;;  %v1490_v57 = vrot.slane %v1485_v7, 4 }
 0x790   : > { %v1493_v11 = vsel %vm583_vm15, %v1490_v57, %v1491_v35 }
 0x791   : > { %v1495_v0 = vsel %vm1494_vm7, %v1485_v7, %v1493_v11  ;;  %v1520_v44 = vpop.permute.xlu1 %1519  ;;  %v1489_v25 = vpop.permute.xlu0 %1488 }
 0x792   : > { %v1500_v26 = vadd.f32 %v1495_v0, %v1465_v30  ;;  %v1492_v18 = vrot.slane %v1489_v25, 4  ;;  %v1525_v15 = vrot.slane %v1520_v44, 4 }
 0x794   : > { %v1496_v31 = vsel %vm583_vm15, %v1491_v35, %v1492_v18 }
 0x795   : > { %v1524_v3 = vpop.permute.xlu1 %1523  ;;  %v1497_v46 = vsel %vm1494_vm7, %v1487_v48, %v1496_v31  ;;  %v1522_v40 = vpop.permute.xlu0 %1521  ;;  %vm1809_vm7 = vcmask 121856  }
 0x796   : > { %v1501_v52 = vadd.f32 %v1497_v46, %v1466_v17  ;;  %v1527_v23 = vrot.slane %v1524_v3, 4  ;;  %v1526_v60 = vrot.slane %v1522_v40, 4 }
 0x798   : > { %v1528_v58 = vsel %vm583_vm15, %v1525_v15, %v1526_v60  ;;  %v1531_v55 = vsel %vm583_vm15, %v1526_v60, %v1527_v23 }
 0x799   : > { %v1557_v36 = vpop.permute.xlu1 %1556  ;;  %v1555_v19 = vpop.permute.xlu0 %1554  ;;  %v1532_v34 = vsel %vm1529_vm9, %v1522_v40, %v1531_v55  ;;  %v1530_v5 = vsel %vm1529_vm9, %v1520_v44, %v1528_v58  ;;  %vm1844_vm9 = vcmask 113664  }
 0x79a   : > { %v1561_v28 = vrot.slane %v1557_v36, 4  ;;  %v1560_v8 = vrot.slane %v1555_v19, 4  ;;  %v1536_v7 = vadd.f32 %v1532_v34, %v1501_v52  ;;  %v1535_v17 = vadd.f32 %v1530_v5, %v1500_v26 }
 0x79c   : > { %v1563_v22 = vsel %vm583_vm15, %v1560_v8, %v1561_v28 }
 0x79d   : > { %v1590_v51 = vpop.permute.xlu1 %1589  ;;  %v1559_v62 = vpop.permute.xlu0 %1558  ;;  %v1565_v9 = vsel %vm1564_vm10, %v1555_v19, %v1563_v22 }
 0x79e   : > { %v1562_v50 = vrot.slane %v1559_v62, 4  ;;  %v1595_v45 = vrot.slane %v1590_v51, 4  ;;  %v1570_v44 = vadd.f32 %v1565_v9, %v1535_v17 }
 0x7a0   : > { %v1566_v10 = vsel %vm583_vm15, %v1561_v28, %v1562_v50 }
 0x7a1   : > { %v1594_v4 = vpop.permute.xlu1 %1593  ;;  %v3499_v47 = vpop.permute.xlu0 %1591  ;;  %v1567_v35 = vsel %vm1564_vm10, %v1557_v36, %v1566_v10  ;;  %vm1879_vm10 = vcmask 105472  }
 0x7a2   : > { %v1596_v61 = vrot.slane %v3499_v47, 4  ;;  %v1597_v16 = vrot.slane %v1594_v4, 4  ;;  %v1571_v3 = vadd.f32 %v1567_v35, %v1536_v7 }
 0x7a4   : > { %v1598_v29 = vsel %vm583_vm15, %v1595_v45, %v1596_v61  ;;  %v1601_v30 = vsel %vm583_vm15, %v1596_v61, %v1597_v16 }
 0x7a5   : > { %v3501_v12 = vpop.permute.xlu1 %1626  ;;  %v3503_v1 = vpop.permute.xlu0 %1624  ;;  %v1600_v57 = vsel %vm1599_vm11, %v1590_v51, %v1598_v29  ;;  %v1602_v40 = vsel %vm1599_vm11, %v3499_v47, %v1601_v30  ;;  %vm1914_vm11 = vcmask 97280  }
 0x7a6   : > { %v1631_v24 = vrot.slane %v3501_v12, 4  ;;  %v1630_v43 = vrot.slane %v3503_v1, 4  ;;  %v1605_v52 = vadd.f32 %v1600_v57, %v1570_v44  ;;  %v1606_v60 = vadd.f32 %v1602_v40, %v1571_v3 }
 0x7a8   : > { %v1633_v25 = vsel %vm583_vm15, %v1630_v43, %v1631_v24 }
 0x7a9   : > { %v3505_v42 = vpop.permute.xlu1 %1659  ;;  %v1629_v39 = vpop.permute.xlu0 %1628  ;;  %v1635_v51 = vsel %vm1634_vm12, %v3503_v1, %v1633_v25 }
 0x7aa   : > { %v1632_v13 = vrot.slane %v1629_v39, 4  ;;  %v1665_v36 = vrot.slane %v3505_v42, 4 }
 0x7ac   : > { %v1636_v18 = vsel %vm583_vm15, %v1631_v24, %v1632_v13 }
 0x7ad   : > { %v3507_v32 = vpop.permute.xlu1 %1663  ;;  %v3509_v20 = vpop.permute.xlu0 %1661  ;;  %v1637_v62 = vsel %vm1634_vm12, %v3501_v12, %v1636_v18  ;;  %v1640_v12 = vadd.f32 %v1635_v51, %v1605_v52  ;;  %vm2030_vm12 = vcmask 990208  }
 0x7ae   : > { %v1667_v11 = vrot.slane %v3507_v32, 4  ;;  %v1666_v0 = vrot.slane %v3509_v20, 4  ;;  %v1641_v58 = vadd.f32 %v1637_v62, %v1606_v60 }
 0x7b0   : > { %v1671_v4 = vsel %vm583_vm15, %v1666_v0, %v1667_v11  ;;  %v1668_v32 = vsel %vm583_vm15, %v1665_v36, %v1666_v0 }
 0x7b1   : > { %v3511_v54 = vpop.permute.xlu1 %1696  ;;  %v3513_v53 = vpop.permute.xlu0 %1694  ;;  %v1672_v28 = vsel %vm1669_vm14, %v3509_v20, %v1671_v4 }
 0x7b2   : > { %v1701_v19 = vrot.slane %v3511_v54, 4  ;;  %v1700_v39 = vrot.slane %v3513_v53, 4  ;;  %v1676_v5 = vadd.f32 %v1672_v28, %v1641_v58 }
 0x7b4   : > { %v1703_v55 = vsel %vm583_vm15, %v1700_v39, %v1701_v19 }
 0x7b5   : > { %v3515_v38 = vpop.permute.xlu1 %1729  ;;  %v3517_v63 = vpop.permute.xlu0 %1698 }
 0x7b6   : > { %v1702_v31 = vrot.slane %v3517_v63, 4  ;;  %v1735_v8 = vrot.slane %v3515_v38, 4 }
 0x7b8   : > { %v1706_v63 = vsel %vm583_vm15, %v1701_v19, %v1702_v31 }
 0x7b9   : > { %v3519_v14 = vpop.permute.xlu1 %1733  ;;  %v3521_v33 = vpop.permute.xlu0 %1731  ;;  %v1707_v61 = vsel %vm1704_vm0, %v3511_v54, %v1706_v63  ;;  %v1705_v54 = vsel %vm1704_vm0, %v3513_v53, %v1703_v55  ;;  %vm2191_vm0 = vcmask 523264  }
 0x7ba   : > { %v1737_v47 = vrot.slane %v3519_v14, 4  ;;  %v1736_v23 = vrot.slane %v3521_v33, 4  ;;  %v1670_v14 = vsel %vm1669_vm14, %v3505_v42, %v1668_v32  ;;  %v1711_v43 = vadd.f32 %v1707_v61, %v1676_v5 }
 0x7bb   : > { %v1675_v29 = vadd.f32 %v1670_v14, %v1640_v12  ;;  %vm2189_vm14 = vcmask 392192  }
 0x7bc   : > { %v1738_v22 = vsel %vm583_vm15, %v1735_v8, %v1736_v23  ;;  %v1741_v45 = vsel %vm583_vm15, %v1736_v23, %v1737_v47 }
 0x7bd   : > { %v3523_v27 = vpop.permute.xlu1 %1766  ;;  %v3525_v6 = vpop.permute.xlu0 %1764  ;;  %v1742_v13 = vsel %vm1739_vm2, %v3521_v33, %v1741_v45  ;;  %v1740_v9 = vsel %vm1739_vm2, %v3515_v38, %v1738_v22  ;;  %vm2196_vm2 = vcmask 916480  }
 0x7be   : > { %v1771_v34 = vrot.slane %v3523_v27, 4  ;;  %v1770_v20 = vrot.slane %v3525_v6, 4  ;;  %v1746_v44 = vadd.f32 %v1742_v13, %v1711_v43 }
 0x7c0   : > { %v1773_v7 = vsel %vm583_vm15, %v1770_v20, %v1771_v34 }
 0x7c1   : > { %v3527_v37 = vpop.permute.xlu1 %1799  ;;  %v3529_v21 = vpop.permute.xlu0 %1768  ;;  %v1775_v25 = vsel %vm1774_vm5, %v3525_v6, %v1773_v7 }
 0x7c2   : > { %v1772_v50 = vrot.slane %v3529_v21, 4  ;;  %v1805_v17 = vrot.slane %v3527_v37, 4 }
 0x7c4   : > { %v1776_v24 = vsel %vm583_vm15, %v1771_v34, %v1772_v50 }
 0x7c5   : > { %v3531_v49 = vpop.permute.xlu1 %1803  ;;  %v3533_v41 = vpop.permute.xlu0 %1801  ;;  %v1777_v30 = vsel %vm1774_vm5, %v3523_v27, %v1776_v24 }
 0x7c6   : > { %v1807_v21 = vrot.slane %v3531_v49, 4  ;;  %v1806_v10 = vrot.slane %v3533_v41, 4  ;;  %v1781_v40 = vadd.f32 %v1777_v30, %v1746_v44 }
 0x7c8   : > { %v1811_v57 = vsel %vm583_vm15, %v1806_v10, %v1807_v21  ;;  %v1808_v18 = vsel %vm583_vm15, %v1805_v17, %v1806_v10 }
 0x7c9   : > { %v3538_v59 = vpop.permute.xlu1 %1836  ;;  %v3540_v56 = vpop.permute.xlu0 %1834  ;;  %v1810_v32 = vsel %vm1809_vm7, %v3527_v37, %v1808_v18 }
 0x7ca   : > { %v1841_v35 = vrot.slane %v3538_v59, 4  ;;  %v1840_v53 = vrot.slane %v3540_v56, 4 }
 0x7cc   : > { %v1843_v52 = vsel %vm583_vm15, %v1840_v53, %v1841_v35 }
 0x7cd   : > { %v3548_v48 = vpop.permute.xlu1 %1869  ;;  %v3550_v2 = vpop.permute.xlu0 %1838  ;;  %v1845_v12 = vsel %vm1844_vm9, %v3540_v56, %v1843_v52 }
 0x7ce   : > { %v1842_v49 = vrot.slane %v3550_v2, 4  ;;  %v1710_v2 = vadd.f32 %v1705_v54, %v1675_v29  ;;  %v1875_v36 = vrot.slane %v3548_v48, 4 }
 0x7d0   : > { %v1846_v31 = vsel %vm583_vm15, %v1841_v35, %v1842_v49  ;;  %v1745_v3 = vadd.f32 %v1740_v9, %v1710_v2 }
 0x7d1   : > { %v3560_v26 = vpop.permute.xlu1 %1873  ;;  %v3562_v46 = vpop.permute.xlu0 %1871  ;;  %v1847_v63 = vsel %vm1844_vm9, %v3538_v59, %v1846_v31 }
 0x7d2   : > { %v1877_v33 = vrot.slane %v3560_v26, 4  ;;  %v1876_v11 = vrot.slane %v3562_v46, 4  ;;  %v1812_v26 = vsel %vm1809_vm7, %v3533_v41, %v1811_v57  ;;  %v1780_v39 = vadd.f32 %v1775_v25, %v1745_v3 }
 0x7d3   : > { %v1816_v41 = vadd.f32 %v1812_v26, %v1781_v40  ;;  %vm2194_vm7 = vcmask 785408  }
 0x7d4   : > { %v1881_v19 = vsel %vm583_vm15, %v1876_v11, %v1877_v33  ;;  %v1878_v47 = vsel %vm583_vm15, %v1875_v36, %v1876_v11  ;;  %v1815_v8 = vadd.f32 %v1810_v32, %v1780_v39 }
 0x7d5   : > { %v3578_v15 = vpop.permute.xlu1 %1906  ;;  %v3580_v1 = vpop.permute.xlu0 %1904  ;;  %v1882_v28 = vsel %vm1879_vm10, %v3562_v46, %v1881_v19  ;;  %v1851_v50 = vadd.f32 %v1847_v63, %v1816_v41  ;;  %v1880_v55 = vsel %vm1879_vm10, %v3548_v48, %v1878_v47 }
 0x7d6   : > { %v1911_v51 = vrot.slane %v3578_v15, 4  ;;  %v1910_v6 = vrot.slane %v3580_v1, 4  ;;  %v1850_v45 = vadd.f32 %v1845_v12, %v1815_v8 }
 0x7d7   : > { %v1886_v56 = vadd.f32 %v1882_v28, %v1851_v50 }
 0x7d8   : > { %v1913_v37 = vsel %vm583_vm15, %v1910_v6, %v1911_v51  ;;  %v1885_v21 = vadd.f32 %v1880_v55, %v1850_v45 }
 0x7d9   : > { %v3597_v42 = vpop.permute.xlu1 %1939  ;;  %v1909_v16 = vpop.permute.xlu0 %1908  ;;  %v1915_v46 = vsel %vm1914_vm11, %v3580_v1, %v1913_v37 }
 0x7da   : > { %v1912_v27 = vrot.slane %v1909_v16, 4  ;;  %v1943_v58 = vrot.slane %v3597_v42, 4  ;;  %v1920_v13 = vadd.f32 %v1915_v46, %v1885_v21 }
 0x7dc   : > { %v1916_v23 = vsel %vm583_vm15, %v1911_v51, %v1912_v27 }
 0x7dd   : > { %v1968_v38 = vpop.permute.xlu1 %1967  ;;  %v1942_v0 = vpop.permute.xlu0 %1941  ;;  %v1917_v61 = vsel %vm1914_vm11, %v3578_v15, %v1916_v23 }
 0x7de   : > { %v1944_v60 = vrot.slane %v1942_v0, 4  ;;  %v1971_v20 = vrot.slane %v1968_v38, 4  ;;  %v1921_v10 = vadd.f32 %v1917_v61, %v1886_v56 }
 0x7e0   : > { %v1945_v34 = vsel %vm583_vm15, %v1943_v58, %v1944_v60  ;;  %v1947_v16 = vsel %vm448_vm6, %v1942_v0, %v1944_v60 }
 0x7e1   : > { %v1996_v62 = vpop.permute.xlu1 %1995  ;;  %v1970_v4 = vpop.permute.xlu0 %1969  ;;  %v1946_v48 = vsel %vm448_vm6, %v3597_v42, %v1945_v34  ;;  %v1951_v17 = vadd.f32 %v1947_v16, %v1921_v10  ;;  %vm2087_vm6 = vcmask 973824  }
 0x7e2   : > { %v1972_v22 = vrot.slane %v1970_v4, 4  ;;  %v1999_v24 = vrot.slane %v1996_v62, 4  ;;  %v1950_v7 = vadd.f32 %v1946_v48, %v1920_v13 }
 0x7e4   : > { %v1973_v15 = vsel %vm583_vm15, %v1971_v20, %v1972_v22  ;;  %v1975_v9 = vsel %vm700_vm1, %v1970_v4, %v1972_v22 }
 0x7e5   : > { %v2024_v59 = vpop.permute.xlu1 %2023  ;;  %v1998_v14 = vpop.permute.xlu0 %1997  ;;  %v1974_v35 = vsel %vm700_vm1, %v1968_v38, %v1973_v15  ;;  %v1979_v0 = vadd.f32 %v1975_v9, %v1951_v17  ;;  %vm2116_vm1 = vcmask 965632  }
 0x7e6   : > { %v2000_v5 = vrot.slane %v1998_v14, 4  ;;  %v2027_v49 = vrot.slane %v2024_v59, 4  ;;  %v1978_v44 = vadd.f32 %v1974_v35, %v1950_v7 }
 0x7e8   : > { %v2001_v1 = vsel %vm583_vm15, %v1999_v24, %v2000_v5  ;;  %v2003_v57 = vsel %vm729_vm3, %v1998_v14, %v2000_v5  ;;  %v2205_v14 = vld [vmem:[%s3682_s1] sm:$0xf] }
 0x7e9   : > { %v2053_v29 = vpop.permute.xlu1 %2052  ;;  %v2026_v54 = vpop.permute.xlu0 %2025  ;;  %v2002_v2 = vsel %vm729_vm3, %v1996_v62, %v2001_v1  ;;  %v2007_v31 = vadd.f32 %v2003_v57, %v1979_v0  ;;  %vm2187_vm3 = vcmask 261120  }
 0x7ea   : > { %v2028_v43 = vrot.slane %v2026_v54, 4  ;;  %v2056_v42 = vrot.slane %v2053_v29, 4  ;;  %v2006_v3 = vadd.f32 %v2002_v2, %v1978_v44 }
 0x7ec   : > { %v2029_v33 = vsel %vm583_vm15, %v2027_v49, %v2028_v43  ;;  %v2032_v25 = vsel %vm2030_vm12, %v2026_v54, %v2028_v43 }
 0x7ed   : > { %v2081_v53 = vpop.permute.xlu1 %2080  ;;  %v2055_v30 = vpop.permute.xlu0 %2054  ;;  %v2031_v27 = vsel %vm2030_vm12, %v2024_v59, %v2029_v33  ;;  %v2036_v36 = vadd.f32 %v2032_v25, %v2007_v31 }
 0x7ee   : > { %v2057_v11 = vrot.slane %v2055_v30, 4  ;;  %v2084_v40 = vrot.slane %v2081_v53, 4  ;;  %v2035_v6 = vadd.f32 %v2031_v27, %v2006_v3 }
 0x7f0   : > { %v2058_v18 = vsel %vm583_vm15, %v2056_v42, %v2057_v11  ;;  %v2060_v26 = vsel %vm311_vm13, %v2055_v30, %v2057_v11 }
 0x7f1   : > { %v2083_v38 = vpop.permute.xlu0 %2082  ;;  %v2059_v19 = vsel %vm311_vm13, %v2053_v29, %v2058_v18  ;;  %v2110_v51 = vpop.permute.xlu1 %2109  ;;  %v2064_v39 = vadd.f32 %v2060_v26, %v2036_v36  ;;  %vm2158_vm13 = vcmask 89088  }
 0x7f2   : > { %v2085_v52 = vrot.slane %v2083_v38, 4  ;;  %v2113_v41 = vrot.slane %v2110_v51, 4  ;;  %v2063_v47 = vadd.f32 %v2059_v19, %v2035_v6 }
 0x7f4   : > { %v2086_v62 = vsel %vm583_vm15, %v2084_v40, %v2085_v52  ;;  %v2089_v4 = vsel %vm2087_vm6, %v2083_v38, %v2085_v52 }
 0x7f5   : > { %v2088_v32 = vsel %vm2087_vm6, %v2081_v53, %v2086_v62  ;;  %v2112_v63 = vpop.permute.xlu0 %2111  ;;  %v2093_v60 = vadd.f32 %v2089_v4, %v2064_v39 }
 0x7f6   : > { %v2114_v23 = vrot.slane %v2112_v63, 4  ;;  %v2092_v12 = vadd.f32 %v2088_v32, %v2063_v47 }
 0x7f8   : > { %v2115_v28 = vsel %vm583_vm15, %v2113_v41, %v2114_v23  ;;  %v2118_v8 = vsel %vm2116_vm1, %v2112_v63, %v2114_v23  ;;  %vm2135_vm15 = vcmask 384000  }
 0x7f9   : > { %v2117_v50 = vsel %vm2116_vm1, %v2110_v51, %v2115_v28  ;;  %v2122_v37 = vadd.f32 %v2118_v8, %v2093_v60 }
 0x7fa   : > { %v2121_v58 = vadd.f32 %v2117_v50, %v2092_v12 }
 0x7fb   : > { %2156 = vrot.lane.b32.xlu0 %v2122_v37, %s2566_s14  ;;  %v2176_v55 = vcombine.high %v2122_v37, %v2122_v37 }
 0x7fc   : > { %v2130_v59 = vcombine.high %v2121_v58, %v2121_v58 }
 0x7fe   : > { %2154 = vrot.lane.b32.xlu1 %v2130_v59, %s2566_s14 }
 0x7ff   : > { %2127 = vrot.lane.b32.xlu0 %v2121_v58, %s2567_s6 }
 0x802   : > { %2124 = vrot.lane.b32.xlu1 %v2121_v58, %s2526_s10  ;;  %s2573_s10 = smov 29  }
 0x803   : > { %2133 = vrot.lane.b32.xlu0 %v2130_v59, %s2568_s29 }
 0x806   : > { %2131 = vrot.lane.b32.xlu1 %v2121_v58, %s2568_s29 }
 0x807   : > { %2208 = vperm.xlu0 %2451, %v2205_v14  }
 0x80a   : > { %2161 = vrot.lane.b32.xlu1 %v2122_v37, %s2569_s7 }
 0x80b   : > { %2167 = vrot.lane.b32.xlu0 %v2122_v37, %s2563_s28 }
 0x80e   : > { %2164 = vrot.lane.b32.xlu1 %v2122_v37, %s2500_s9  ;;  %s2575_s9 = smov 97  }
 0x80f   : > { %2170 = vrot.lane.b32.xlu0 %v2122_v37, %s2570_s8 }
 0x812   : > { %2138 = vrot.lane.b32.xlu1 %v2130_v59, %s2571_s15 }
 0x813   : > { %2173 = vrot.lane.b32.xlu0 %v2122_v37, %s2572_s27 }
 0x816   : > { %2141 = vrot.lane.b32.xlu1 %v2130_v59, %s2556_s24 }
 0x817   : > { %2179 = vrot.lane.b32.xlu0 %v2176_v55, %s2507_s18 }
 0x81a   : > { %2144 = vrot.lane.b32.xlu1 %v2130_v59, %s2573_s10 }
 0x81b   : > { %2150 = vrot.lane.b32.xlu0 %v2130_v59, %s2558_s20 }
 0x81e   : > { %2177 = vrot.lane.b32.xlu1 %v2122_v37, %s2507_s18  ;;  %s2285_s18 = sshll.u32 %s3774_s13, 3 }
 0x81f   : > { %s170_s24 = scalar_lea.vmem %s3684_s3, %s2285_s18 }
 0x822   : > { %2147 = vrot.lane.b32.xlu1 %v2130_v59, %s2574_s16 }
 0x826   : > { %2183 = vrot.lane.b32.xlu1 %v2176_v55, %s2575_s9 }
 0x86d   : > { %v2157_v45 = vpop.permute.xlu0 %2156 }
 0x870   : > { %v2155_v61 = vpop.permute.xlu1 %2154 }
 0x871   : > { %v2128_v34 = vpop.permute.xlu0 %2127  ;;  %v2159_v15 = vsel %vm2158_vm13, %v2155_v61, %v2157_v45 }
 0x874   : > { %v2125_v22 = vpop.permute.xlu1 %2124 }
 0x875   : > { %v2134_v5 = vpop.permute.xlu0 %2133  ;;  %v2186_v7 = vsel %vm1774_vm5, %v2125_v22, %v2128_v34 }
 0x878   : > { %v2132_v56 = vpop.permute.xlu1 %2131 }
 0x879   : > { %v2136_v13 = vsel %vm2135_vm15, %v2132_v56, %v2134_v5 }
 0x87a   : > { %v2188_v35 = vsel %vm2187_vm3, %v2186_v7, %v2136_v13 }
 0x87c   : > { %v2162_v46 = vpop.permute.xlu1 %2161 }
 0x87d   : > { %v2198_v9 = vsel %vm1774_vm5, %v2159_v15, %v2162_v46 }
 0x880   : > { %v2165_v20 = vpop.permute.xlu1 %2164 }
 0x881   : > { %v2199_v49 = vsel %vm2187_vm3, %v2198_v9, %v2165_v20 }
 0x884   : > { %v2139_v21 = vpop.permute.xlu1 %2138 }
 0x885   : > { %v2190_v57 = vsel %vm2189_vm14, %v2188_v35, %v2139_v21 }
 0x886   : > { %v2209_v10 = vpop.permute.xlu0 %2208 }
 0x888   : > { %v2142_v16 = vpop.permute.xlu1 %2141 }
 0x889   : > { %v2192_v11 = vsel %vm2191_vm0, %v2190_v57, %v2142_v16 }
 0x88a   : > { %v2168_v29 = vpop.permute.xlu0 %2167 }
 0x88b   : > { %v2200_v17 = vsel %vm2189_vm14, %v2199_v49, %v2168_v29 }
 0x88c   : > { %v2145_v54 = vpop.permute.xlu1 %2144 }
 0x88d   : > { %v2193_v44 = vsel %vm1109_vm4, %v2192_v11, %v2145_v54 }
 0x88e   : > { %v2171_v48 = vpop.permute.xlu0 %2170 }
 0x88f   : > { %v2201_v53 = vsel %vm2191_vm0, %v2200_v17, %v2171_v48 }
 0x890   : > { %v2178_v24 = vpop.permute.xlu1 %2177 }
 0x892   : > { %v2174_v43 = vpop.permute.xlu0 %2173 }
 0x893   : > { %v2202_v42 = vsel %vm1109_vm4, %v2201_v53, %v2174_v43 }
 0x894   : > { %v2148_v1 = vpop.permute.xlu1 %2147 }
 0x895   : > { %v2195_v18 = vsel %vm2194_vm7, %v2193_v44, %v2148_v1 }
 0x896   : > { %v2180_v30 = vpop.permute.xlu0 %2179 }
 0x897   : > { %v2181_v33 = vsel %vm845_vm8, %v2178_v24, %v2180_v30 }
 0x898   : > { %v2203_v0 = vsel %vm2194_vm7, %v2202_v42, %v2181_v33  ;;  %v2184_v2 = vpop.permute.xlu1 %2183 }
 0x899   : > { %v2204_v25 = vsel %vm2196_vm2, %v2203_v0, %v2184_v2 }
 0x89a   : > { %v2151_v31 = vpop.permute.xlu0 %2150  ;;  %v2212_v38 = vadd.f32 %v2209_v10, %v2204_v25 }
 0x89b   : > { %v2197_v27 = vsel %vm2196_vm2, %v2195_v18, %v2151_v31 }
 0x89c   : > { %v2211_v3 = vadd.f32 %v2209_v10, %v2197_v27 }
 0x89e   : > { %v2215_v40 = vcombine.low %v2211_v3, %v2212_v38 }
 0x8a0   : > { %2217 = vst [vmem:[%s170_s24] sm:$0xff] %v2215_v40 }
 0x8a1 PF: > { %s13_s12 = sadd.s32 1, %s2463_s12  }
 0x8a2   : > { %p10_p4 = scmp.ge.s32.totalorder %s13_s12, 4  }
 0x8a4   :  { %12 = sbr.rel (!%p10_p4) target bundleno = 1 (0x1), region = 62 }

</bundles_post_ra>
